<compile_context>
chip_gen: v6e
topology: v6e:2x2x1
jax: 0.10.0
libtpu: 0.0.40
codegen_flags: <defaults>
</compile_context>

<pallas_src>
import functools
from dataclasses import dataclass

import jax
import jax.numpy as jnp
from jax import lax
from jax.experimental import pallas as pl
from jax.experimental.pallas import tpu as pltpu


@dataclass
class Config:
    n_in_cat: int = 4
    n_in_num: int = 4
    d_model: int = 32
    n_heads: int = 2
    head_size: int = 16
    n_embed: int = 16
    dropout: float = 0.1
    n_layers: int = 4      # the reference module hard-codes 4 Blocks


# "smalls" slab row layout: one lane-dense (8, 128) f32 tile per layer
_R_LN1G, _R_LN1B, _R_LN2G, _R_LN2B = 0, 1, 2, 3
_R_BQKV, _R_BPROJ, _R_B1, _R_B2 = 4, 5, 6, 7


# ----------------------------------------------------------------------------
# Pallas kernel
# ----------------------------------------------------------------------------
def _layernorm(h, gamma, beta, eps):
    mu = jnp.mean(h, axis=-1, keepdims=True)
    var = jnp.mean(jnp.square(h - mu), axis=-1, keepdims=True)
    return (h - mu) * lax.rsqrt(var + eps) * gamma + beta


def transformer_kernel(idx_ref, wemb_ref, wqkv_ref, wproj_ref, w1_ref, w2_ref,
                       wf_ref, smalls_ref,
                       o_ref,
                       heads_scr,
                       *, batch, seq, n_layers, n_heads, head_size, eps):
    B, T, nh, H = batch, seq, n_heads, head_size
    N = B * T
    Vp, D = wemb_ref.shape

    # ---- embeddings: fused table lookup as one lane-dense one-hot matmul ----
    idx = idx_ref[...]                                         # (N, 1) int32
    iota = lax.broadcasted_iota(jnp.int32, (N, Vp), 1)
    onehot = (iota == idx).astype(jnp.float32)                 # (N, Vp)
    x = jnp.dot(onehot, wemb_ref[...],
                preferred_element_type=jnp.float32)            # (N, D) f32 residual

    for l in range(n_layers):
        sm = smalls_ref[l]                                     # (8, 128) per-layer smalls
        ln1g = sm[_R_LN1G:_R_LN1G + 1, :D]
        ln1b = sm[_R_LN1B:_R_LN1B + 1, :D]
        ln2g = sm[_R_LN2G:_R_LN2G + 1, :D]
        ln2b = sm[_R_LN2B:_R_LN2B + 1, :D]
        bqkv = sm[_R_BQKV:_R_BQKV + 1, :3 * nh * H]
        bproj = sm[_R_BPROJ:_R_BPROJ + 1, :D]
        b1 = sm[_R_B1:_R_B1 + 1, :4 * D]
        b2 = sm[_R_B2:_R_B2 + 1, :D]

        # ----------------- attention sub-layer -----------------
        h = _layernorm(x, ln1g, ln1b, eps)
        # one fused projection for K|Q|V of all heads (Q pre-scaled by D**-0.5)
        kqv = jnp.dot(h, wqkv_ref[l],
                      preferred_element_type=jnp.float32) + bqkv
        kqv3 = kqv.reshape(B, T, 3 * nh * H)

        for hd in range(nh):
            k = kqv3[:, :, hd * H:(hd + 1) * H]                       # (B, T, H)
            q = kqv3[:, :, (nh + hd) * H:(nh + hd + 1) * H]
            v = kqv3[:, :, (2 * nh + hd) * H:(2 * nh + hd + 1) * H]
            # scores = k @ q^T: contract on the feature axis (no transpose).
            s = lax.dot_general(k, q, (((2,), (2,)), ((0,), (0,))),
                                preferred_element_type=jnp.float32)   # (B, T, T)
            s = s - jnp.max(s, axis=-1, keepdims=True)
            e = jnp.exp(s)
            denom = jnp.sum(e, axis=-1, keepdims=True)
            r = pl.reciprocal(denom, approx=True)       # EUP seed ...
            r = r * (2.0 - denom * r)                   # ... + one Newton step (f32 exact)
            p = e * r
            # TODO(synk): training-mode dropout on p (pltpu.prng_random_bits); eval identity.
            oh = lax.dot_general(p, v, (((2,), (1,)), ((0,), (0,))),
                                 preferred_element_type=jnp.float32)  # (B, T, H)
            # place this head into its static lane slice of the scratch
            heads_scr[:, hd * H:(hd + 1) * H] = oh.reshape(N, H)

        # single fused output projection for all heads
        attn = jnp.dot(heads_scr[...], wproj_ref[l],
                       preferred_element_type=jnp.float32)            # (N, D)
        x = x + attn + bproj          # residual (dropout = identity in eval)

        # ----------------- feed-forward sub-layer -----------------
        h2 = _layernorm(x, ln2g, ln2b, eps)
        f = jnp.dot(h2, w1_ref[l], preferred_element_type=jnp.float32) + b1
        f = jnp.maximum(f, 0.0)
        f = jnp.dot(f, w2_ref[l], preferred_element_type=jnp.float32) + b2
        x = x + f                     # residual (dropout = identity in eval)

    # ---- final Linear(T*D -> 3) on the flattened features, done per output
    #      channel as broadcast-multiply + reduce (avoids a lane-merging reshape)
    x3 = x.reshape(B, T, D)
    cols = []
    for o in range(3):
        w_o = wf_ref[o]                                    # (T, D)
        s1 = jnp.sum(x3 * w_o, axis=-1)                    # (B, T)
        cols.append(jnp.sum(s1, axis=-1, keepdims=True))   # (B, 1)
    bf = smalls_ref[n_layers][0:1, 0:3]                    # (1, 3)
    out = jnp.concatenate(cols, axis=-1) + bf              # (B, 3)
    o_ref[...] = out.astype(o_ref.dtype)


# ----------------------------------------------------------------------------
# Parameter construction / one-time fusion (wrapper-side glue)
# ----------------------------------------------------------------------------
def init_params(key, cfg):
    D, nh, H = cfg.d_model, cfg.n_heads, cfg.head_size
    T = cfg.n_in_cat + cfg.n_in_num

    def linear(k, out_dim, in_dim):
        k1, k2 = jax.random.split(k)
        s = 1.0 / (in_dim ** 0.5)
        w = jax.random.uniform(k1, (out_dim, in_dim), jnp.float32, -s, s)
        b = jax.random.uniform(k2, (out_dim,), jnp.float32, -s, s)
        return w, b

    keys = jax.random.split(key, 3 + cfg.n_layers)
    params = {
        "embedcat": jax.random.normal(keys[0], (2, D), jnp.float32),
        "embednum": jax.random.normal(keys[1], (cfg.n_embed, D), jnp.float32),
        "blocks": [],
    }
    for l in range(cfg.n_layers):
        bkeys = jax.random.split(keys[3 + l], 16)
        heads = []
        for hh in range(nh):
            wk, bk = linear(bkeys[3 * hh + 0], H, D)
            wq, bq = linear(bkeys[3 * hh + 1], H, D)
            wv, bv = linear(bkeys[3 * hh + 2], H, D)
            heads.append(dict(wk=wk, bk=bk, wq=wq, bq=bq, wv=wv, bv=bv))
        wproj, bproj = linear(bkeys[10], D, nh * H)
        w1, b1 = linear(bkeys[11], 4 * D, D)
        w2, b2 = linear(bkeys[12], D, 4 * D)
        params["blocks"].append(dict(
            heads=heads, wproj=wproj, bproj=bproj,
            ln1_g=1.0 + 0.1 * jax.random.normal(bkeys[6], (D,), jnp.float32),
            ln1_b=0.1 * jax.random.normal(bkeys[7], (D,), jnp.float32),
            ln2_g=1.0 + 0.1 * jax.random.normal(bkeys[8], (D,), jnp.float32),
            ln2_b=0.1 * jax.random.normal(bkeys[9], (D,), jnp.float32),
            w1=w1, b1=b1, w2=w2, b2=b2))
    wf, bf = linear(keys[2], 3, T * D)
    params["wf"], params["bf"] = wf, bf
    return params


def fuse_params(params, cfg):
    """Build the fused/padded weight slabs ONCE (call outside the hot path)."""
    D, nh, H = cfg.d_model, cfg.n_heads, cfg.head_size
    T = cfg.n_in_cat + cfg.n_in_num
    L = cfg.n_layers
    scale = float(D) ** -0.5            # module scales scores by C**-0.5, C = d_model

    # fused [embedcat; embednum] table, zero-padded to a lane-dense vocab (f32)
    wemb = jnp.concatenate([params["embedcat"], params["embednum"]], axis=0)
    V = wemb.shape[0]
    Vp = ((V + 127) // 128) * 128
    wemb = jnp.pad(wemb, ((0, Vp - V), (0, 0)))

    wqkv, wproj, w1, w2 = [], [], [], []
    smalls = jnp.zeros((L + 1, 8, 128), jnp.float32)
    for l, blk in enumerate(params["blocks"]):
        wk = jnp.concatenate([h["wk"].T for h in blk["heads"]], axis=1)
        wq = jnp.concatenate([h["wq"].T for h in blk["heads"]], axis=1) * scale
        wv = jnp.concatenate([h["wv"].T for h in blk["heads"]], axis=1)
        bk = jnp.concatenate([h["bk"] for h in blk["heads"]])
        bq = jnp.concatenate([h["bq"] for h in blk["heads"]]) * scale
        bv = jnp.concatenate([h["bv"] for h in blk["heads"]])
        wqkv.append(jnp.concatenate([wk, wq, wv], axis=1))          # (D, 3*nh*H)
        wproj.append(blk["wproj"].T)                                 # (nh*H, D)
        w1.append(blk["w1"].T)                                       # (D, 4D)
        w2.append(blk["w2"].T)                                       # (4D, D)

        row = jnp.zeros((8, 128), jnp.float32)
        row = row.at[_R_LN1G, :D].set(blk["ln1_g"])
        row = row.at[_R_LN1B, :D].set(blk["ln1_b"])
        row = row.at[_R_LN2G, :D].set(blk["ln2_g"])
        row = row.at[_R_LN2B, :D].set(blk["ln2_b"])
        row = row.at[_R_BQKV, :3 * nh * H].set(jnp.concatenate([bk, bq, bv]))
        row = row.at[_R_BPROJ, :D].set(blk["bproj"])
        row = row.at[_R_B1, :4 * D].set(blk["b1"])
        row = row.at[_R_B2, :D].set(blk["b2"])
        smalls = smalls.at[l].set(row)
    smalls = smalls.at[L, 0, :3].set(params["bf"])                   # final-head bias

    return dict(
        wemb=wemb,                                   # f32 keeps the residual source exact
        wqkv=jnp.stack(wqkv), wproj=jnp.stack(wproj),
        w1=jnp.stack(w1), w2=jnp.stack(w2),
        wf=params["wf"].reshape(3, T, D),            # wf[o, t, d] = Wf[o, t*D + d]
        smalls=smalls,                               # (L+1, 8, 128)
    )


def transformer_forward(x_tokens, fused, cfg, *, batch_block=None):
    """Only token-id glue + pallas_call; fused weights are pre-built."""
    B = x_tokens.shape[0]
    T = cfg.n_in_cat + cfg.n_in_num
    D, nh, H, L = cfg.d_model, cfg.n_heads, cfg.head_size, cfg.n_layers

    # combined token ids into the fused [embedcat; embednum] table (glue)
    xcat = x_tokens[:, :cfg.n_in_cat].astype(jnp.int32)
    xnum = x_tokens[:, cfg.n_in_cat:cfg.n_in_cat + cfg.n_in_num].astype(jnp.int32) + 2
    idx = jnp.concatenate([xcat, xnum], axis=1).reshape(B * T, 1)

    args = (idx, fused["wemb"], fused["wqkv"], fused["wproj"],
            fused["w1"], fused["w2"], fused["wf"], fused["smalls"])

    if batch_block is None or batch_block >= B:
        bb, grid = B, None
    else:
        assert B % batch_block == 0
        bb, grid = batch_block, (B // batch_block,)

    kernel = functools.partial(transformer_kernel, batch=bb, seq=T,
                               n_layers=L, n_heads=nh, head_size=H, eps=1e-5)
    scratch = [pltpu.VMEM((bb * T, nh * H), jnp.float32)]

    # rough scheduling hints
    N = B * T
    Vp = fused["wemb"].shape[0]
    flops = 2 * N * Vp * D
    flops += L * (2 * N * D * 3 * nh * H + 4 * B * nh * T * T * H
                  + 2 * N * nh * H * D + 16 * N * D * D)
    flops += 2 * B * T * D * 3
    transcendentals = L * (B * nh * T * T + 4 * N)
    bytes_accessed = int(sum(int(a.size) * a.dtype.itemsize for a in args)) + B * 3 * 4
    ce = pl.CostEstimate(flops=int(flops), transcendentals=int(transcendentals),
                         bytes_accessed=int(bytes_accessed))

    if grid is None:
        vmem_spec = pl.BlockSpec(memory_space=pltpu.MemorySpace.VMEM)
        return pl.pallas_call(
            kernel,
            out_shape=jax.ShapeDtypeStruct((B, 3), jnp.float32),
            in_specs=[vmem_spec] * len(args),
            out_specs=vmem_spec,
            scratch_shapes=scratch,
            compiler_params=pltpu.CompilerParams(vmem_limit_bytes=8 * 1024 * 1024),
            cost_estimate=ce,
        )(*args)

    # batch-block grid: idx / output tiled over batch, weights VMEM-resident via
    # constant index maps; "parallel" lets v7x's 2 TensorCores split the blocks.
    def resident(shape):
        nz = len(shape)
        return pl.BlockSpec(shape, lambda i, _nz=nz: (0,) * _nz)

    in_specs = [pl.BlockSpec((bb * T, 1), lambda i: (i, 0))] + \
               [resident(a.shape) for a in args[1:]]
    out_specs = pl.BlockSpec((bb, 3), lambda i: (i, 0))
    return pl.pallas_call(
        kernel,
        out_shape=jax.ShapeDtypeStruct((B, 3), jnp.float32),
        grid=grid,
        in_specs=in_specs,
        out_specs=out_specs,
        scratch_shapes=scratch,
        compiler_params=pltpu.CompilerParams(
            dimension_semantics=("parallel",),
            vmem_limit_bytes=8 * 1024 * 1024),
        cost_estimate=ce,
    )(*args)     # (B, 3); torch's .squeeze() is a no-op for B > 1


# ----------------------------------------------------------------------------
# Pure-JAX reference (mirrors the PyTorch module exactly, eval mode)
# ----------------------------------------------------------------------------
def _layernorm_ref(h, g, b, eps=1e-5):
    mu = jnp.mean(h, axis=-1, keepdims=True)
    var = jnp.mean(jnp.square(h - mu), axis=-1, keepdims=True)
    return (h - mu) / jnp.sqrt(var + eps) * g + b


def transformer_reference(x_tokens, params, cfg):
    HI = jax.lax.Precision.HIGHEST
    D = cfg.d_model
    xcat = x_tokens[:, :cfg.n_in_cat]
    xnum = x_tokens[:, cfg.n_in_cat:cfg.n_in_cat + cfg.n_in_num]
    h = jnp.concatenate([params["embedcat"][xcat], params["embednum"][xnum]], axis=1)
    for blk in params["blocks"]:
        hn = _layernorm_ref(h, blk["ln1_g"], blk["ln1_b"])
        heads_out = []
        for hd in blk["heads"]:
            k = jnp.einsum("btd,hd->bth", hn, hd["wk"], precision=HI) + hd["bk"]
            q = jnp.einsum("btd,hd->bth", hn, hd["wq"], precision=HI) + hd["bq"]
            v = jnp.einsum("btd,hd->bth", hn, hd["wv"], precision=HI) + hd["bv"]
            w = jnp.einsum("bth,bsh->bts", k, q, precision=HI) * (D ** -0.5)
            w = jax.nn.softmax(w, axis=-1)
            heads_out.append(jnp.einsum("bts,bsh->bth", w, v, precision=HI))
        mh = jnp.concatenate(heads_out, axis=-1)
        h = h + jnp.einsum("bth,dh->btd", mh, blk["wproj"], precision=HI) + blk["bproj"]
        hn2 = _layernorm_ref(h, blk["ln2_g"], blk["ln2_b"])
        ff = jax.nn.relu(jnp.einsum("btd,fd->btf", hn2, blk["w1"], precision=HI) + blk["b1"])
        ff = jnp.einsum("btf,df->btd", ff, blk["w2"], precision=HI) + blk["b2"]
        h = h + ff
    flat = h.reshape(h.shape[0], -1)
    return jnp.einsum("bn,on->bo", flat, params["wf"], precision=HI) + params["bf"]


# ----------------------------------------------------------------------------
if __name__ == "__main__":
    cfg = Config(n_in_cat=4, n_in_num=4, d_model=32, n_heads=2, head_size=16,
                 n_embed=16, dropout=0.1, n_layers=4)
    assert cfg.n_embed % cfg.n_heads == 0   # mirrors Transformer.__init__ assert

    key = jax.random.PRNGKey(0)
    kp, kc, kn, kc2, kn2 = jax.random.split(key, 5)
    params = init_params(kp, cfg)

    # one-time weight fusion (hoisted out of the per-call path)
    fused = jax.block_until_ready(fuse_params(params, cfg))

    # ---- small batch, gridless single-invocation path ----
    B = 2
    xcat = jax.random.randint(kc, (B, cfg.n_in_cat), 0, 2)
    xnum = jax.random.randint(kn, (B, cfg.n_in_num), 0, cfg.n_embed)
    x_tokens = jnp.concatenate([xcat, xnum], axis=1).astype(jnp.int32)   # (B, 8)

    fwd = jax.jit(lambda xt, fp: transformer_forward(xt, fp, cfg))
    out = jax.block_until_ready(fwd(x_tokens, fused))
    ref = transformer_reference(x_tokens, params, cfg)
    assert out.shape == (B, 3)
    # tolerance leaves room for MXU f32 multi-pass accumulation differences
    assert jnp.allclose(out, ref, atol=2e-2, rtol=2e-2), (
        f"gridless mismatch: max abs err {float(jnp.max(jnp.abs(out - ref)))}")

    # ---- larger batch with a ("parallel",) batch-block grid (both TCs on v7x) ----
    B2, BB = 32, 8
    xcat2 = jax.random.randint(kc2, (B2, cfg.n_in_cat), 0, 2)
    xnum2 = jax.random.randint(kn2, (B2, cfg.n_in_num), 0, cfg.n_embed)
    x_tokens2 = jnp.concatenate([xcat2, xnum2], axis=1).astype(jnp.int32)

    fwd_grid = jax.jit(lambda xt, fp: transformer_forward(xt, fp, cfg, batch_block=BB))
    out2 = jax.block_until_ready(fwd_grid(x_tokens2, fused))
    ref2 = transformer_reference(x_tokens2, params, cfg)
    assert out2.shape == (B2, 3)
    assert jnp.allclose(out2, ref2, atol=2e-2, rtol=2e-2), (
        f"grid mismatch: max abs err {float(jnp.max(jnp.abs(out2 - ref2)))}")

    print("KERNEL_OK")
</pallas_src>

<mosaic_0001>
module attributes {stable_mosaic.version = 11 : i64} {
  func.func @transformer_kernel(%arg0: memref<16x1xi32, #tpu.memory_space<vmem>>, %arg1: memref<128x32xf32, #tpu.memory_space<vmem>>, %arg2: memref<4x32x96xf32, #tpu.memory_space<vmem>>, %arg3: memref<4x32x32xf32, #tpu.memory_space<vmem>>, %arg4: memref<4x32x128xf32, #tpu.memory_space<vmem>>, %arg5: memref<4x128x32xf32, #tpu.memory_space<vmem>>, %arg6: memref<3x8x32xf32, #tpu.memory_space<vmem>>, %arg7: memref<5x8x128xf32, #tpu.memory_space<vmem>>, %arg8: memref<2x3xf32, #tpu.memory_space<vmem>>, %arg9: memref<16x32xf32, #tpu.memory_space<vmem>>) attributes {dimension_semantics = [], scalar_prefetch = 0 : i64, scratch_operands = 1 : i64, tpu.core_type = #tpu.core_type<tc>} {
    %c0 = arith.constant 0 : index
    %c0_0 = arith.constant 0 : index
    %0 = vector.load %arg0[%c0, %c0_0] : memref<16x1xi32, #tpu.memory_space<vmem>>, vector<16x1xi32>
    %1 = tpu.iota {dimensions = array<i32: 1>} : vector<16x128xi32>
    %2 = vector.broadcast %0 : vector<16x1xi32> to vector<16x128xi32>
    %3 = arith.cmpi eq, %1, %2 : vector<16x128xi32>
    %4 = arith.extui %3 : vector<16x128xi1> to vector<16x128xi32>
    %5 = arith.sitofp %4 : vector<16x128xi32> to vector<16x128xf32>
    %c0_1 = arith.constant 0 : index
    %c0_2 = arith.constant 0 : index
    %6 = vector.load %arg1[%c0_1, %c0_2] : memref<128x32xf32, #tpu.memory_space<vmem>>, vector<128x32xf32>
    %cst = arith.constant dense<0.000000e+00> : vector<16x32xf32>
    %7 = tpu.matmul %5, %6, %cst {dimension_numbers = #tpu.dot_dimension_numbers<[1], [0], [0], [1], [0, 0, 1, 1], [], []>} : vector<16x128xf32>, vector<128x32xf32>, vector<16x32xf32> -> vector<16x32xf32>
    %c0_3 = arith.constant 0 : index
    %c0_4 = arith.constant 0 : index
    %c0_5 = arith.constant 0 : index
    %8 = vector.load %arg7[%c0_3, %c0_4, %c0_5] : memref<5x8x128xf32, #tpu.memory_space<vmem>>, vector<1x8x128xf32>
    %9 = vector.shape_cast %8 : vector<1x8x128xf32> to vector<8x128xf32>
    %10 = vector.extract_strided_slice %9 {offsets = [0, 0], sizes = [1, 32], strides = [1, 1]} : vector<8x128xf32> to vector<1x32xf32>
    %11 = vector.extract_strided_slice %9 {offsets = [1, 0], sizes = [1, 32], strides = [1, 1]} : vector<8x128xf32> to vector<1x32xf32>
    %12 = vector.extract_strided_slice %9 {offsets = [2, 0], sizes = [1, 32], strides = [1, 1]} : vector<8x128xf32> to vector<1x32xf32>
    %13 = vector.extract_strided_slice %9 {offsets = [3, 0], sizes = [1, 32], strides = [1, 1]} : vector<8x128xf32> to vector<1x32xf32>
    %14 = vector.extract_strided_slice %9 {offsets = [4, 0], sizes = [1, 96], strides = [1, 1]} : vector<8x128xf32> to vector<1x96xf32>
    %15 = vector.extract_strided_slice %9 {offsets = [5, 0], sizes = [1, 32], strides = [1, 1]} : vector<8x128xf32> to vector<1x32xf32>
    %16 = vector.extract_strided_slice %9 {offsets = [6, 0], sizes = [1, 128], strides = [1, 1]} : vector<8x128xf32> to vector<1x128xf32>
    %17 = vector.extract_strided_slice %9 {offsets = [7, 0], sizes = [1, 32], strides = [1, 1]} : vector<8x128xf32> to vector<1x32xf32>
    %cst_6 = arith.constant dense<0.000000e+00> : vector<16xf32>
    %18 = vector.multi_reduction <add>, %7, %cst_6 [1] : vector<16x32xf32> to vector<16xf32>
    %19 = vector.shape_cast %18 : vector<16xf32> to vector<16x1xf32>
    %cst_7 = arith.constant 3.200000e+01 : f32
    %20 = vector.broadcast %cst_7 : f32 to vector<16x1xf32>
    %21 = arith.divf %19, %20 : vector<16x1xf32>
    %22 = vector.broadcast %21 : vector<16x1xf32> to vector<16x32xf32>
    %23 = arith.subf %7, %22 : vector<16x32xf32>
    %24 = arith.mulf %23, %23 : vector<16x32xf32>
    %cst_8 = arith.constant dense<0.000000e+00> : vector<16xf32>
    %25 = vector.multi_reduction <add>, %24, %cst_8 [1] : vector<16x32xf32> to vector<16xf32>
    %26 = vector.shape_cast %25 : vector<16xf32> to vector<16x1xf32>
    %cst_9 = arith.constant 3.200000e+01 : f32
    %27 = vector.broadcast %cst_9 : f32 to vector<16x1xf32>
    %28 = arith.divf %26, %27 : vector<16x1xf32>
    %29 = vector.broadcast %21 : vector<16x1xf32> to vector<16x32xf32>
    %30 = arith.subf %7, %29 : vector<16x32xf32>
    %cst_10 = arith.constant 9.99999974E-6 : f32
    %31 = vector.broadcast %cst_10 : f32 to vector<16x1xf32>
    %32 = arith.addf %28, %31 : vector<16x1xf32>
    %33 = math.rsqrt %32 : vector<16x1xf32>
    %34 = vector.broadcast %33 : vector<16x1xf32> to vector<16x32xf32>
    %35 = arith.mulf %30, %34 : vector<16x32xf32>
    %36 = vector.broadcast %10 : vector<1x32xf32> to vector<16x32xf32>
    %37 = arith.mulf %35, %36 : vector<16x32xf32>
    %38 = vector.broadcast %11 : vector<1x32xf32> to vector<16x32xf32>
    %39 = arith.addf %37, %38 : vector<16x32xf32>
    %c0_11 = arith.constant 0 : index
    %c0_12 = arith.constant 0 : index
    %c0_13 = arith.constant 0 : index
    %40 = vector.load %arg2[%c0_11, %c0_12, %c0_13] : memref<4x32x96xf32, #tpu.memory_space<vmem>>, vector<1x32x96xf32>
    %41 = vector.shape_cast %40 : vector<1x32x96xf32> to vector<32x96xf32>
    %cst_14 = arith.constant dense<0.000000e+00> : vector<16x96xf32>
    %42 = tpu.matmul %39, %41, %cst_14 {dimension_numbers = #tpu.dot_dimension_numbers<[1], [0], [0], [1], [0, 0, 1, 1], [], []>} : vector<16x32xf32>, vector<32x96xf32>, vector<16x96xf32> -> vector<16x96xf32>
    %43 = vector.broadcast %14 : vector<1x96xf32> to vector<16x96xf32>
    %44 = arith.addf %42, %43 : vector<16x96xf32>
    %45 = vector.shape_cast %44 : vector<16x96xf32> to vector<2x8x96xf32>
    %46 = vector.extract_strided_slice %45 {offsets = [0, 0, 0], sizes = [2, 8, 16], strides = [1, 1, 1]} : vector<2x8x96xf32> to vector<2x8x16xf32>
    %47 = vector.extract_strided_slice %45 {offsets = [0, 0, 32], sizes = [2, 8, 16], strides = [1, 1, 1]} : vector<2x8x96xf32> to vector<2x8x16xf32>
    %48 = vector.extract_strided_slice %45 {offsets = [0, 0, 64], sizes = [2, 8, 16], strides = [1, 1, 1]} : vector<2x8x96xf32> to vector<2x8x16xf32>
    %cst_15 = arith.constant dense<0.000000e+00> : vector<2x8x8xf32>
    %49 = tpu.matmul %46, %47, %cst_15 {dimension_numbers = #tpu.dot_dimension_numbers<[2], [2], [1], [1], [0, 0, 0, 1, 1, 1], [0], [0]>} : vector<2x8x16xf32>, vector<2x8x16xf32>, vector<2x8x8xf32> -> vector<2x8x8xf32>
    %cst_16 = arith.constant dense<0xFF800000> : vector<2x8xf32>
    %50 = vector.multi_reduction <maximumf>, %49, %cst_16 [2] : vector<2x8x8xf32> to vector<2x8xf32>
    %51 = vector.shape_cast %50 : vector<2x8xf32> to vector<2x8x1xf32>
    %52 = vector.broadcast %51 : vector<2x8x1xf32> to vector<2x8x8xf32>
    %53 = arith.subf %49, %52 : vector<2x8x8xf32>
    %54 = math.exp %53 : vector<2x8x8xf32>
    %cst_17 = arith.constant dense<0.000000e+00> : vector<2x8xf32>
    %55 = vector.multi_reduction <add>, %54, %cst_17 [2] : vector<2x8x8xf32> to vector<2x8xf32>
    %56 = vector.shape_cast %55 : vector<2x8xf32> to vector<2x8x1xf32>
    %57 = tpu.reciprocal %56 {approx = true} : vector<2x8x1xf32> -> vector<2x8x1xf32>
    %58 = arith.mulf %56, %57 : vector<2x8x1xf32>
    %cst_18 = arith.constant 2.000000e+00 : f32
    %59 = vector.broadcast %cst_18 : f32 to vector<2x8x1xf32>
    %60 = arith.subf %59, %58 : vector<2x8x1xf32>
    %61 = arith.mulf %57, %60 : vector<2x8x1xf32>
    %62 = vector.broadcast %61 : vector<2x8x1xf32> to vector<2x8x8xf32>
    %63 = arith.mulf %54, %62 : vector<2x8x8xf32>
    %cst_19 = arith.constant dense<0.000000e+00> : vector<2x8x16xf32>
    %64 = tpu.matmul %63, %48, %cst_19 {dimension_numbers = #tpu.dot_dimension_numbers<[2], [1], [1], [2], [0, 0, 0, 1, 1, 2], [0], [0]>} : vector<2x8x8xf32>, vector<2x8x16xf32>, vector<2x8x16xf32> -> vector<2x8x16xf32>
    %65 = vector.shape_cast %64 : vector<2x8x16xf32> to vector<16x16xf32>
    %c0_20 = arith.constant 0 : index
    %c0_21 = arith.constant 0 : index
    %66 = vector.load %arg9[%c0_20, %c0_21] : memref<16x32xf32, #tpu.memory_space<vmem>>, vector<16x16xf32>
    tpu.vector_store %arg9[%c0_20, %c0_21], %65 {strides = array<i32>} : memref<16x32xf32, #tpu.memory_space<vmem>>, vector<16x16xf32>,
    %67 = vector.extract_strided_slice %45 {offsets = [0, 0, 16], sizes = [2, 8, 16], strides = [1, 1, 1]} : vector<2x8x96xf32> to vector<2x8x16xf32>
    %68 = vector.extract_strided_slice %45 {offsets = [0, 0, 48], sizes = [2, 8, 16], strides = [1, 1, 1]} : vector<2x8x96xf32> to vector<2x8x16xf32>
    %69 = vector.extract_strided_slice %45 {offsets = [0, 0, 80], sizes = [2, 8, 16], strides = [1, 1, 1]} : vector<2x8x96xf32> to vector<2x8x16xf32>
    %cst_22 = arith.constant dense<0.000000e+00> : vector<2x8x8xf32>
    %70 = tpu.matmul %67, %68, %cst_22 {dimension_numbers = #tpu.dot_dimension_numbers<[2], [2], [1], [1], [0, 0, 0, 1, 1, 1], [0], [0]>} : vector<2x8x16xf32>, vector<2x8x16xf32>, vector<2x8x8xf32> -> vector<2x8x8xf32>
    %cst_23 = arith.constant dense<0xFF800000> : vector<2x8xf32>
    %71 = vector.multi_reduction <maximumf>, %70, %cst_23 [2] : vector<2x8x8xf32> to vector<2x8xf32>
    %72 = vector.shape_cast %71 : vector<2x8xf32> to vector<2x8x1xf32>
    %73 = vector.broadcast %72 : vector<2x8x1xf32> to vector<2x8x8xf32>
    %74 = arith.subf %70, %73 : vector<2x8x8xf32>
    %75 = math.exp %74 : vector<2x8x8xf32>
    %cst_24 = arith.constant dense<0.000000e+00> : vector<2x8xf32>
    %76 = vector.multi_reduction <add>, %75, %cst_24 [2] : vector<2x8x8xf32> to vector<2x8xf32>
    %77 = vector.shape_cast %76 : vector<2x8xf32> to vector<2x8x1xf32>
    %78 = tpu.reciprocal %77 {approx = true} : vector<2x8x1xf32> -> vector<2x8x1xf32>
    %79 = arith.mulf %77, %78 : vector<2x8x1xf32>
    %cst_25 = arith.constant 2.000000e+00 : f32
    %80 = vector.broadcast %cst_25 : f32 to vector<2x8x1xf32>
    %81 = arith.subf %80, %79 : vector<2x8x1xf32>
    %82 = arith.mulf %78, %81 : vector<2x8x1xf32>
    %83 = vector.broadcast %82 : vector<2x8x1xf32> to vector<2x8x8xf32>
    %84 = arith.mulf %75, %83 : vector<2x8x8xf32>
    %cst_26 = arith.constant dense<0.000000e+00> : vector<2x8x16xf32>
    %85 = tpu.matmul %84, %69, %cst_26 {dimension_numbers = #tpu.dot_dimension_numbers<[2], [1], [1], [2], [0, 0, 0, 1, 1, 2], [0], [0]>} : vector<2x8x8xf32>, vector<2x8x16xf32>, vector<2x8x16xf32> -> vector<2x8x16xf32>
    %86 = vector.shape_cast %85 : vector<2x8x16xf32> to vector<16x16xf32>
    %c0_27 = arith.constant 0 : index
    %c16 = arith.constant 16 : index
    %87 = vector.load %arg9[%c0_27, %c16] : memref<16x32xf32, #tpu.memory_space<vmem>>, vector<16x16xf32>
    tpu.vector_store %arg9[%c0_27, %c16], %86 {strides = array<i32>} : memref<16x32xf32, #tpu.memory_space<vmem>>, vector<16x16xf32>,
    %c0_28 = arith.constant 0 : index
    %c0_29 = arith.constant 0 : index
    %88 = vector.load %arg9[%c0_28, %c0_29] : memref<16x32xf32, #tpu.memory_space<vmem>>, vector<16x32xf32>
    %c0_30 = arith.constant 0 : index
    %c0_31 = arith.constant 0 : index
    %c0_32 = arith.constant 0 : index
    %89 = vector.load %arg3[%c0_30, %c0_31, %c0_32] : memref<4x32x32xf32, #tpu.memory_space<vmem>>, vector<1x32x32xf32>
    %90 = vector.shape_cast %89 : vector<1x32x32xf32> to vector<32x32xf32>
    %cst_33 = arith.constant dense<0.000000e+00> : vector<16x32xf32>
    %91 = tpu.matmul %88, %90, %cst_33 {dimension_numbers = #tpu.dot_dimension_numbers<[1], [0], [0], [1], [0, 0, 1, 1], [], []>} : vector<16x32xf32>, vector<32x32xf32>, vector<16x32xf32> -> vector<16x32xf32>
    %92 = arith.addf %7, %91 : vector<16x32xf32>
    %93 = vector.broadcast %15 : vector<1x32xf32> to vector<16x32xf32>
    %94 = arith.addf %92, %93 : vector<16x32xf32>
    %cst_34 = arith.constant dense<0.000000e+00> : vector<16xf32>
    %95 = vector.multi_reduction <add>, %94, %cst_34 [1] : vector<16x32xf32> to vector<16xf32>
    %96 = vector.shape_cast %95 : vector<16xf32> to vector<16x1xf32>
    %cst_35 = arith.constant 3.200000e+01 : f32
    %97 = vector.broadcast %cst_35 : f32 to vector<16x1xf32>
    %98 = arith.divf %96, %97 : vector<16x1xf32>
    %99 = vector.broadcast %98 : vector<16x1xf32> to vector<16x32xf32>
    %100 = arith.subf %94, %99 : vector<16x32xf32>
    %101 = arith.mulf %100, %100 : vector<16x32xf32>
    %cst_36 = arith.constant dense<0.000000e+00> : vector<16xf32>
    %102 = vector.multi_reduction <add>, %101, %cst_36 [1] : vector<16x32xf32> to vector<16xf32>
    %103 = vector.shape_cast %102 : vector<16xf32> to vector<16x1xf32>
    %cst_37 = arith.constant 3.200000e+01 : f32
    %104 = vector.broadcast %cst_37 : f32 to vector<16x1xf32>
    %105 = arith.divf %103, %104 : vector<16x1xf32>
    %106 = vector.broadcast %98 : vector<16x1xf32> to vector<16x32xf32>
    %107 = arith.subf %94, %106 : vector<16x32xf32>
    %cst_38 = arith.constant 9.99999974E-6 : f32
    %108 = vector.broadcast %cst_38 : f32 to vector<16x1xf32>
    %109 = arith.addf %105, %108 : vector<16x1xf32>
    %110 = math.rsqrt %109 : vector<16x1xf32>
    %111 = vector.broadcast %110 : vector<16x1xf32> to vector<16x32xf32>
    %112 = arith.mulf %107, %111 : vector<16x32xf32>
    %113 = vector.broadcast %12 : vector<1x32xf32> to vector<16x32xf32>
    %114 = arith.mulf %112, %113 : vector<16x32xf32>
    %115 = vector.broadcast %13 : vector<1x32xf32> to vector<16x32xf32>
    %116 = arith.addf %114, %115 : vector<16x32xf32>
    %c0_39 = arith.constant 0 : index
    %c0_40 = arith.constant 0 : index
    %c0_41 = arith.constant 0 : index
    %117 = vector.load %arg4[%c0_39, %c0_40, %c0_41] : memref<4x32x128xf32, #tpu.memory_space<vmem>>, vector<1x32x128xf32>
    %118 = vector.shape_cast %117 : vector<1x32x128xf32> to vector<32x128xf32>
    %cst_42 = arith.constant dense<0.000000e+00> : vector<16x128xf32>
    %119 = tpu.matmul %116, %118, %cst_42 {dimension_numbers = #tpu.dot_dimension_numbers<[1], [0], [0], [1], [0, 0, 1, 1], [], []>} : vector<16x32xf32>, vector<32x128xf32>, vector<16x128xf32> -> vector<16x128xf32>
    %120 = vector.broadcast %16 : vector<1x128xf32> to vector<16x128xf32>
    %121 = arith.addf %119, %120 : vector<16x128xf32>
    %cst_43 = arith.constant 0.000000e+00 : f32
    %122 = vector.broadcast %cst_43 : f32 to vector<16x128xf32>
    %123 = arith.maximumf %121, %122 : vector<16x128xf32>
    %c0_44 = arith.constant 0 : index
    %c0_45 = arith.constant 0 : index
    %c0_46 = arith.constant 0 : index
    %124 = vector.load %arg5[%c0_44, %c0_45, %c0_46] : memref<4x128x32xf32, #tpu.memory_space<vmem>>, vector<1x128x32xf32>
    %125 = vector.shape_cast %124 : vector<1x128x32xf32> to vector<128x32xf32>
    %cst_47 = arith.constant dense<0.000000e+00> : vector<16x32xf32>
    %126 = tpu.matmul %123, %125, %cst_47 {dimension_numbers = #tpu.dot_dimension_numbers<[1], [0], [0], [1], [0, 0, 1, 1], [], []>} : vector<16x128xf32>, vector<128x32xf32>, vector<16x32xf32> -> vector<16x32xf32>
    %127 = vector.broadcast %17 : vector<1x32xf32> to vector<16x32xf32>
    %128 = arith.addf %126, %127 : vector<16x32xf32>
    %129 = arith.addf %94, %128 : vector<16x32xf32>
    %c1 = arith.constant 1 : index
    %c0_48 = arith.constant 0 : index
    %c0_49 = arith.constant 0 : index
    %130 = vector.load %arg7[%c1, %c0_48, %c0_49] : memref<5x8x128xf32, #tpu.memory_space<vmem>>, vector<1x8x128xf32>
    %131 = vector.shape_cast %130 : vector<1x8x128xf32> to vector<8x128xf32>
    %132 = vector.extract_strided_slice %131 {offsets = [0, 0], sizes = [1, 32], strides = [1, 1]} : vector<8x128xf32> to vector<1x32xf32>
    %133 = vector.extract_strided_slice %131 {offsets = [1, 0], sizes = [1, 32], strides = [1, 1]} : vector<8x128xf32> to vector<1x32xf32>
    %134 = vector.extract_strided_slice %131 {offsets = [2, 0], sizes = [1, 32], strides = [1, 1]} : vector<8x128xf32> to vector<1x32xf32>
    %135 = vector.extract_strided_slice %131 {offsets = [3, 0], sizes = [1, 32], strides = [1, 1]} : vector<8x128xf32> to vector<1x32xf32>
    %136 = vector.extract_strided_slice %131 {offsets = [4, 0], sizes = [1, 96], strides = [1, 1]} : vector<8x128xf32> to vector<1x96xf32>
    %137 = vector.extract_strided_slice %131 {offsets = [5, 0], sizes = [1, 32], strides = [1, 1]} : vector<8x128xf32> to vector<1x32xf32>
    %138 = vector.extract_strided_slice %131 {offsets = [6, 0], sizes = [1, 128], strides = [1, 1]} : vector<8x128xf32> to vector<1x128xf32>
    %139 = vector.extract_strided_slice %131 {offsets = [7, 0], sizes = [1, 32], strides = [1, 1]} : vector<8x128xf32> to vector<1x32xf32>
    %cst_50 = arith.constant dense<0.000000e+00> : vector<16xf32>
    %140 = vector.multi_reduction <add>, %129, %cst_50 [1] : vector<16x32xf32> to vector<16xf32>
    %141 = vector.shape_cast %140 : vector<16xf32> to vector<16x1xf32>
    %cst_51 = arith.constant 3.200000e+01 : f32
    %142 = vector.broadcast %cst_51 : f32 to vector<16x1xf32>
    %143 = arith.divf %141, %142 : vector<16x1xf32>
    %144 = vector.broadcast %143 : vector<16x1xf32> to vector<16x32xf32>
    %145 = arith.subf %129, %144 : vector<16x32xf32>
    %146 = arith.mulf %145, %145 : vector<16x32xf32>
    %cst_52 = arith.constant dense<0.000000e+00> : vector<16xf32>
    %147 = vector.multi_reduction <add>, %146, %cst_52 [1] : vector<16x32xf32> to vector<16xf32>
    %148 = vector.shape_cast %147 : vector<16xf32> to vector<16x1xf32>
    %cst_53 = arith.constant 3.200000e+01 : f32
    %149 = vector.broadcast %cst_53 : f32 to vector<16x1xf32>
    %150 = arith.divf %148, %149 : vector<16x1xf32>
    %151 = vector.broadcast %143 : vector<16x1xf32> to vector<16x32xf32>
    %152 = arith.subf %129, %151 : vector<16x32xf32>
    %cst_54 = arith.constant 9.99999974E-6 : f32
    %153 = vector.broadcast %cst_54 : f32 to vector<16x1xf32>
    %154 = arith.addf %150, %153 : vector<16x1xf32>
    %155 = math.rsqrt %154 : vector<16x1xf32>
    %156 = vector.broadcast %155 : vector<16x1xf32> to vector<16x32xf32>
    %157 = arith.mulf %152, %156 : vector<16x32xf32>
    %158 = vector.broadcast %132 : vector<1x32xf32> to vector<16x32xf32>
    %159 = arith.mulf %157, %158 : vector<16x32xf32>
    %160 = vector.broadcast %133 : vector<1x32xf32> to vector<16x32xf32>
    %161 = arith.addf %159, %160 : vector<16x32xf32>
    %c1_55 = arith.constant 1 : index
    %c0_56 = arith.constant 0 : index
    %c0_57 = arith.constant 0 : index
    %162 = vector.load %arg2[%c1_55, %c0_56, %c0_57] : memref<4x32x96xf32, #tpu.memory_space<vmem>>, vector<1x32x96xf32>
    %163 = vector.shape_cast %162 : vector<1x32x96xf32> to vector<32x96xf32>
    %cst_58 = arith.constant dense<0.000000e+00> : vector<16x96xf32>
    %164 = tpu.matmul %161, %163, %cst_58 {dimension_numbers = #tpu.dot_dimension_numbers<[1], [0], [0], [1], [0, 0, 1, 1], [], []>} : vector<16x32xf32>, vector<32x96xf32>, vector<16x96xf32> -> vector<16x96xf32>
    %165 = vector.broadcast %136 : vector<1x96xf32> to vector<16x96xf32>
    %166 = arith.addf %164, %165 : vector<16x96xf32>
    %167 = vector.shape_cast %166 : vector<16x96xf32> to vector<2x8x96xf32>
    %168 = vector.extract_strided_slice %167 {offsets = [0, 0, 0], sizes = [2, 8, 16], strides = [1, 1, 1]} : vector<2x8x96xf32> to vector<2x8x16xf32>
    %169 = vector.extract_strided_slice %167 {offsets = [0, 0, 32], sizes = [2, 8, 16], strides = [1, 1, 1]} : vector<2x8x96xf32> to vector<2x8x16xf32>
    %170 = vector.extract_strided_slice %167 {offsets = [0, 0, 64], sizes = [2, 8, 16], strides = [1, 1, 1]} : vector<2x8x96xf32> to vector<2x8x16xf32>
    %cst_59 = arith.constant dense<0.000000e+00> : vector<2x8x8xf32>
    %171 = tpu.matmul %168, %169, %cst_59 {dimension_numbers = #tpu.dot_dimension_numbers<[2], [2], [1], [1], [0, 0, 0, 1, 1, 1], [0], [0]>} : vector<2x8x16xf32>, vector<2x8x16xf32>, vector<2x8x8xf32> -> vector<2x8x8xf32>
    %cst_60 = arith.constant dense<0xFF800000> : vector<2x8xf32>
    %172 = vector.multi_reduction <maximumf>, %171, %cst_60 [2] : vector<2x8x8xf32> to vector<2x8xf32>
    %173 = vector.shape_cast %172 : vector<2x8xf32> to vector<2x8x1xf32>
    %174 = vector.broadcast %173 : vector<2x8x1xf32> to vector<2x8x8xf32>
    %175 = arith.subf %171, %174 : vector<2x8x8xf32>
    %176 = math.exp %175 : vector<2x8x8xf32>
    %cst_61 = arith.constant dense<0.000000e+00> : vector<2x8xf32>
    %177 = vector.multi_reduction <add>, %176, %cst_61 [2] : vector<2x8x8xf32> to vector<2x8xf32>
    %178 = vector.shape_cast %177 : vector<2x8xf32> to vector<2x8x1xf32>
    %179 = tpu.reciprocal %178 {approx = true} : vector<2x8x1xf32> -> vector<2x8x1xf32>
    %180 = arith.mulf %178, %179 : vector<2x8x1xf32>
    %cst_62 = arith.constant 2.000000e+00 : f32
    %181 = vector.broadcast %cst_62 : f32 to vector<2x8x1xf32>
    %182 = arith.subf %181, %180 : vector<2x8x1xf32>
    %183 = arith.mulf %179, %182 : vector<2x8x1xf32>
    %184 = vector.broadcast %183 : vector<2x8x1xf32> to vector<2x8x8xf32>
    %185 = arith.mulf %176, %184 : vector<2x8x8xf32>
    %cst_63 = arith.constant dense<0.000000e+00> : vector<2x8x16xf32>
    %186 = tpu.matmul %185, %170, %cst_63 {dimension_numbers = #tpu.dot_dimension_numbers<[2], [1], [1], [2], [0, 0, 0, 1, 1, 2], [0], [0]>} : vector<2x8x8xf32>, vector<2x8x16xf32>, vector<2x8x16xf32> -> vector<2x8x16xf32>
    %187 = vector.shape_cast %186 : vector<2x8x16xf32> to vector<16x16xf32>
    %c0_64 = arith.constant 0 : index
    %c0_65 = arith.constant 0 : index
    %188 = vector.load %arg9[%c0_64, %c0_65] : memref<16x32xf32, #tpu.memory_space<vmem>>, vector<16x16xf32>
    tpu.vector_store %arg9[%c0_64, %c0_65], %187 {strides = array<i32>} : memref<16x32xf32, #tpu.memory_space<vmem>>, vector<16x16xf32>,
    %189 = vector.extract_strided_slice %167 {offsets = [0, 0, 16], sizes = [2, 8, 16], strides = [1, 1, 1]} : vector<2x8x96xf32> to vector<2x8x16xf32>
    %190 = vector.extract_strided_slice %167 {offsets = [0, 0, 48], sizes = [2, 8, 16], strides = [1, 1, 1]} : vector<2x8x96xf32> to vector<2x8x16xf32>
    %191 = vector.extract_strided_slice %167 {offsets = [0, 0, 80], sizes = [2, 8, 16], strides = [1, 1, 1]} : vector<2x8x96xf32> to vector<2x8x16xf32>
    %cst_66 = arith.constant dense<0.000000e+00> : vector<2x8x8xf32>
    %192 = tpu.matmul %189, %190, %cst_66 {dimension_numbers = #tpu.dot_dimension_numbers<[2], [2], [1], [1], [0, 0, 0, 1, 1, 1], [0], [0]>} : vector<2x8x16xf32>, vector<2x8x16xf32>, vector<2x8x8xf32> -> vector<2x8x8xf32>
    %cst_67 = arith.constant dense<0xFF800000> : vector<2x8xf32>
    %193 = vector.multi_reduction <maximumf>, %192, %cst_67 [2] : vector<2x8x8xf32> to vector<2x8xf32>
    %194 = vector.shape_cast %193 : vector<2x8xf32> to vector<2x8x1xf32>
    %195 = vector.broadcast %194 : vector<2x8x1xf32> to vector<2x8x8xf32>
    %196 = arith.subf %192, %195 : vector<2x8x8xf32>
    %197 = math.exp %196 : vector<2x8x8xf32>
    %cst_68 = arith.constant dense<0.000000e+00> : vector<2x8xf32>
    %198 = vector.multi_reduction <add>, %197, %cst_68 [2] : vector<2x8x8xf32> to vector<2x8xf32>
    %199 = vector.shape_cast %198 : vector<2x8xf32> to vector<2x8x1xf32>
    %200 = tpu.reciprocal %199 {approx = true} : vector<2x8x1xf32> -> vector<2x8x1xf32>
    %201 = arith.mulf %199, %200 : vector<2x8x1xf32>
    %cst_69 = arith.constant 2.000000e+00 : f32
    %202 = vector.broadcast %cst_69 : f32 to vector<2x8x1xf32>
    %203 = arith.subf %202, %201 : vector<2x8x1xf32>
    %204 = arith.mulf %200, %203 : vector<2x8x1xf32>
    %205 = vector.broadcast %204 : vector<2x8x1xf32> to vector<2x8x8xf32>
    %206 = arith.mulf %197, %205 : vector<2x8x8xf32>
    %cst_70 = arith.constant dense<0.000000e+00> : vector<2x8x16xf32>
    %207 = tpu.matmul %206, %191, %cst_70 {dimension_numbers = #tpu.dot_dimension_numbers<[2], [1], [1], [2], [0, 0, 0, 1, 1, 2], [0], [0]>} : vector<2x8x8xf32>, vector<2x8x16xf32>, vector<2x8x16xf32> -> vector<2x8x16xf32>
    %208 = vector.shape_cast %207 : vector<2x8x16xf32> to vector<16x16xf32>
    %c0_71 = arith.constant 0 : index
    %c16_72 = arith.constant 16 : index
    %209 = vector.load %arg9[%c0_71, %c16_72] : memref<16x32xf32, #tpu.memory_space<vmem>>, vector<16x16xf32>
    tpu.vector_store %arg9[%c0_71, %c16_72], %208 {strides = array<i32>} : memref<16x32xf32, #tpu.memory_space<vmem>>, vector<16x16xf32>,
    %c0_73 = arith.constant 0 : index
    %c0_74 = arith.constant 0 : index
    %210 = vector.load %arg9[%c0_73, %c0_74] : memref<16x32xf32, #tpu.memory_space<vmem>>, vector<16x32xf32>
    %c1_75 = arith.constant 1 : index
    %c0_76 = arith.constant 0 : index
    %c0_77 = arith.constant 0 : index
    %211 = vector.load %arg3[%c1_75, %c0_76, %c0_77] : memref<4x32x32xf32, #tpu.memory_space<vmem>>, vector<1x32x32xf32>
    %212 = vector.shape_cast %211 : vector<1x32x32xf32> to vector<32x32xf32>
    %cst_78 = arith.constant dense<0.000000e+00> : vector<16x32xf32>
    %213 = tpu.matmul %210, %212, %cst_78 {dimension_numbers = #tpu.dot_dimension_numbers<[1], [0], [0], [1], [0, 0, 1, 1], [], []>} : vector<16x32xf32>, vector<32x32xf32>, vector<16x32xf32> -> vector<16x32xf32>
    %214 = arith.addf %129, %213 : vector<16x32xf32>
    %215 = vector.broadcast %137 : vector<1x32xf32> to vector<16x32xf32>
    %216 = arith.addf %214, %215 : vector<16x32xf32>
    %cst_79 = arith.constant dense<0.000000e+00> : vector<16xf32>
    %217 = vector.multi_reduction <add>, %216, %cst_79 [1] : vector<16x32xf32> to vector<16xf32>
    %218 = vector.shape_cast %217 : vector<16xf32> to vector<16x1xf32>
    %cst_80 = arith.constant 3.200000e+01 : f32
    %219 = vector.broadcast %cst_80 : f32 to vector<16x1xf32>
    %220 = arith.divf %218, %219 : vector<16x1xf32>
    %221 = vector.broadcast %220 : vector<16x1xf32> to vector<16x32xf32>
    %222 = arith.subf %216, %221 : vector<16x32xf32>
    %223 = arith.mulf %222, %222 : vector<16x32xf32>
    %cst_81 = arith.constant dense<0.000000e+00> : vector<16xf32>
    %224 = vector.multi_reduction <add>, %223, %cst_81 [1] : vector<16x32xf32> to vector<16xf32>
    %225 = vector.shape_cast %224 : vector<16xf32> to vector<16x1xf32>
    %cst_82 = arith.constant 3.200000e+01 : f32
    %226 = vector.broadcast %cst_82 : f32 to vector<16x1xf32>
    %227 = arith.divf %225, %226 : vector<16x1xf32>
    %228 = vector.broadcast %220 : vector<16x1xf32> to vector<16x32xf32>
    %229 = arith.subf %216, %228 : vector<16x32xf32>
    %cst_83 = arith.constant 9.99999974E-6 : f32
    %230 = vector.broadcast %cst_83 : f32 to vector<16x1xf32>
    %231 = arith.addf %227, %230 : vector<16x1xf32>
    %232 = math.rsqrt %231 : vector<16x1xf32>
    %233 = vector.broadcast %232 : vector<16x1xf32> to vector<16x32xf32>
    %234 = arith.mulf %229, %233 : vector<16x32xf32>
    %235 = vector.broadcast %134 : vector<1x32xf32> to vector<16x32xf32>
    %236 = arith.mulf %234, %235 : vector<16x32xf32>
    %237 = vector.broadcast %135 : vector<1x32xf32> to vector<16x32xf32>
    %238 = arith.addf %236, %237 : vector<16x32xf32>
    %c1_84 = arith.constant 1 : index
    %c0_85 = arith.constant 0 : index
    %c0_86 = arith.constant 0 : index
    %239 = vector.load %arg4[%c1_84, %c0_85, %c0_86] : memref<4x32x128xf32, #tpu.memory_space<vmem>>, vector<1x32x128xf32>
    %240 = vector.shape_cast %239 : vector<1x32x128xf32> to vector<32x128xf32>
    %cst_87 = arith.constant dense<0.000000e+00> : vector<16x128xf32>
    %241 = tpu.matmul %238, %240, %cst_87 {dimension_numbers = #tpu.dot_dimension_numbers<[1], [0], [0], [1], [0, 0, 1, 1], [], []>} : vector<16x32xf32>, vector<32x128xf32>, vector<16x128xf32> -> vector<16x128xf32>
    %242 = vector.broadcast %138 : vector<1x128xf32> to vector<16x128xf32>
    %243 = arith.addf %241, %242 : vector<16x128xf32>
    %cst_88 = arith.constant 0.000000e+00 : f32
    %244 = vector.broadcast %cst_88 : f32 to vector<16x128xf32>
    %245 = arith.maximumf %243, %244 : vector<16x128xf32>
    %c1_89 = arith.constant 1 : index
    %c0_90 = arith.constant 0 : index
    %c0_91 = arith.constant 0 : index
    %246 = vector.load %arg5[%c1_89, %c0_90, %c0_91] : memref<4x128x32xf32, #tpu.memory_space<vmem>>, vector<1x128x32xf32>
    %247 = vector.shape_cast %246 : vector<1x128x32xf32> to vector<128x32xf32>
    %cst_92 = arith.constant dense<0.000000e+00> : vector<16x32xf32>
    %248 = tpu.matmul %245, %247, %cst_92 {dimension_numbers = #tpu.dot_dimension_numbers<[1], [0], [0], [1], [0, 0, 1, 1], [], []>} : vector<16x128xf32>, vector<128x32xf32>, vector<16x32xf32> -> vector<16x32xf32>
    %249 = vector.broadcast %139 : vector<1x32xf32> to vector<16x32xf32>
    %250 = arith.addf %248, %249 : vector<16x32xf32>
    %251 = arith.addf %216, %250 : vector<16x32xf32>
    %c2 = arith.constant 2 : index
    %c0_93 = arith.constant 0 : index
    %c0_94 = arith.constant 0 : index
    %252 = vector.load %arg7[%c2, %c0_93, %c0_94] : memref<5x8x128xf32, #tpu.memory_space<vmem>>, vector<1x8x128xf32>
    %253 = vector.shape_cast %252 : vector<1x8x128xf32> to vector<8x128xf32>
    %254 = vector.extract_strided_slice %253 {offsets = [0, 0], sizes = [1, 32], strides = [1, 1]} : vector<8x128xf32> to vector<1x32xf32>
    %255 = vector.extract_strided_slice %253 {offsets = [1, 0], sizes = [1, 32], strides = [1, 1]} : vector<8x128xf32> to vector<1x32xf32>
    %256 = vector.extract_strided_slice %253 {offsets = [2, 0], sizes = [1, 32], strides = [1, 1]} : vector<8x128xf32> to vector<1x32xf32>
    %257 = vector.extract_strided_slice %253 {offsets = [3, 0], sizes = [1, 32], strides = [1, 1]} : vector<8x128xf32> to vector<1x32xf32>
    %258 = vector.extract_strided_slice %253 {offsets = [4, 0], sizes = [1, 96], strides = [1, 1]} : vector<8x128xf32> to vector<1x96xf32>
    %259 = vector.extract_strided_slice %253 {offsets = [5, 0], sizes = [1, 32], strides = [1, 1]} : vector<8x128xf32> to vector<1x32xf32>
    %260 = vector.extract_strided_slice %253 {offsets = [6, 0], sizes = [1, 128], strides = [1, 1]} : vector<8x128xf32> to vector<1x128xf32>
    %261 = vector.extract_strided_slice %253 {offsets = [7, 0], sizes = [1, 32], strides = [1, 1]} : vector<8x128xf32> to vector<1x32xf32>
    %cst_95 = arith.constant dense<0.000000e+00> : vector<16xf32>
    %262 = vector.multi_reduction <add>, %251, %cst_95 [1] : vector<16x32xf32> to vector<16xf32>
    %263 = vector.shape_cast %262 : vector<16xf32> to vector<16x1xf32>
    %cst_96 = arith.constant 3.200000e+01 : f32
    %264 = vector.broadcast %cst_96 : f32 to vector<16x1xf32>
    %265 = arith.divf %263, %264 : vector<16x1xf32>
    %266 = vector.broadcast %265 : vector<16x1xf32> to vector<16x32xf32>
    %267 = arith.subf %251, %266 : vector<16x32xf32>
    %268 = arith.mulf %267, %267 : vector<16x32xf32>
    %cst_97 = arith.constant dense<0.000000e+00> : vector<16xf32>
    %269 = vector.multi_reduction <add>, %268, %cst_97 [1] : vector<16x32xf32> to vector<16xf32>
    %270 = vector.shape_cast %269 : vector<16xf32> to vector<16x1xf32>
    %cst_98 = arith.constant 3.200000e+01 : f32
    %271 = vector.broadcast %cst_98 : f32 to vector<16x1xf32>
    %272 = arith.divf %270, %271 : vector<16x1xf32>
    %273 = vector.broadcast %265 : vector<16x1xf32> to vector<16x32xf32>
    %274 = arith.subf %251, %273 : vector<16x32xf32>
    %cst_99 = arith.constant 9.99999974E-6 : f32
    %275 = vector.broadcast %cst_99 : f32 to vector<16x1xf32>
    %276 = arith.addf %272, %275 : vector<16x1xf32>
    %277 = math.rsqrt %276 : vector<16x1xf32>
    %278 = vector.broadcast %277 : vector<16x1xf32> to vector<16x32xf32>
    %279 = arith.mulf %274, %278 : vector<16x32xf32>
    %280 = vector.broadcast %254 : vector<1x32xf32> to vector<16x32xf32>
    %281 = arith.mulf %279, %280 : vector<16x32xf32>
    %282 = vector.broadcast %255 : vector<1x32xf32> to vector<16x32xf32>
    %283 = arith.addf %281, %282 : vector<16x32xf32>
    %c2_100 = arith.constant 2 : index
    %c0_101 = arith.constant 0 : index
    %c0_102 = arith.constant 0 : index
    %284 = vector.load %arg2[%c2_100, %c0_101, %c0_102] : memref<4x32x96xf32, #tpu.memory_space<vmem>>, vector<1x32x96xf32>
    %285 = vector.shape_cast %284 : vector<1x32x96xf32> to vector<32x96xf32>
    %cst_103 = arith.constant dense<0.000000e+00> : vector<16x96xf32>
    %286 = tpu.matmul %283, %285, %cst_103 {dimension_numbers = #tpu.dot_dimension_numbers<[1], [0], [0], [1], [0, 0, 1, 1], [], []>} : vector<16x32xf32>, vector<32x96xf32>, vector<16x96xf32> -> vector<16x96xf32>
    %287 = vector.broadcast %258 : vector<1x96xf32> to vector<16x96xf32>
    %288 = arith.addf %286, %287 : vector<16x96xf32>
    %289 = vector.shape_cast %288 : vector<16x96xf32> to vector<2x8x96xf32>
    %290 = vector.extract_strided_slice %289 {offsets = [0, 0, 0], sizes = [2, 8, 16], strides = [1, 1, 1]} : vector<2x8x96xf32> to vector<2x8x16xf32>
    %291 = vector.extract_strided_slice %289 {offsets = [0, 0, 32], sizes = [2, 8, 16], strides = [1, 1, 1]} : vector<2x8x96xf32> to vector<2x8x16xf32>
    %292 = vector.extract_strided_slice %289 {offsets = [0, 0, 64], sizes = [2, 8, 16], strides = [1, 1, 1]} : vector<2x8x96xf32> to vector<2x8x16xf32>
    %cst_104 = arith.constant dense<0.000000e+00> : vector<2x8x8xf32>
    %293 = tpu.matmul %290, %291, %cst_104 {dimension_numbers = #tpu.dot_dimension_numbers<[2], [2], [1], [1], [0, 0, 0, 1, 1, 1], [0], [0]>} : vector<2x8x16xf32>, vector<2x8x16xf32>, vector<2x8x8xf32> -> vector<2x8x8xf32>
    %cst_105 = arith.constant dense<0xFF800000> : vector<2x8xf32>
    %294 = vector.multi_reduction <maximumf>, %293, %cst_105 [2] : vector<2x8x8xf32> to vector<2x8xf32>
    %295 = vector.shape_cast %294 : vector<2x8xf32> to vector<2x8x1xf32>
    %296 = vector.broadcast %295 : vector<2x8x1xf32> to vector<2x8x8xf32>
    %297 = arith.subf %293, %296 : vector<2x8x8xf32>
    %298 = math.exp %297 : vector<2x8x8xf32>
    %cst_106 = arith.constant dense<0.000000e+00> : vector<2x8xf32>
    %299 = vector.multi_reduction <add>, %298, %cst_106 [2] : vector<2x8x8xf32> to vector<2x8xf32>
    %300 = vector.shape_cast %299 : vector<2x8xf32> to vector<2x8x1xf32>
    %301 = tpu.reciprocal %300 {approx = true} : vector<2x8x1xf32> -> vector<2x8x1xf32>
    %302 = arith.mulf %300, %301 : vector<2x8x1xf32>
    %cst_107 = arith.constant 2.000000e+00 : f32
    %303 = vector.broadcast %cst_107 : f32 to vector<2x8x1xf32>
    %304 = arith.subf %303, %302 : vector<2x8x1xf32>
    %305 = arith.mulf %301, %304 : vector<2x8x1xf32>
    %306 = vector.broadcast %305 : vector<2x8x1xf32> to vector<2x8x8xf32>
    %307 = arith.mulf %298, %306 : vector<2x8x8xf32>
    %cst_108 = arith.constant dense<0.000000e+00> : vector<2x8x16xf32>
    %308 = tpu.matmul %307, %292, %cst_108 {dimension_numbers = #tpu.dot_dimension_numbers<[2], [1], [1], [2], [0, 0, 0, 1, 1, 2], [0], [0]>} : vector<2x8x8xf32>, vector<2x8x16xf32>, vector<2x8x16xf32> -> vector<2x8x16xf32>
    %309 = vector.shape_cast %308 : vector<2x8x16xf32> to vector<16x16xf32>
    %c0_109 = arith.constant 0 : index
    %c0_110 = arith.constant 0 : index
    %310 = vector.load %arg9[%c0_109, %c0_110] : memref<16x32xf32, #tpu.memory_space<vmem>>, vector<16x16xf32>
    tpu.vector_store %arg9[%c0_109, %c0_110], %309 {strides = array<i32>} : memref<16x32xf32, #tpu.memory_space<vmem>>, vector<16x16xf32>,
    %311 = vector.extract_strided_slice %289 {offsets = [0, 0, 16], sizes = [2, 8, 16], strides = [1, 1, 1]} : vector<2x8x96xf32> to vector<2x8x16xf32>
    %312 = vector.extract_strided_slice %289 {offsets = [0, 0, 48], sizes = [2, 8, 16], strides = [1, 1, 1]} : vector<2x8x96xf32> to vector<2x8x16xf32>
    %313 = vector.extract_strided_slice %289 {offsets = [0, 0, 80], sizes = [2, 8, 16], strides = [1, 1, 1]} : vector<2x8x96xf32> to vector<2x8x16xf32>
    %cst_111 = arith.constant dense<0.000000e+00> : vector<2x8x8xf32>
    %314 = tpu.matmul %311, %312, %cst_111 {dimension_numbers = #tpu.dot_dimension_numbers<[2], [2], [1], [1], [0, 0, 0, 1, 1, 1], [0], [0]>} : vector<2x8x16xf32>, vector<2x8x16xf32>, vector<2x8x8xf32> -> vector<2x8x8xf32>
    %cst_112 = arith.constant dense<0xFF800000> : vector<2x8xf32>
    %315 = vector.multi_reduction <maximumf>, %314, %cst_112 [2] : vector<2x8x8xf32> to vector<2x8xf32>
    %316 = vector.shape_cast %315 : vector<2x8xf32> to vector<2x8x1xf32>
    %317 = vector.broadcast %316 : vector<2x8x1xf32> to vector<2x8x8xf32>
    %318 = arith.subf %314, %317 : vector<2x8x8xf32>
    %319 = math.exp %318 : vector<2x8x8xf32>
    %cst_113 = arith.constant dense<0.000000e+00> : vector<2x8xf32>
    %320 = vector.multi_reduction <add>, %319, %cst_113 [2] : vector<2x8x8xf32> to vector<2x8xf32>
    %321 = vector.shape_cast %320 : vector<2x8xf32> to vector<2x8x1xf32>
    %322 = tpu.reciprocal %321 {approx = true} : vector<2x8x1xf32> -> vector<2x8x1xf32>
    %323 = arith.mulf %321, %322 : vector<2x8x1xf32>
    %cst_114 = arith.constant 2.000000e+00 : f32
    %324 = vector.broadcast %cst_114 : f32 to vector<2x8x1xf32>
    %325 = arith.subf %324, %323 : vector<2x8x1xf32>
    %326 = arith.mulf %322, %325 : vector<2x8x1xf32>
    %327 = vector.broadcast %326 : vector<2x8x1xf32> to vector<2x8x8xf32>
    %328 = arith.mulf %319, %327 : vector<2x8x8xf32>
    %cst_115 = arith.constant dense<0.000000e+00> : vector<2x8x16xf32>
    %329 = tpu.matmul %328, %313, %cst_115 {dimension_numbers = #tpu.dot_dimension_numbers<[2], [1], [1], [2], [0, 0, 0, 1, 1, 2], [0], [0]>} : vector<2x8x8xf32>, vector<2x8x16xf32>, vector<2x8x16xf32> -> vector<2x8x16xf32>
    %330 = vector.shape_cast %329 : vector<2x8x16xf32> to vector<16x16xf32>
    %c0_116 = arith.constant 0 : index
    %c16_117 = arith.constant 16 : index
    %331 = vector.load %arg9[%c0_116, %c16_117] : memref<16x32xf32, #tpu.memory_space<vmem>>, vector<16x16xf32>
    tpu.vector_store %arg9[%c0_116, %c16_117], %330 {strides = array<i32>} : memref<16x32xf32, #tpu.memory_space<vmem>>, vector<16x16xf32>,
    %c0_118 = arith.constant 0 : index
    %c0_119 = arith.constant 0 : index
    %332 = vector.load %arg9[%c0_118, %c0_119] : memref<16x32xf32, #tpu.memory_space<vmem>>, vector<16x32xf32>
    %c2_120 = arith.constant 2 : index
    %c0_121 = arith.constant 0 : index
    %c0_122 = arith.constant 0 : index
    %333 = vector.load %arg3[%c2_120, %c0_121, %c0_122] : memref<4x32x32xf32, #tpu.memory_space<vmem>>, vector<1x32x32xf32>
    %334 = vector.shape_cast %333 : vector<1x32x32xf32> to vector<32x32xf32>
    %cst_123 = arith.constant dense<0.000000e+00> : vector<16x32xf32>
    %335 = tpu.matmul %332, %334, %cst_123 {dimension_numbers = #tpu.dot_dimension_numbers<[1], [0], [0], [1], [0, 0, 1, 1], [], []>} : vector<16x32xf32>, vector<32x32xf32>, vector<16x32xf32> -> vector<16x32xf32>
    %336 = arith.addf %251, %335 : vector<16x32xf32>
    %337 = vector.broadcast %259 : vector<1x32xf32> to vector<16x32xf32>
    %338 = arith.addf %336, %337 : vector<16x32xf32>
    %cst_124 = arith.constant dense<0.000000e+00> : vector<16xf32>
    %339 = vector.multi_reduction <add>, %338, %cst_124 [1] : vector<16x32xf32> to vector<16xf32>
    %340 = vector.shape_cast %339 : vector<16xf32> to vector<16x1xf32>
    %cst_125 = arith.constant 3.200000e+01 : f32
    %341 = vector.broadcast %cst_125 : f32 to vector<16x1xf32>
    %342 = arith.divf %340, %341 : vector<16x1xf32>
    %343 = vector.broadcast %342 : vector<16x1xf32> to vector<16x32xf32>
    %344 = arith.subf %338, %343 : vector<16x32xf32>
    %345 = arith.mulf %344, %344 : vector<16x32xf32>
    %cst_126 = arith.constant dense<0.000000e+00> : vector<16xf32>
    %346 = vector.multi_reduction <add>, %345, %cst_126 [1] : vector<16x32xf32> to vector<16xf32>
    %347 = vector.shape_cast %346 : vector<16xf32> to vector<16x1xf32>
    %cst_127 = arith.constant 3.200000e+01 : f32
    %348 = vector.broadcast %cst_127 : f32 to vector<16x1xf32>
    %349 = arith.divf %347, %348 : vector<16x1xf32>
    %350 = vector.broadcast %342 : vector<16x1xf32> to vector<16x32xf32>
    %351 = arith.subf %338, %350 : vector<16x32xf32>
    %cst_128 = arith.constant 9.99999974E-6 : f32
    %352 = vector.broadcast %cst_128 : f32 to vector<16x1xf32>
    %353 = arith.addf %349, %352 : vector<16x1xf32>
    %354 = math.rsqrt %353 : vector<16x1xf32>
    %355 = vector.broadcast %354 : vector<16x1xf32> to vector<16x32xf32>
    %356 = arith.mulf %351, %355 : vector<16x32xf32>
    %357 = vector.broadcast %256 : vector<1x32xf32> to vector<16x32xf32>
    %358 = arith.mulf %356, %357 : vector<16x32xf32>
    %359 = vector.broadcast %257 : vector<1x32xf32> to vector<16x32xf32>
    %360 = arith.addf %358, %359 : vector<16x32xf32>
    %c2_129 = arith.constant 2 : index
    %c0_130 = arith.constant 0 : index
    %c0_131 = arith.constant 0 : index
    %361 = vector.load %arg4[%c2_129, %c0_130, %c0_131] : memref<4x32x128xf32, #tpu.memory_space<vmem>>, vector<1x32x128xf32>
    %362 = vector.shape_cast %361 : vector<1x32x128xf32> to vector<32x128xf32>
    %cst_132 = arith.constant dense<0.000000e+00> : vector<16x128xf32>
    %363 = tpu.matmul %360, %362, %cst_132 {dimension_numbers = #tpu.dot_dimension_numbers<[1], [0], [0], [1], [0, 0, 1, 1], [], []>} : vector<16x32xf32>, vector<32x128xf32>, vector<16x128xf32> -> vector<16x128xf32>
    %364 = vector.broadcast %260 : vector<1x128xf32> to vector<16x128xf32>
    %365 = arith.addf %363, %364 : vector<16x128xf32>
    %cst_133 = arith.constant 0.000000e+00 : f32
    %366 = vector.broadcast %cst_133 : f32 to vector<16x128xf32>
    %367 = arith.maximumf %365, %366 : vector<16x128xf32>
    %c2_134 = arith.constant 2 : index
    %c0_135 = arith.constant 0 : index
    %c0_136 = arith.constant 0 : index
    %368 = vector.load %arg5[%c2_134, %c0_135, %c0_136] : memref<4x128x32xf32, #tpu.memory_space<vmem>>, vector<1x128x32xf32>
    %369 = vector.shape_cast %368 : vector<1x128x32xf32> to vector<128x32xf32>
    %cst_137 = arith.constant dense<0.000000e+00> : vector<16x32xf32>
    %370 = tpu.matmul %367, %369, %cst_137 {dimension_numbers = #tpu.dot_dimension_numbers<[1], [0], [0], [1], [0, 0, 1, 1], [], []>} : vector<16x128xf32>, vector<128x32xf32>, vector<16x32xf32> -> vector<16x32xf32>
    %371 = vector.broadcast %261 : vector<1x32xf32> to vector<16x32xf32>
    %372 = arith.addf %370, %371 : vector<16x32xf32>
    %373 = arith.addf %338, %372 : vector<16x32xf32>
    %c3 = arith.constant 3 : index
    %c0_138 = arith.constant 0 : index
    %c0_139 = arith.constant 0 : index
    %374 = vector.load %arg7[%c3, %c0_138, %c0_139] : memref<5x8x128xf32, #tpu.memory_space<vmem>>, vector<1x8x128xf32>
    %375 = vector.shape_cast %374 : vector<1x8x128xf32> to vector<8x128xf32>
    %376 = vector.extract_strided_slice %375 {offsets = [0, 0], sizes = [1, 32], strides = [1, 1]} : vector<8x128xf32> to vector<1x32xf32>
    %377 = vector.extract_strided_slice %375 {offsets = [1, 0], sizes = [1, 32], strides = [1, 1]} : vector<8x128xf32> to vector<1x32xf32>
    %378 = vector.extract_strided_slice %375 {offsets = [2, 0], sizes = [1, 32], strides = [1, 1]} : vector<8x128xf32> to vector<1x32xf32>
    %379 = vector.extract_strided_slice %375 {offsets = [3, 0], sizes = [1, 32], strides = [1, 1]} : vector<8x128xf32> to vector<1x32xf32>
    %380 = vector.extract_strided_slice %375 {offsets = [4, 0], sizes = [1, 96], strides = [1, 1]} : vector<8x128xf32> to vector<1x96xf32>
    %381 = vector.extract_strided_slice %375 {offsets = [5, 0], sizes = [1, 32], strides = [1, 1]} : vector<8x128xf32> to vector<1x32xf32>
    %382 = vector.extract_strided_slice %375 {offsets = [6, 0], sizes = [1, 128], strides = [1, 1]} : vector<8x128xf32> to vector<1x128xf32>
    %383 = vector.extract_strided_slice %375 {offsets = [7, 0], sizes = [1, 32], strides = [1, 1]} : vector<8x128xf32> to vector<1x32xf32>
    %cst_140 = arith.constant dense<0.000000e+00> : vector<16xf32>
    %384 = vector.multi_reduction <add>, %373, %cst_140 [1] : vector<16x32xf32> to vector<16xf32>
    %385 = vector.shape_cast %384 : vector<16xf32> to vector<16x1xf32>
    %cst_141 = arith.constant 3.200000e+01 : f32
    %386 = vector.broadcast %cst_141 : f32 to vector<16x1xf32>
    %387 = arith.divf %385, %386 : vector<16x1xf32>
    %388 = vector.broadcast %387 : vector<16x1xf32> to vector<16x32xf32>
    %389 = arith.subf %373, %388 : vector<16x32xf32>
    %390 = arith.mulf %389, %389 : vector<16x32xf32>
    %cst_142 = arith.constant dense<0.000000e+00> : vector<16xf32>
    %391 = vector.multi_reduction <add>, %390, %cst_142 [1] : vector<16x32xf32> to vector<16xf32>
    %392 = vector.shape_cast %391 : vector<16xf32> to vector<16x1xf32>
    %cst_143 = arith.constant 3.200000e+01 : f32
    %393 = vector.broadcast %cst_143 : f32 to vector<16x1xf32>
    %394 = arith.divf %392, %393 : vector<16x1xf32>
    %395 = vector.broadcast %387 : vector<16x1xf32> to vector<16x32xf32>
    %396 = arith.subf %373, %395 : vector<16x32xf32>
    %cst_144 = arith.constant 9.99999974E-6 : f32
    %397 = vector.broadcast %cst_144 : f32 to vector<16x1xf32>
    %398 = arith.addf %394, %397 : vector<16x1xf32>
    %399 = math.rsqrt %398 : vector<16x1xf32>
    %400 = vector.broadcast %399 : vector<16x1xf32> to vector<16x32xf32>
    %401 = arith.mulf %396, %400 : vector<16x32xf32>
    %402 = vector.broadcast %376 : vector<1x32xf32> to vector<16x32xf32>
    %403 = arith.mulf %401, %402 : vector<16x32xf32>
    %404 = vector.broadcast %377 : vector<1x32xf32> to vector<16x32xf32>
    %405 = arith.addf %403, %404 : vector<16x32xf32>
    %c3_145 = arith.constant 3 : index
    %c0_146 = arith.constant 0 : index
    %c0_147 = arith.constant 0 : index
    %406 = vector.load %arg2[%c3_145, %c0_146, %c0_147] : memref<4x32x96xf32, #tpu.memory_space<vmem>>, vector<1x32x96xf32>
    %407 = vector.shape_cast %406 : vector<1x32x96xf32> to vector<32x96xf32>
    %cst_148 = arith.constant dense<0.000000e+00> : vector<16x96xf32>
    %408 = tpu.matmul %405, %407, %cst_148 {dimension_numbers = #tpu.dot_dimension_numbers<[1], [0], [0], [1], [0, 0, 1, 1], [], []>} : vector<16x32xf32>, vector<32x96xf32>, vector<16x96xf32> -> vector<16x96xf32>
    %409 = vector.broadcast %380 : vector<1x96xf32> to vector<16x96xf32>
    %410 = arith.addf %408, %409 : vector<16x96xf32>
    %411 = vector.shape_cast %410 : vector<16x96xf32> to vector<2x8x96xf32>
    %412 = vector.extract_strided_slice %411 {offsets = [0, 0, 0], sizes = [2, 8, 16], strides = [1, 1, 1]} : vector<2x8x96xf32> to vector<2x8x16xf32>
    %413 = vector.extract_strided_slice %411 {offsets = [0, 0, 32], sizes = [2, 8, 16], strides = [1, 1, 1]} : vector<2x8x96xf32> to vector<2x8x16xf32>
    %414 = vector.extract_strided_slice %411 {offsets = [0, 0, 64], sizes = [2, 8, 16], strides = [1, 1, 1]} : vector<2x8x96xf32> to vector<2x8x16xf32>
    %cst_149 = arith.constant dense<0.000000e+00> : vector<2x8x8xf32>
    %415 = tpu.matmul %412, %413, %cst_149 {dimension_numbers = #tpu.dot_dimension_numbers<[2], [2], [1], [1], [0, 0, 0, 1, 1, 1], [0], [0]>} : vector<2x8x16xf32>, vector<2x8x16xf32>, vector<2x8x8xf32> -> vector<2x8x8xf32>
    %cst_150 = arith.constant dense<0xFF800000> : vector<2x8xf32>
    %416 = vector.multi_reduction <maximumf>, %415, %cst_150 [2] : vector<2x8x8xf32> to vector<2x8xf32>
    %417 = vector.shape_cast %416 : vector<2x8xf32> to vector<2x8x1xf32>
    %418 = vector.broadcast %417 : vector<2x8x1xf32> to vector<2x8x8xf32>
    %419 = arith.subf %415, %418 : vector<2x8x8xf32>
    %420 = math.exp %419 : vector<2x8x8xf32>
    %cst_151 = arith.constant dense<0.000000e+00> : vector<2x8xf32>
    %421 = vector.multi_reduction <add>, %420, %cst_151 [2] : vector<2x8x8xf32> to vector<2x8xf32>
    %422 = vector.shape_cast %421 : vector<2x8xf32> to vector<2x8x1xf32>
    %423 = tpu.reciprocal %422 {approx = true} : vector<2x8x1xf32> -> vector<2x8x1xf32>
    %424 = arith.mulf %422, %423 : vector<2x8x1xf32>
    %cst_152 = arith.constant 2.000000e+00 : f32
    %425 = vector.broadcast %cst_152 : f32 to vector<2x8x1xf32>
    %426 = arith.subf %425, %424 : vector<2x8x1xf32>
    %427 = arith.mulf %423, %426 : vector<2x8x1xf32>
    %428 = vector.broadcast %427 : vector<2x8x1xf32> to vector<2x8x8xf32>
    %429 = arith.mulf %420, %428 : vector<2x8x8xf32>
    %cst_153 = arith.constant dense<0.000000e+00> : vector<2x8x16xf32>
    %430 = tpu.matmul %429, %414, %cst_153 {dimension_numbers = #tpu.dot_dimension_numbers<[2], [1], [1], [2], [0, 0, 0, 1, 1, 2], [0], [0]>} : vector<2x8x8xf32>, vector<2x8x16xf32>, vector<2x8x16xf32> -> vector<2x8x16xf32>
    %431 = vector.shape_cast %430 : vector<2x8x16xf32> to vector<16x16xf32>
    %c0_154 = arith.constant 0 : index
    %c0_155 = arith.constant 0 : index
    %432 = vector.load %arg9[%c0_154, %c0_155] : memref<16x32xf32, #tpu.memory_space<vmem>>, vector<16x16xf32>
    tpu.vector_store %arg9[%c0_154, %c0_155], %431 {strides = array<i32>} : memref<16x32xf32, #tpu.memory_space<vmem>>, vector<16x16xf32>,
    %433 = vector.extract_strided_slice %411 {offsets = [0, 0, 16], sizes = [2, 8, 16], strides = [1, 1, 1]} : vector<2x8x96xf32> to vector<2x8x16xf32>
    %434 = vector.extract_strided_slice %411 {offsets = [0, 0, 48], sizes = [2, 8, 16], strides = [1, 1, 1]} : vector<2x8x96xf32> to vector<2x8x16xf32>
    %435 = vector.extract_strided_slice %411 {offsets = [0, 0, 80], sizes = [2, 8, 16], strides = [1, 1, 1]} : vector<2x8x96xf32> to vector<2x8x16xf32>
    %cst_156 = arith.constant dense<0.000000e+00> : vector<2x8x8xf32>
    %436 = tpu.matmul %433, %434, %cst_156 {dimension_numbers = #tpu.dot_dimension_numbers<[2], [2], [1], [1], [0, 0, 0, 1, 1, 1], [0], [0]>} : vector<2x8x16xf32>, vector<2x8x16xf32>, vector<2x8x8xf32> -> vector<2x8x8xf32>
    %cst_157 = arith.constant dense<0xFF800000> : vector<2x8xf32>
    %437 = vector.multi_reduction <maximumf>, %436, %cst_157 [2] : vector<2x8x8xf32> to vector<2x8xf32>
    %438 = vector.shape_cast %437 : vector<2x8xf32> to vector<2x8x1xf32>
    %439 = vector.broadcast %438 : vector<2x8x1xf32> to vector<2x8x8xf32>
    %440 = arith.subf %436, %439 : vector<2x8x8xf32>
    %441 = math.exp %440 : vector<2x8x8xf32>
    %cst_158 = arith.constant dense<0.000000e+00> : vector<2x8xf32>
    %442 = vector.multi_reduction <add>, %441, %cst_158 [2] : vector<2x8x8xf32> to vector<2x8xf32>
    %443 = vector.shape_cast %442 : vector<2x8xf32> to vector<2x8x1xf32>
    %444 = tpu.reciprocal %443 {approx = true} : vector<2x8x1xf32> -> vector<2x8x1xf32>
    %445 = arith.mulf %443, %444 : vector<2x8x1xf32>
    %cst_159 = arith.constant 2.000000e+00 : f32
    %446 = vector.broadcast %cst_159 : f32 to vector<2x8x1xf32>
    %447 = arith.subf %446, %445 : vector<2x8x1xf32>
    %448 = arith.mulf %444, %447 : vector<2x8x1xf32>
    %449 = vector.broadcast %448 : vector<2x8x1xf32> to vector<2x8x8xf32>
    %450 = arith.mulf %441, %449 : vector<2x8x8xf32>
    %cst_160 = arith.constant dense<0.000000e+00> : vector<2x8x16xf32>
    %451 = tpu.matmul %450, %435, %cst_160 {dimension_numbers = #tpu.dot_dimension_numbers<[2], [1], [1], [2], [0, 0, 0, 1, 1, 2], [0], [0]>} : vector<2x8x8xf32>, vector<2x8x16xf32>, vector<2x8x16xf32> -> vector<2x8x16xf32>
    %452 = vector.shape_cast %451 : vector<2x8x16xf32> to vector<16x16xf32>
    %c0_161 = arith.constant 0 : index
    %c16_162 = arith.constant 16 : index
    %453 = vector.load %arg9[%c0_161, %c16_162] : memref<16x32xf32, #tpu.memory_space<vmem>>, vector<16x16xf32>
    tpu.vector_store %arg9[%c0_161, %c16_162], %452 {strides = array<i32>} : memref<16x32xf32, #tpu.memory_space<vmem>>, vector<16x16xf32>,
    %c0_163 = arith.constant 0 : index
    %c0_164 = arith.constant 0 : index
    %454 = vector.load %arg9[%c0_163, %c0_164] : memref<16x32xf32, #tpu.memory_space<vmem>>, vector<16x32xf32>
    %c3_165 = arith.constant 3 : index
    %c0_166 = arith.constant 0 : index
    %c0_167 = arith.constant 0 : index
    %455 = vector.load %arg3[%c3_165, %c0_166, %c0_167] : memref<4x32x32xf32, #tpu.memory_space<vmem>>, vector<1x32x32xf32>
    %456 = vector.shape_cast %455 : vector<1x32x32xf32> to vector<32x32xf32>
    %cst_168 = arith.constant dense<0.000000e+00> : vector<16x32xf32>
    %457 = tpu.matmul %454, %456, %cst_168 {dimension_numbers = #tpu.dot_dimension_numbers<[1], [0], [0], [1], [0, 0, 1, 1], [], []>} : vector<16x32xf32>, vector<32x32xf32>, vector<16x32xf32> -> vector<16x32xf32>
    %458 = arith.addf %373, %457 : vector<16x32xf32>
    %459 = vector.broadcast %381 : vector<1x32xf32> to vector<16x32xf32>
    %460 = arith.addf %458, %459 : vector<16x32xf32>
    %cst_169 = arith.constant dense<0.000000e+00> : vector<16xf32>
    %461 = vector.multi_reduction <add>, %460, %cst_169 [1] : vector<16x32xf32> to vector<16xf32>
    %462 = vector.shape_cast %461 : vector<16xf32> to vector<16x1xf32>
    %cst_170 = arith.constant 3.200000e+01 : f32
    %463 = vector.broadcast %cst_170 : f32 to vector<16x1xf32>
    %464 = arith.divf %462, %463 : vector<16x1xf32>
    %465 = vector.broadcast %464 : vector<16x1xf32> to vector<16x32xf32>
    %466 = arith.subf %460, %465 : vector<16x32xf32>
    %467 = arith.mulf %466, %466 : vector<16x32xf32>
    %cst_171 = arith.constant dense<0.000000e+00> : vector<16xf32>
    %468 = vector.multi_reduction <add>, %467, %cst_171 [1] : vector<16x32xf32> to vector<16xf32>
    %469 = vector.shape_cast %468 : vector<16xf32> to vector<16x1xf32>
    %cst_172 = arith.constant 3.200000e+01 : f32
    %470 = vector.broadcast %cst_172 : f32 to vector<16x1xf32>
    %471 = arith.divf %469, %470 : vector<16x1xf32>
    %472 = vector.broadcast %464 : vector<16x1xf32> to vector<16x32xf32>
    %473 = arith.subf %460, %472 : vector<16x32xf32>
    %cst_173 = arith.constant 9.99999974E-6 : f32
    %474 = vector.broadcast %cst_173 : f32 to vector<16x1xf32>
    %475 = arith.addf %471, %474 : vector<16x1xf32>
    %476 = math.rsqrt %475 : vector<16x1xf32>
    %477 = vector.broadcast %476 : vector<16x1xf32> to vector<16x32xf32>
    %478 = arith.mulf %473, %477 : vector<16x32xf32>
    %479 = vector.broadcast %378 : vector<1x32xf32> to vector<16x32xf32>
    %480 = arith.mulf %478, %479 : vector<16x32xf32>
    %481 = vector.broadcast %379 : vector<1x32xf32> to vector<16x32xf32>
    %482 = arith.addf %480, %481 : vector<16x32xf32>
    %c3_174 = arith.constant 3 : index
    %c0_175 = arith.constant 0 : index
    %c0_176 = arith.constant 0 : index
    %483 = vector.load %arg4[%c3_174, %c0_175, %c0_176] : memref<4x32x128xf32, #tpu.memory_space<vmem>>, vector<1x32x128xf32>
    %484 = vector.shape_cast %483 : vector<1x32x128xf32> to vector<32x128xf32>
    %cst_177 = arith.constant dense<0.000000e+00> : vector<16x128xf32>
    %485 = tpu.matmul %482, %484, %cst_177 {dimension_numbers = #tpu.dot_dimension_numbers<[1], [0], [0], [1], [0, 0, 1, 1], [], []>} : vector<16x32xf32>, vector<32x128xf32>, vector<16x128xf32> -> vector<16x128xf32>
    %486 = vector.broadcast %382 : vector<1x128xf32> to vector<16x128xf32>
    %487 = arith.addf %485, %486 : vector<16x128xf32>
    %cst_178 = arith.constant 0.000000e+00 : f32
    %488 = vector.broadcast %cst_178 : f32 to vector<16x128xf32>
    %489 = arith.maximumf %487, %488 : vector<16x128xf32>
    %c3_179 = arith.constant 3 : index
    %c0_180 = arith.constant 0 : index
    %c0_181 = arith.constant 0 : index
    %490 = vector.load %arg5[%c3_179, %c0_180, %c0_181] : memref<4x128x32xf32, #tpu.memory_space<vmem>>, vector<1x128x32xf32>
    %491 = vector.shape_cast %490 : vector<1x128x32xf32> to vector<128x32xf32>
    %cst_182 = arith.constant dense<0.000000e+00> : vector<16x32xf32>
    %492 = tpu.matmul %489, %491, %cst_182 {dimension_numbers = #tpu.dot_dimension_numbers<[1], [0], [0], [1], [0, 0, 1, 1], [], []>} : vector<16x128xf32>, vector<128x32xf32>, vector<16x32xf32> -> vector<16x32xf32>
    %493 = vector.broadcast %383 : vector<1x32xf32> to vector<16x32xf32>
    %494 = arith.addf %492, %493 : vector<16x32xf32>
    %495 = arith.addf %460, %494 : vector<16x32xf32>
    %496 = vector.shape_cast %495 : vector<16x32xf32> to vector<2x8x32xf32>
    %c0_183 = arith.constant 0 : index
    %c0_184 = arith.constant 0 : index
    %c0_185 = arith.constant 0 : index
    %497 = vector.load %arg6[%c0_183, %c0_184, %c0_185] : memref<3x8x32xf32, #tpu.memory_space<vmem>>, vector<1x8x32xf32>
    %498 = vector.shape_cast %497 : vector<1x8x32xf32> to vector<8x32xf32>
    %499 = vector.shape_cast %498 : vector<8x32xf32> to vector<1x8x32xf32>
    %500 = vector.broadcast %499 : vector<1x8x32xf32> to vector<2x8x32xf32>
    %501 = arith.mulf %496, %500 : vector<2x8x32xf32>
    %cst_186 = arith.constant dense<0.000000e+00> : vector<2x8xf32>
    %502 = vector.multi_reduction <add>, %501, %cst_186 [2] : vector<2x8x32xf32> to vector<2x8xf32>
    %cst_187 = arith.constant dense<0.000000e+00> : vector<2xf32>
    %503 = vector.multi_reduction <add>, %502, %cst_187 [1] : vector<2x8xf32> to vector<2xf32>
    %504 = vector.shape_cast %503 : vector<2xf32> to vector<2x1xf32>
    %c1_188 = arith.constant 1 : index
    %c0_189 = arith.constant 0 : index
    %c0_190 = arith.constant 0 : index
    %505 = vector.load %arg6[%c1_188, %c0_189, %c0_190] : memref<3x8x32xf32, #tpu.memory_space<vmem>>, vector<1x8x32xf32>
    %506 = vector.shape_cast %505 : vector<1x8x32xf32> to vector<8x32xf32>
    %507 = vector.shape_cast %506 : vector<8x32xf32> to vector<1x8x32xf32>
    %508 = vector.broadcast %507 : vector<1x8x32xf32> to vector<2x8x32xf32>
    %509 = arith.mulf %496, %508 : vector<2x8x32xf32>
    %cst_191 = arith.constant dense<0.000000e+00> : vector<2x8xf32>
    %510 = vector.multi_reduction <add>, %509, %cst_191 [2] : vector<2x8x32xf32> to vector<2x8xf32>
    %cst_192 = arith.constant dense<0.000000e+00> : vector<2xf32>
    %511 = vector.multi_reduction <add>, %510, %cst_192 [1] : vector<2x8xf32> to vector<2xf32>
    %512 = vector.shape_cast %511 : vector<2xf32> to vector<2x1xf32>
    %c2_193 = arith.constant 2 : index
    %c0_194 = arith.constant 0 : index
    %c0_195 = arith.constant 0 : index
    %513 = vector.load %arg6[%c2_193, %c0_194, %c0_195] : memref<3x8x32xf32, #tpu.memory_space<vmem>>, vector<1x8x32xf32>
    %514 = vector.shape_cast %513 : vector<1x8x32xf32> to vector<8x32xf32>
    %515 = vector.shape_cast %514 : vector<8x32xf32> to vector<1x8x32xf32>
    %516 = vector.broadcast %515 : vector<1x8x32xf32> to vector<2x8x32xf32>
    %517 = arith.mulf %496, %516 : vector<2x8x32xf32>
    %cst_196 = arith.constant dense<0.000000e+00> : vector<2x8xf32>
    %518 = vector.multi_reduction <add>, %517, %cst_196 [2] : vector<2x8x32xf32> to vector<2x8xf32>
    %cst_197 = arith.constant dense<0.000000e+00> : vector<2xf32>
    %519 = vector.multi_reduction <add>, %518, %cst_197 [1] : vector<2x8xf32> to vector<2xf32>
    %520 = vector.shape_cast %519 : vector<2xf32> to vector<2x1xf32>
    %c4 = arith.constant 4 : index
    %c0_198 = arith.constant 0 : index
    %c0_199 = arith.constant 0 : index
    %521 = vector.load %arg7[%c4, %c0_198, %c0_199] : memref<5x8x128xf32, #tpu.memory_space<vmem>>, vector<1x8x128xf32>
    %522 = vector.shape_cast %521 : vector<1x8x128xf32> to vector<8x128xf32>
    %523 = vector.extract_strided_slice %522 {offsets = [0, 0], sizes = [1, 3], strides = [1, 1]} : vector<8x128xf32> to vector<1x3xf32>
    %524 = tpu.concatenate %504, %512, %520 in 1 : vector<2x1xf32>, vector<2x1xf32>, vector<2x1xf32> -> vector<2x3xf32>
    %525 = vector.broadcast %523 : vector<1x3xf32> to vector<2x3xf32>
    %526 = arith.addf %524, %525 : vector<2x3xf32>
    %c0_200 = arith.constant 0 : index
    %c0_201 = arith.constant 0 : index
    %527 = vector.load %arg8[%c0_200, %c0_201] : memref<2x3xf32, #tpu.memory_space<vmem>>, vector<2x3xf32>
    tpu.vector_store %arg8[%c0_200, %c0_201], %526 {strides = array<i32>} : memref<2x3xf32, #tpu.memory_space<vmem>>, vector<2x3xf32>,
    return
  }
}

</mosaic_0001>

<bundles_post_ra>
// kernel: _lambda_.1
= control target key start
LH: loop header
LB: loop body
LE: loop exit
PB: predicated region body
PF: predicated region fallthrough
CT: control target
= control target key end

     0   :  { %v5773_v2 = vmov 0   ;;  %s6843_s0 = inlined_call_operand.vmem [shape: s32[16,1], index: 0, kind: input, shape index: {}]   ;;  %s6844_s1 = inlined_call_operand.vmem [shape: f32[128,32], index: 1, kind: input, shape index: {}]   ;;  %s6845_s2 = inlined_call_operand.vmem [shape: f32[4,32,96], index: 2, kind: input, shape index: {}]   ;;  %s6846_s3 = inlined_call_operand.vmem [shape: f32[4,32,32], index: 3, kind: input, shape index: {}]   ;;  %s6847_s4 = inlined_call_operand.vmem [shape: f32[4,32,128], index: 4, kind: input, shape index: {}]   ;;  %s6848_s5 = inlined_call_operand.vmem [shape: f32[4,128,32], index: 5, kind: input, shape index: {}]   ;;  %s6849_s6 = inlined_call_operand.vmem [shape: f32[3,8,32], index: 6, kind: input, shape index: {}]   ;;  %s6850_s7 = inlined_call_operand.vmem [shape: f32[5,8,128], index: 7, kind: input, shape index: {}]   ;;  %s6851_s8 = inlined_call_operand.hbm [shape: f32[2,3], index: 8, kind: output, shape index: {}]  }
   0x1   :  { %v30_v0 = vld [vmem:[%s6843_s0] sm:$0xff]  ;;  %v61_v1 = vld [vmem:[%s6844_s1 + $0x78] sm:$0xff]  ;;  %5654 = vset.pattern.permute.xlu0 %v5773_v2  ;;  %v60_v3 = vld [vmem:[%s6844_s1 + $0x70] sm:$0xff] }
   0x2   :  { %5176 = vmatprep.subr.mxu0 %v61_v1  ;;  %35 = vperm.xlu0 %5654, %v30_v0   ;;  %v59_v4 = vld [vmem:[%s6844_s1 + $0x68] sm:$0xff]  ;;  %v58_v6 = vld [vmem:[%s6844_s1 + $0x60] sm:$0xff]  ;;  %v57_v7 = vld [vmem:[%s6844_s1 + $0x58] sm:$0xff] }
   0x3   :  { %5177 = vmatpush3.msra.mxu0 %v61_v1  ;;  %v31_v5 = vld [vmem:[%s6843_s0 + $0x8] sm:$0xff] }
   0x4   :  { %5178 = vmatprep.subr.mxu0 %v60_v3 }
   0x5   :  { %5179 = vmatpush3.msra.mxu0 %v60_v3 }
   0x6   :  { %5180 = vmatprep.subr.mxu0 %v59_v4  ;;  %38 = vperm.xlu0 %5654, %v31_v5  }
   0x7   :  { %5181 = vmatpush3.msra.mxu0 %v59_v4 }
   0x8   :  { %13 = vsyncpa [#allocation4], 0  ;;  %5182 = vmatprep.subr.mxu0 %v58_v6  ;;  %v56_v8 = vld [vmem:[%s6844_s1 + $0x50] sm:$0xff]  ;;  %v55_v9 = vld [vmem:[%s6844_s1 + $0x48] sm:$0xff]  ;;  %v32_v19 = vlaneseq  ;;  %v5774_v22 = vmov 1.0   ;;  %vm138_vm2 = vcmask 261120  }
   0x9   :  { %5183 = vmatpush3.msra.mxu0 %v58_v6  ;;  %v54_v10 = vld [vmem:[%s6844_s1 + $0x40] sm:$0xff]  ;;  %v53_v11 = vld [vmem:[%s6844_s1 + $0x38] sm:$0xff]  ;;  %v52_v12 = vld [vmem:[%s6844_s1 + $0x30] sm:$0xff]  ;;  %v5775_v62 = vmov 0.0   ;;  %vm5776_vm3 = vmmov 0   ;;  %s5777_s26 = smov 96  }
   0xa   :  { %5184 = vmatprep.subr.mxu0 %v57_v7  ;;  %v51_v13 = vld [vmem:[%s6844_s1 + $0x28] sm:$0xff]  ;;  %v50_v14 = vld [vmem:[%s6844_s1 + $0x20] sm:$0xff]  ;;  %v49_v15 = vld [vmem:[%s6844_s1 + $0x18] sm:$0xff]  ;;  %v5883_v20 = vand.u32 127, %v32_v19  ;;  %v5911_v48 = vshrl.u32 %v32_v19, 7  ;;  %vm270_vm4 = vcmask 130048  }
   0xb   :  { %5185 = vmatpush3.msra.mxu0 %v57_v7  ;;  %v48_v16 = vld [vmem:[%s6844_s1 + $0x10] sm:$0xff]  ;;  %v47_v17 = vld [vmem:[%s6844_s1 + $0x8] sm:$0xff]  ;;  %v46_v18 = vld [vmem:[%s6844_s1] sm:$0xff]  ;;  %vm422_vm5 = vcmask 64512   ;;  %s5778_s27 = smov 64   ;;  %s5779_s28 = smov 80  }
   0xc   :  { %5186 = vmatprep.subr.mxu0 %v56_v8  ;;  %v181_v38 = vld [vmem:[%s6845_s2 + $0x18] sm:$0xff]  ;;  %v180_v39 = vld [vmem:[%s6845_s2 + $0x10] sm:$0xff]  ;;  %v179_v40 = vld [vmem:[%s6845_s2 + $0x8] sm:$0xff]  ;;  %v5914_v49 = vsub.s32 0, %v5911_v48  ;;  %v5922_v51 = vsub.s32 1, %v5911_v48  ;;  %v5937_v63 = vsub.s32 4, %v5911_v48 }
   0xd   :  { %5187 = vmatpush3.msra.mxu0 %v56_v8  ;;  %5211 = vmatprep.subr.mxu1 %v181_v38  ;;  %v178_v41 = vld [vmem:[%s6845_s2] sm:$0xff]  ;;  %s5780_s29 = smov 112   ;;  %s5781_s30 = smov 48   ;;  %vm949_vm6 = vcmask 261248   ;;  %vm4700_vm7 = vcmask 1041409   ;;  %vm4703_vm8 = vcmask 58368  }
   0xe   :  { %5188 = vmatprep.subr.mxu0 %v55_v9  ;;  %5212 = vmatpush3.msra.mxu1 %v181_v38  ;;  %v5919_v50 = vld [vmem:[%s6850_s7] sm:$0xff]  ;;  %s5782_s17 = smov 16   ;;  %vm4759_vm9 = vcmask 7168   ;;  %vm4761_vm10 = vcmask 15360   ;;  %vm4768_vm11 = vcmask 17408  }
   0xf   :  { %5189 = vmatpush3.msra.mxu0 %v55_v9  ;;  %5213 = vmatprep.subr.mxu1 %v180_v39  ;;  %v169_v52 = vrot.slane %v5919_v50, %v5914_v49  ;;  %v175_v55 = vrot.slane %v5919_v50, %v5922_v51  ;;  %v185_v1 = vrot.slane %v5919_v50, %v5937_v63 }
  0x10   :  { %5190 = vmatprep.subr.mxu0 %v54_v10  ;;  %5214 = vmatpush3.msra.mxu1 %v180_v39 }
  0x11   :  { %5191 = vmatpush3.msra.mxu0 %v54_v10  ;;  %5215 = vmatprep.subr.mxu1 %v179_v40 }
  0x12   :  { %5192 = vmatprep.subr.mxu0 %v53_v11  ;;  %5216 = vmatpush3.msra.mxu1 %v179_v40 }
  0x13   :  { %5193 = vmatpush3.msra.mxu0 %v53_v11  ;;  %5217 = vmatprep.subr.mxu1 %v178_v41 }
  0x14   :  { %5194 = vmatprep.subr.mxu0 %v52_v12  ;;  %5218 = vmatpush3.msra.mxu1 %v178_v41 }
  0x15   :  { %5195 = vmatpush3.msra.mxu0 %v52_v12  ;;  %5222 = vmatprep.subr.mxu1 %v5775_v62 }
  0x16   :  { %5196 = vmatprep.subr.mxu0 %v51_v13 }
  0x17   :  { %5197 = vmatpush3.msra.mxu0 %v51_v13 }
  0x18   :  { %5198 = vmatprep.subr.mxu0 %v50_v14 }
  0x19   :  { %5199 = vmatpush3.msra.mxu0 %v50_v14 }
  0x1a   :  { %5200 = vmatprep.subr.mxu0 %v49_v15 }
  0x1b   :  { %5201 = vmatpush3.msra.mxu0 %v49_v15 }
  0x1c   :  { %5202 = vmatprep.subr.mxu0 %v48_v16 }
  0x1d   :  { %5203 = vmatpush3.msra.mxu0 %v48_v16 }
  0x1e   :  { %5204 = vmatprep.subr.mxu0 %v47_v17 }
  0x1f   :  { %5205 = vmatpush3.msra.mxu0 %v47_v17 }
  0x20   :  { %5206 = vmatprep.subr.mxu0 %v46_v18 }
  0x21   :  { %5207 = vmatpush3.msra.mxu0 %v46_v18 }
  0x22   :  { %5252 = vmatprep.subr.mxu0 %v5775_v62 }
  0x7d   :  { %v36_v21 = vpop.permute.xlu0 %35 }
  0x7e   :  { %vm40_vm0 = vcmp.eq.s32.totalorder %v5883_v20, %v36_v21 }
  0x7f   :  { %5208 = vmatprep.mubr.msk.f32.mxu0 %vm40_vm0, %v5774_v22 }
  0x81   :  { %v39_v23 = vpop.permute.xlu0 %38 }
  0x82   :  { %vm41_vm1 = vcmp.eq.s32.totalorder %v5883_v20, %v39_v23 }
  0x83   :  { %5209 = vmatmul.mubr.msk.f32.vlgmr.msra.gmra.mxu0 %vm41_vm1, %v5774_v22 }
  0x84   :  { %5254 = vmatprep.mubr.msk.f32.mxu0 %vm5776_vm3, %v5775_v62 }
 0x143   :  { %v5887_v24 = vpop.f32.mrf.mxu0 }
 0x144   :  { %v142_v27 = vsel %vm138_vm2, %v5887_v24, 0.0 }
 0x145   :  { %v5889_v25 = vpop.f32.mrf.mxu0 }
 0x146   :  { %v139_v26 = vsel %vm138_vm2, %v5889_v25, 0.0 }
 0x147   :  { %140 = vadd.xlane.f32.xlu1 %v139_v26 }
 0x14b   :  { %143 = vadd.xlane.f32.xlu1 %v142_v27 }
 0x1d0   :  { %v141_v28 = vpop.xlane.xlu1 %140 }
 0x1d1   :  { %v146_v29 = vmul.f32 0.03125, %v141_v28 }
 0x1d3   :  { %v148_v30 = vsub.f32 %v5889_v25, %v146_v29 }
 0x1d4   :  { %v144_v31 = vpop.xlane.xlu1 %143 }
 0x1d5   :  { %v147_v32 = vmul.f32 0.03125, %v144_v31  ;;  %v150_v33 = vmul.f32 %v148_v30, %v148_v30 }
 0x1d7   :  { %v149_v34 = vsub.f32 %v5887_v24, %v147_v32  ;;  %v152_v35 = vsel %vm138_vm2, %v150_v33, 0.0 }
 0x1d8   :  { %153 = vadd.xlane.f32.xlu0 %v152_v35 }
 0x1d9   :  { %v151_v36 = vmul.f32 %v149_v34, %v149_v34 }
 0x1db   :  { %v155_v37 = vsel %vm138_vm2, %v151_v36, 0.0 }
 0x1dc   :  { %156 = vadd.xlane.f32.xlu1 %v155_v37 }
 0x261   :  { %v154_v42 = vpop.xlane.xlu0 %153 }
 0x262   :  { %v158_v43 = vmul.f32 0.03125, %v154_v42 }
 0x264   :  { %v160_v44 = vadd.f32 1e-05, %v158_v43 }
 0x265   :  { %v157_v45 = vpop.xlane.xlu1 %156 }
 0x266   :  { %5655 = vrsqrt.f32 %v160_v44  ;;  %v159_v46 = vmul.f32 0.03125, %v157_v45 }
 0x268   :  { %v161_v47 = vadd.f32 1e-05, %v159_v46 }
 0x26a   :  { %5657 = vrsqrt.f32 %v161_v47 }
 0x273   :  { %v5656_v53 = vpop.eup %5655 }
 0x274   :  { %v164_v54 = vmul.f32 %v5656_v53, %v148_v30 }
 0x276   :  { %v170_v56 = vmul.f32 %v169_v52, %v164_v54 }
 0x277   :  { %v5658_v57 = vpop.eup %5657 }
 0x278   :  { %v165_v58 = vmul.f32 %v5658_v57, %v149_v34  ;;  %v176_v59 = vadd.f32 %v175_v55, %v170_v56 }
 0x27a   :  { %v171_v60 = vmul.f32 %v169_v52, %v165_v58  ;;  %5219 = vmatprep.mubr.msk.f32.mxu1 %vm138_vm2, %v176_v59 }
 0x27c   :  { %v177_v61 = vadd.f32 %v175_v55, %v171_v60 }
 0x27e   :  { %5220 = vmatmul.mubr.msk.f32.vlgmr.msra.gmra.mxu1 %vm138_vm2, %v177_v61 }
 0x27f   :  { %5224 = vmatprep.mubr.msk.f32.mxu1 %vm5776_vm3, %v5775_v62 }
 0x33e   :  { %v5221_v0 = vpop.f32.mrf.mxu1 }
 0x33f   :  { %v5945_v4 = vadd.f32 %v5221_v0, %v185_v1 }
 0x340   :  { %v258_v2 = vpop.f32.mrf.mxu1 }
 0x341   :  { %v5941_v3 = vadd.f32 %v258_v2, %v185_v1 }
 0x343   :  { %268 = vrot.lane.b32.xlu1 %v5941_v3, %s5777_s26 }
 0x347   :  { %346 = vrot.lane.b32.xlu1 %v5945_v4, %s5777_s26 }
 0x3b5   :  { %v269_v5 = vpop.permute.xlu1 %268 }
 0x3b6   :  { %5223 = vmatpush3.xpose.msk.msra.mxu1 %vm270_vm4, %v269_v5 }
 0x3b7   :  { %5227 = vmatprep.subr.mxu1 %v5775_v62 }
 0x3b9   :  { %5225 = vmatmul.mubr.msk.f32.vlgmr.msra.gmra.mxu1 %vm270_vm4, %v5941_v3  ;;  %v347_v6 = vpop.permute.xlu1 %346 }
 0x3ba   :  { %5228 = vmatpush3.xpose.msk.msra.mxu1 %vm270_vm4, %v347_v6  ;;  %5229 = vmatprep.mubr.msk.f32.mxu1 %vm5776_vm3, %v5775_v62 }
 0x3bb   :  { %5232 = vmatprep.subr.mxu1 %v5775_v62 }
 0x3bd   :  { %5230 = vmatmul.mubr.msk.f32.vlgmr.msra.gmra.mxu1 %vm270_vm4, %v5945_v4 }
 0x3be   :  { %5234 = vmatprep.mubr.msk.f32.mxu1 %vm5776_vm3, %v5775_v62 }
 0x479   :  { %v341_v7 = vpop.f32.mrf.mxu1 }
 0x47a   :  { %v423_v8 = vsel %vm422_vm5, %v341_v7, -inf }
 0x47b   :  { %424 = vmax.xlane.f32.xlu1 %v423_v8  ;;  %v5226_v9 = vpop.f32.mrf.mxu1 }
 0x47d   :  { %v418_v10 = vpop.f32.mrf.mxu1 }
 0x47e   :  { %v426_v11 = vsel %vm422_vm5, %v418_v10, -inf }
 0x47f   :  { %427 = vmax.xlane.f32.xlu0 %v426_v11  ;;  %v5231_v12 = vpop.f32.mrf.mxu1 }
 0x48c   :  { %527 = vrot.lane.b32.xlu1 %v5945_v4, %s5778_s27 }
 0x495   :  { %451 = vrot.lane.b32.xlu0 %v5941_v3, %s5778_s27 }
 0x504   :  { %v425_v13 = vpop.xlane.xlu1 %424 }
 0x505   :  { %v429_v14 = vsub.f32 %v341_v7, %v425_v13 }
 0x507   :  { %v431_v15 = vmul.f32 1.442695, %v429_v14 }
 0x508   :  { %v428_v16 = vpop.xlane.xlu0 %427  ;;  %v528_v39 = vpop.permute.xlu1 %527 }
 0x509   :  { %5659 = vpow2.f32 %v431_v15  ;;  %v430_v17 = vsub.f32 %v418_v10, %v428_v16 }
 0x50b   :  { %v433_v18 = vmul.f32 1.442695, %v430_v17 }
 0x50c   :  { %v452_v19 = vpop.permute.xlu0 %451 }
 0x50d   :  { %5661 = vpow2.f32 %v433_v18  ;;  %5233 = vmatpush3.msra.mxu1 %v452_v19 }
 0x50e   :  { %5237 = vmatprep.subr.mxu1 %v5775_v62 }
 0x516   :  { %v5660_v21 = vpop.eup %5659 }
 0x517   :  { %v435_v22 = vsel %vm422_vm5, %v5660_v21, 0.0 }
 0x518   :  { %436 = vadd.xlane.f32.xlu0 %v435_v22  ;;  %v956_v22 = vld [vmem:[%s6846_s3 + $0x10] sm:$0xff] }
 0x51a   :  { %v5662_v23 = vpop.eup %5661 }
 0x51b   :  { %v438_v26 = vsel %vm422_vm5, %v5662_v23, 0.0 }
 0x51c   :  { %439 = vadd.xlane.f32.xlu0 %v438_v26  ;;  %v954_v26 = vld [vmem:[%s6846_s3] sm:$0xff] }
 0x532   :  { %607 = vrot.lane.b32.xlu0 %v5941_v3, %s5779_s28 }
 0x536   :  { %605 = vrot.lane.b32.xlu0 %v5941_v3, %s5780_s29 }
 0x53a   :  { %685 = vrot.lane.b32.xlu0 %v5945_v4, %s5779_s28 }
 0x53e   :  { %683 = vrot.lane.b32.xlu0 %v5945_v4, %s5780_s29 }
 0x5a1   :  { %v437_v27 = vpop.xlane.xlu0 %436 }
 0x5a2   :  { %5663 = vrcp.f32 %v437_v27 }
 0x5a5   :  { %v440_v28 = vpop.xlane.xlu0 %439 }
 0x5a6   :  { %5665 = vrcp.f32 %v440_v28 }
 0x5a9   :  { %v608_v31 = vpop.permute.xlu0 %607 }
 0x5ad   :  { %v606_v38 = vpop.permute.xlu0 %605 }
 0x5af   :  { %v5664_v29 = vpop.eup %5663 }
 0x5b0   :  { %v443_v30 = vmul.f32 %v5664_v29, %v437_v27 }
 0x5b1   :  { %v686_v42 = vpop.permute.xlu0 %685 }
 0x5b2   :  { %v445_v32 = vsub.f32 2.0, %v443_v30 }
 0x5b3   :  { %v5666_v33 = vpop.eup %5665 }
 0x5b4   :  { %v447_v34 = vmul.f32 %v5664_v29, %v445_v32  ;;  %v444_v35 = vmul.f32 %v5666_v33, %v440_v28 }
 0x5b5   :  { %v684_v43 = vpop.permute.xlu0 %683 }
 0x5b6   :  { %v449_v36 = vmul.f32 %v5660_v21, %v447_v34  ;;  %v446_v37 = vsub.f32 2.0, %v444_v35  ;;  %v957_v21 = vld [vmem:[%s6846_s3 + $0x18] sm:$0xff]  ;;  %v6026_v35 = vsub.s32 5, %v5911_v48 }
 0x5b8   :  { %v448_v40 = vmul.f32 %v5666_v33, %v446_v37  ;;  %5235 = vmatmul.mubr.msk.f32.vlgmr.msra.gmra.mxu1 %vm422_vm5, %v449_v36  ;;  %v1044_v36 = vrot.slane %v5919_v50, %v6026_v35 }
 0x5b9   :  { %5238 = vmatpush3.msra.mxu1 %v528_v39  ;;  %5239 = vmatprep.mubr.msk.f32.mxu1 %vm5776_vm3, %v5775_v62 }
 0x5ba   :  { %v450_v41 = vmul.f32 %v5662_v23, %v448_v40  ;;  %5242 = vmatprep.subr.mxu1 %v5775_v62  ;;  %v955_v23 = vld [vmem:[%s6846_s3 + $0x8] sm:$0xff] }
 0x5bc   :  { %5240 = vmatmul.mubr.msk.f32.vlgmr.msra.gmra.mxu1 %vm422_vm5, %v450_v41 }
 0x5bd   :  { %5243 = vmatpush3.xpose.msk.msra.mxu1 %vm270_vm4, %v608_v31  ;;  %5244 = vmatprep.mubr.msk.f32.mxu1 %vm5776_vm3, %v5775_v62 }
 0x5be   :  { %5247 = vmatprep.subr.mxu1 %v5775_v62 }
 0x5c0   :  { %5245 = vmatmul.mubr.msk.f32.vlgmr.msra.gmra.mxu1 %vm270_vm4, %v606_v38 }
 0x5c1   :  { %5248 = vmatpush3.xpose.msk.msra.mxu1 %vm270_vm4, %v686_v42  ;;  %5249 = vmatprep.mubr.msk.f32.mxu1 %vm5776_vm3, %v5775_v62 }
 0x5c2   :  { %5257 = vmatprep.subr.mxu1 %v5775_v62 }
 0x5c4   :  { %5250 = vmatmul.mubr.msk.f32.vlgmr.msra.gmra.mxu1 %vm270_vm4, %v684_v43 }
 0x5c5   :  { %5259 = vmatprep.mubr.msk.f32.mxu1 %vm5776_vm3, %v5775_v62 }
 0x678   :  { %v523_v44 = vpop.f32.mrf.mxu1 }
 0x679   :  { %603 = vst.msk [vmem:[#allocation2] sm:$0xff] %vm270_vm4, %v523_v44 }
 0x67a   :  { %v5236_v45 = vpop.f32.mrf.mxu1 }
 0x67c   :  { %v599_v46 = vpop.f32.mrf.mxu1 }
 0x67d   :  { %604 = vst.msk [vmem:[#allocation2 + $0x8] sm:$0xff] %vm270_vm4, %v599_v46 }
 0x67e   :  { %v5241_v47 = vpop.f32.mrf.mxu1 }
 0x680   :  { %v679_v52 = vpop.f32.mrf.mxu1 }
 0x681   :  { %v761_v53 = vsel %vm422_vm5, %v679_v52, -inf }
 0x682   :  { %762 = vmax.xlane.f32.xlu1 %v761_v53  ;;  %v5246_v54 = vpop.f32.mrf.mxu1 }
 0x684   :  { %v757_v55 = vpop.f32.mrf.mxu1 }
 0x685   :  { %v764_v56 = vsel %vm422_vm5, %v757_v55, -inf }
 0x686   :  { %765 = vmax.xlane.f32.xlu0 %v764_v56  ;;  %v5251_v57 = vpop.f32.mrf.mxu1 }
 0x687   :  { %v1088_v57 = vld [vmem:[%s6847_s4 + $0x18] sm:$0xff] }
 0x70b   :  { %v763_v58 = vpop.xlane.xlu1 %762 }
 0x70c   :  { %v767_v59 = vsub.f32 %v679_v52, %v763_v58  ;;  %v1087_v58 = vld [vmem:[%s6847_s4 + $0x10] sm:$0xff] }
 0x70e   :  { %v769_v60 = vmul.f32 1.442695, %v767_v59  ;;  %v1086_v59 = vld [vmem:[%s6847_s4 + $0x8] sm:$0xff] }
 0x70f   :  { %v766_v61 = vpop.xlane.xlu0 %765 }
 0x710   :  { %5667 = vpow2.f32 %v769_v60  ;;  %v768_v0 = vsub.f32 %v757_v55, %v766_v61  ;;  %v1085_v60 = vld [vmem:[%s6847_s4] sm:$0xff]  ;;  %v1191_v61 = vld [vmem:[%s6848_s5 + $0x78] sm:$0xff] }
 0x712   :  { %v771_v1 = vmul.f32 1.442695, %v768_v0  ;;  %v1190_v0 = vld [vmem:[%s6848_s5 + $0x70] sm:$0xff] }
 0x714   :  { %5669 = vpow2.f32 %v771_v1  ;;  %v1189_v1 = vld [vmem:[%s6848_s5 + $0x68] sm:$0xff] }
 0x71d   :  { %v5668_v2 = vpop.eup %5667 }
 0x71e   :  { %v773_v5 = vsel %vm422_vm5, %v5668_v2, 0.0 }
 0x71f   :  { %774 = vadd.xlane.f32.xlu0 %v773_v5  ;;  %v1187_v5 = vld [vmem:[%s6848_s5 + $0x58] sm:$0xff] }
 0x721   :  { %v5670_v6 = vpop.eup %5669 }
 0x722   :  { %v776_v7 = vsel %vm422_vm5, %v5670_v6, 0.0 }
 0x723   :  { %777 = vadd.xlane.f32.xlu1 %v776_v7  ;;  %v1185_v7 = vld [vmem:[%s6848_s5 + $0x48] sm:$0xff] }
 0x734   :  { %865 = vrot.lane.b32.xlu1 %v5945_v4, %s5781_s30 }
 0x735   :  { %789 = vrot.lane.b32.xlu0 %v5941_v3, %s5781_s30 }
 0x7a8   :  { %v775_v8 = vpop.xlane.xlu0 %774 }
 0x7a9   :  { %5671 = vrcp.f32 %v775_v8 }
 0x7ac   :  { %v778_v9 = vpop.xlane.xlu1 %777  ;;  %v790_v10 = vpop.permute.xlu0 %789 }
 0x7ad   :  { %5673 = vrcp.f32 %v778_v9  ;;  %5253 = vmatpush3.msra.mxu0 %v790_v10  ;;  %v1182_v10 = vld [vmem:[%s6848_s5 + $0x30] sm:$0xff] }
 0x7ae   :  { %5284 = vmatprep.subr.mxu0 %v1191_v61 }
 0x7b0   :  { %v866_v11 = vpop.permute.xlu1 %865 }
 0x7b1   :  { %5258 = vmatpush3.msra.mxu1 %v866_v11  ;;  %v1181_v11 = vld [vmem:[%s6848_s5 + $0x28] sm:$0xff] }
 0x7b2   :  { %5262 = vmatprep.subr.mxu1 %v957_v21 }
 0x7b6   :  { %v5672_v12 = vpop.eup %5671 }
 0x7b7   :  { %v781_v13 = vmul.f32 %v5672_v12, %v775_v8  ;;  %v1184_v8 = vld [vmem:[%s6848_s5 + $0x40] sm:$0xff] }
 0x7b9   :  { %v783_v14 = vsub.f32 2.0, %v781_v13 }
 0x7ba   :  { %v5674_v15 = vpop.eup %5673 }
 0x7bb   :  { %v785_v16 = vmul.f32 %v5672_v12, %v783_v14  ;;  %v782_v17 = vmul.f32 %v5674_v15, %v778_v9  ;;  %v1183_v9 = vld [vmem:[%s6848_s5 + $0x38] sm:$0xff]  ;;  %v1180_v12 = vld [vmem:[%s6848_s5 + $0x20] sm:$0xff] }
 0x7bd   :  { %v787_v18 = vmul.f32 %v5668_v2, %v785_v16  ;;  %v784_v19 = vsub.f32 2.0, %v782_v17  ;;  %v1188_v2 = vld [vmem:[%s6848_s5 + $0x60] sm:$0xff] }
 0x7bf   :  { %v786_v4 = vmul.f32 %v5674_v15, %v784_v19  ;;  %5255 = vmatmul.mubr.msk.f32.vlgmr.msra.gmra.mxu0 %vm422_vm5, %v787_v18  ;;  %v6101_v19 = vsub.s32 2, %v5911_v48 }
 0x7c0   :  { %5285 = vmatpush3.msra.mxu0 %v1191_v61 }
 0x7c1   :  { %v788_v3 = vmul.f32 %v5670_v6, %v786_v4  ;;  %5286 = vmatprep.subr.mxu0 %v1190_v0  ;;  %v1186_v6 = vld [vmem:[%s6848_s5 + $0x50] sm:$0xff] }
 0x7c2   :  { %5287 = vmatpush3.msra.mxu0 %v1190_v0 }
 0x7c3   :  { %5260 = vmatmul.mubr.msk.f32.vlgmr.msra.gmra.mxu1 %vm422_vm5, %v788_v3  ;;  %5288 = vmatprep.subr.mxu0 %v1189_v1  ;;  %v1076_v3 = vrot.slane %v5919_v50, %v6101_v19 }
 0x7c4   :  { %5263 = vmatpush3.msra.mxu1 %v957_v21  ;;  %5289 = vmatpush3.msra.mxu0 %v1189_v1  ;;  %v6106_v21 = vsub.s32 3, %v5911_v48 }
 0x7c5   :  { %5264 = vmatprep.subr.mxu1 %v956_v22  ;;  %5290 = vmatprep.subr.mxu0 %v1188_v2 }
 0x7c6   :  { %5265 = vmatpush3.msra.mxu1 %v956_v22  ;;  %5291 = vmatpush3.msra.mxu0 %v1188_v2 }
 0x7c7   :  { %5266 = vmatprep.subr.mxu1 %v955_v23  ;;  %5292 = vmatprep.subr.mxu0 %v1187_v5 }
 0x7c8   :  { %5267 = vmatpush3.msra.mxu1 %v955_v23  ;;  %5293 = vmatpush3.msra.mxu0 %v1187_v5 }
 0x7c9   :  { %5268 = vmatprep.subr.mxu1 %v954_v26  ;;  %5294 = vmatprep.subr.mxu0 %v1186_v6 }
 0x7ca   :  { %5269 = vmatpush3.msra.mxu1 %v954_v26  ;;  %5295 = vmatpush3.msra.mxu0 %v1186_v6  ;;  %v4810_v6 = vld [vmem:[%s6845_s2 + $0x38] sm:$0xff] }
 0x7cb   :  { %5273 = vmatprep.subr.mxu1 %v1088_v57  ;;  %5296 = vmatprep.subr.mxu0 %v1185_v7 }
 0x7cc   :  { %5297 = vmatpush3.msra.mxu0 %v1185_v7  ;;  %v4809_v7 = vld [vmem:[%s6845_s2 + $0x30] sm:$0xff] }
 0x7cd   :  { %5298 = vmatprep.subr.mxu0 %v1184_v8 }
 0x7ce   :  { %5299 = vmatpush3.msra.mxu0 %v1184_v8  ;;  %v4808_v8 = vld [vmem:[%s6845_s2 + $0x28] sm:$0xff] }
 0x7cf   :  { %5300 = vmatprep.subr.mxu0 %v1183_v9 }
 0x7d0   :  { %5301 = vmatpush3.msra.mxu0 %v1183_v9  ;;  %v4807_v9 = vld [vmem:[%s6845_s2 + $0x20] sm:$0xff] }
 0x7d1   :  { %5302 = vmatprep.subr.mxu0 %v1182_v10 }
 0x7d2   :  { %5303 = vmatpush3.msra.mxu0 %v1182_v10 }
 0x7d3   :  { %5304 = vmatprep.subr.mxu0 %v1181_v11 }
 0x7d4   :  { %5305 = vmatpush3.msra.mxu0 %v1181_v11 }
 0x7d5   :  { %5306 = vmatprep.subr.mxu0 %v1180_v12 }
 0x7d6   :  { %5307 = vmatpush3.msra.mxu0 %v1180_v12 }
 0x87f   :  { %v861_v27 = vpop.f32.mrf.mxu0 }
 0x880   :  { %943 = vrot.lane.b32.xlu1 %v861_v27, %s5782_s17 }
 0x881   :  { %v5256_v28 = vpop.f32.mrf.mxu0 }
 0x882   :  { %v1082_v28 = vrot.slane %v5919_v50, %v6106_v21 }
 0x883   :  { %v937_v29 = vpop.f32.mrf.mxu1 }
 0x884   :  { %945 = vrot.lane.b32.xlu0 %v937_v29, %s5782_s17 }
 0x885   :  { %v5261_v30 = vpop.f32.mrf.mxu1 }
 0x8f2   :  { %v944_v31 = vpop.permute.xlu1 %943 }
 0x8f3   :  { %950 = vst.msk [vmem:[#allocation2] sm:$0xff] %vm949_vm6, %v944_v31 }
 0x8f6   :  { %v946_v32 = vpop.permute.xlu0 %945 }
 0x8f7   :  { %951 = vst.msk [vmem:[#allocation2 + $0x8] sm:$0xff] %vm949_vm6, %v946_v32  ;;  %v1179_v32 = vld [vmem:[%s6848_s5 + $0x18] sm:$0xff] }
 0x8f8   :  { %5308 = vmatprep.subr.mxu0 %v1179_v32 }
 0x8f9   :  { %5309 = vmatpush3.msra.mxu0 %v1179_v32 }
 0x8fa   :  { %v952_v33 = vld [vmem:[#allocation2] sm:$0xff] }
 0x8fb   :  { %5270 = vmatprep.mubr.msk.f32.mxu1 %vm138_vm2, %v952_v33  ;;  %v1178_v33 = vld [vmem:[%s6848_s5 + $0x10] sm:$0xff] }
 0x8fc   :  { %5310 = vmatprep.subr.mxu0 %v1178_v33 }
 0x8fd   :  { %5311 = vmatpush3.msra.mxu0 %v1178_v33 }
 0x8fe   :  { %v953_v34 = vld [vmem:[#allocation2 + $0x8] sm:$0xff] }
 0x8ff   :  { %5271 = vmatmul.mubr.msk.f32.vlgmr.msra.gmra.mxu1 %vm138_vm2, %v953_v34  ;;  %v1177_v34 = vld [vmem:[%s6848_s5 + $0x8] sm:$0xff] }
 0x900   :  { %5274 = vmatpush3.msra.mxu1 %v1088_v57  ;;  %5312 = vmatprep.subr.mxu0 %v1177_v34 }
 0x901   :  { %5275 = vmatprep.subr.mxu1 %v1087_v58  ;;  %5313 = vmatpush3.msra.mxu0 %v1177_v34 }
 0x902   :  { %5276 = vmatpush3.msra.mxu1 %v1087_v58 }
 0x903   :  { %5277 = vmatprep.subr.mxu1 %v1086_v59 }
 0x904   :  { %5278 = vmatpush3.msra.mxu1 %v1086_v59 }
 0x905   :  { %5279 = vmatprep.subr.mxu1 %v1085_v60 }
 0x906   :  { %5280 = vmatpush3.msra.mxu1 %v1085_v60 }
 0x907   :  { %5319 = vmatprep.subr.mxu1 %v4810_v6 }
 0x9bf   :  { %v5272_v37 = vpop.f32.mrf.mxu1 }
 0x9c0   :  { %v1040_v38 = vadd.f32 %v5272_v37, %v5887_v24  ;;  %v6128_v37 = vsub.s32 6, %v5911_v48 }
 0x9c1   :  { %v1030_v39 = vpop.f32.mrf.mxu1 }
 0x9c2   :  { %v6031_v40 = vadd.f32 %v1044_v36, %v1040_v38  ;;  %v1039_v41 = vadd.f32 %v1030_v39, %v5889_v25  ;;  %v1092_v38 = vrot.slane %v5919_v50, %v6128_v37 }
 0x9c4   :  { %v6034_v42 = vadd.f32 %v1044_v36, %v1039_v41  ;;  %v1050_v43 = vsel %vm138_vm2, %v6031_v40, 0.0  ;;  %v1176_v36 = vld [vmem:[%s6848_s5] sm:$0xff] }
 0x9c5   :  { %1051 = vadd.xlane.f32.xlu0 %v1050_v43  ;;  %5314 = vmatprep.subr.mxu0 %v1176_v36 }
 0x9c6   :  { %v1047_v44 = vsel %vm138_vm2, %v6034_v42, 0.0  ;;  %5315 = vmatpush3.msra.mxu0 %v1176_v36 }
 0x9c7   :  { %1048 = vadd.xlane.f32.xlu1 %v1047_v44  ;;  %5360 = vmatprep.subr.mxu0 %v5775_v62 }
 0xa4e   :  { %v1052_v45 = vpop.xlane.xlu0 %1051 }
 0xa4f   :  { %v1054_v46 = vmul.f32 0.03125, %v1052_v45 }
 0xa50   :  { %v1049_v47 = vpop.xlane.xlu1 %1048 }
 0xa51   :  { %v6041_v24 = vsub.f32 %v6031_v40, %v1054_v46  ;;  %v1053_v52 = vmul.f32 0.03125, %v1049_v47  ;;  %v6135_v47 = vsub.s32 7, %v5911_v48 }
 0xa53   :  { %v6044_v53 = vsub.f32 %v6034_v42, %v1053_v52  ;;  %v1058_v25 = vmul.f32 %v6041_v24, %v6041_v24 }
 0xa55   :  { %v1062_v54 = vsel %vm138_vm2, %v1058_v25, 0.0  ;;  %v1057_v55 = vmul.f32 %v6044_v53, %v6044_v53 }
 0xa56   :  { %1063 = vadd.xlane.f32.xlu1 %v1062_v54 }
 0xa57   :  { %v1059_v56 = vsel %vm138_vm2, %v1057_v55, 0.0 }
 0xa58   :  { %1060 = vadd.xlane.f32.xlu0 %v1059_v56 }
 0xadf   :  { %v1064_v13 = vpop.xlane.xlu1 %1063 }
 0xae0   :  { %v1066_v14 = vmul.f32 0.03125, %v1064_v13 }
 0xae1   :  { %v1061_v15 = vpop.xlane.xlu0 %1060 }
 0xae2   :  { %v1068_v16 = vadd.f32 1e-05, %v1066_v14  ;;  %v1065_v17 = vmul.f32 0.03125, %v1061_v15 }
 0xae4   :  { %5675 = vrsqrt.f32 %v1068_v16  ;;  %v1067_v18 = vadd.f32 1e-05, %v1065_v17  ;;  %v6169_v16 = vld [vmem:[%s6850_s7 + $0x8] sm:$0xff] }
 0xae6   :  { %5677 = vrsqrt.f32 %v1067_v18  ;;  %v1304_v18 = vrot.slane %v6169_v16, %v5914_v49 }
 0xaf1   :  { %v5676_v4 = vpop.eup %5675 }
 0xaf2   :  { %v1072_v22 = vmul.f32 %v5676_v4, %v6041_v24  ;;  %v1195_v24 = vrot.slane %v5919_v50, %v6135_v47 }
 0xaf3   :  { %v5678_v23 = vpop.eup %5677 }
 0xaf4   :  { %v1071_v26 = vmul.f32 %v5678_v23, %v6044_v53  ;;  %v1078_v27 = vmul.f32 %v1076_v3, %v1072_v22 }
 0xaf6   :  { %v1077_v29 = vmul.f32 %v1076_v3, %v1071_v26  ;;  %v1084_v31 = vadd.f32 %v1082_v28, %v1078_v27  ;;  %v1310_v26 = vrot.slane %v6169_v16, %v5922_v51 }
 0xaf8   :  { %v1083_v30 = vadd.f32 %v1082_v28, %v1077_v29 }
 0xafa   :  { %5281 = vmatprep.mubr.msk.f32.mxu1 %vm138_vm2, %v1083_v30  ;;  %v1321_v30 = vrot.slane %v6169_v16, %v5937_v63 }
 0xafb   :  { %5282 = vmatmul.mubr.msk.f32.vlgmr.msra.gmra.mxu1 %vm138_vm2, %v1084_v31 }
 0xafc   :  { %5320 = vmatpush3.msra.mxu1 %v4810_v6 }
 0xafd   :  { %5321 = vmatprep.subr.mxu1 %v4809_v7 }
 0xafe   :  { %5322 = vmatpush3.msra.mxu1 %v4809_v7 }
 0xaff   :  { %5323 = vmatprep.subr.mxu1 %v4808_v8 }
 0xb00   :  { %5324 = vmatpush3.msra.mxu1 %v4808_v8 }
 0xb01   :  { %5325 = vmatprep.subr.mxu1 %v4807_v9 }
 0xb02   :  { %5326 = vmatpush3.msra.mxu1 %v4807_v9 }
 0xb03   :  { %5330 = vmatprep.subr.mxu1 %v5775_v62 }
 0xbbb   :  { %v5283_v39 = vpop.f32.mrf.mxu1 }
 0xbbc   :  { %v1171_v41 = vadd.f32 %v5283_v39, %v1092_v38 }
 0xbbd   :  { %v1165_v43 = vpop.f32.mrf.mxu1 }
 0xbbe   :  { %v1166_v44 = vadd.f32 %v1165_v43, %v1092_v38  ;;  %v1175_v46 = vmax.f32 %v1171_v41, 0.0 }
 0xbc0   :  { %v1174_v45 = vmax.f32 %v1166_v44, 0.0 }
 0xbc2   :  { %5316 = vmatprep.mubr.f32.mxu0 %v1174_v45 }
 0xbc3   :  { %5317 = vmatmul.mubr.f32.vlgmr.msra.gmra.mxu0 %v1175_v46 }
 0xbc4   :  { %5362 = vmatprep.mubr.msk.f32.mxu0 %vm5776_vm3, %v5775_v62 }
 0xc83   :  { %v5318_v52 = vpop.f32.mrf.mxu0 }
 0xc84   :  { %v1268_v53 = vadd.f32 %v5318_v52, %v1195_v24 }
 0xc85   :  { %v1262_v25 = vpop.f32.mrf.mxu0 }
 0xc86   :  { %v6140_v54 = vadd.f32 %v1268_v53, %v6031_v40  ;;  %v1263_v55 = vadd.f32 %v1262_v25, %v1195_v24 }
 0xc88   :  { %v6143_v56 = vadd.f32 %v1263_v55, %v6034_v42  ;;  %v1278_v57 = vsel %vm138_vm2, %v6140_v54, 0.0 }
 0xc89   :  { %1279 = vadd.xlane.f32.xlu1 %v1278_v57 }
 0xc8a   :  { %v1275_v58 = vsel %vm138_vm2, %v6143_v56, 0.0 }
 0xc8b   :  { %1276 = vadd.xlane.f32.xlu0 %v1275_v58 }
 0xd12   :  { %v1280_v59 = vpop.xlane.xlu1 %1279 }
 0xd13   :  { %v1282_v50 = vmul.f32 0.03125, %v1280_v59 }
 0xd14   :  { %v1277_v60 = vpop.xlane.xlu0 %1276 }
 0xd15   :  { %v1284_v61 = vsub.f32 %v6140_v54, %v1282_v50  ;;  %v1281_v0 = vmul.f32 0.03125, %v1277_v60 }
 0xd17   :  { %v1283_v40 = vsub.f32 %v6143_v56, %v1281_v0  ;;  %v1286_v1 = vmul.f32 %v1284_v61, %v1284_v61 }
 0xd19   :  { %v1290_v42 = vsel %vm138_vm2, %v1286_v1, 0.0  ;;  %v1285_v2 = vmul.f32 %v1283_v40, %v1283_v40 }
 0xd1a   :  { %1291 = vadd.xlane.f32.xlu1 %v1290_v42 }
 0xd1b   :  { %v1287_v5 = vsel %vm138_vm2, %v1285_v2, 0.0 }
 0xd1c   :  { %1288 = vadd.xlane.f32.xlu0 %v1287_v5 }
 0xda3   :  { %v1292_v10 = vpop.xlane.xlu1 %1291 }
 0xda4   :  { %v1294_v11 = vmul.f32 0.03125, %v1292_v10 }
 0xda5   :  { %v1289_v12 = vpop.xlane.xlu0 %1288 }
 0xda6   :  { %v1296_v13 = vadd.f32 1e-05, %v1294_v11  ;;  %v1293_v14 = vmul.f32 0.03125, %v1289_v12 }
 0xda8   :  { %5679 = vrsqrt.f32 %v1296_v13  ;;  %v1295_v15 = vadd.f32 1e-05, %v1293_v14 }
 0xdaa   :  { %5681 = vrsqrt.f32 %v1295_v15 }
 0xdb5   :  { %v5680_v17 = vpop.eup %5679 }
 0xdb6   :  { %v1300_v4 = vmul.f32 %v5680_v17, %v1284_v61 }
 0xdb7   :  { %v5682_v3 = vpop.eup %5681 }
 0xdb8   :  { %v1299_v22 = vmul.f32 %v5682_v3, %v1283_v40  ;;  %v1306_v23 = vmul.f32 %v1304_v18, %v1300_v4 }
 0xdba   :  { %v1305_v27 = vmul.f32 %v1304_v18, %v1299_v22  ;;  %v1312_v29 = vadd.f32 %v1310_v26, %v1306_v23 }
 0xdbc   :  { %v1311_v28 = vadd.f32 %v1310_v26, %v1305_v27 }
 0xdbe   :  { %5327 = vmatprep.mubr.msk.f32.mxu1 %vm138_vm2, %v1311_v28 }
 0xdbf   :  { %5328 = vmatmul.mubr.msk.f32.vlgmr.msra.gmra.mxu1 %vm138_vm2, %v1312_v29 }
 0xdc0   :  { %5332 = vmatprep.mubr.msk.f32.mxu1 %vm5776_vm3, %v5775_v62 }
 0xe7f   :  { %v5329_v31 = vpop.f32.mrf.mxu1 }
 0xe80   :  { %v6181_v32 = vadd.f32 %v5329_v31, %v1321_v30 }
 0xe81   :  { %v1394_v33 = vpop.f32.mrf.mxu1 }
 0xe82   :  { %v6183_v34 = vadd.f32 %v1394_v33, %v1321_v30  ;;  %1481 = vrot.lane.b32.xlu1 %v6181_v32, %s5777_s26 }
 0xe84   :  { %1404 = vrot.lane.b32.xlu0 %v6183_v34, %s5777_s26 }
 0xef4   :  { %v1482_v38 = vpop.permute.xlu1 %1481 }
 0xef6   :  { %v1405_v36 = vpop.permute.xlu0 %1404 }
 0xef7   :  { %5331 = vmatpush3.xpose.msk.msra.mxu1 %vm270_vm4, %v1405_v36 }
 0xef8   :  { %5335 = vmatprep.subr.mxu1 %v5775_v62 }
 0xefa   :  { %5333 = vmatmul.mubr.msk.f32.vlgmr.msra.gmra.mxu1 %vm270_vm4, %v6183_v34 }
 0xefb   :  { %5336 = vmatpush3.xpose.msk.msra.mxu1 %vm270_vm4, %v1482_v38  ;;  %5337 = vmatprep.mubr.msk.f32.mxu1 %vm5776_vm3, %v5775_v62 }
 0xefc   :  { %5340 = vmatprep.subr.mxu1 %v5775_v62 }
 0xefe   :  { %5338 = vmatmul.mubr.msk.f32.vlgmr.msra.gmra.mxu1 %vm270_vm4, %v6181_v32 }
 0xeff   :  { %5342 = vmatprep.mubr.msk.f32.mxu1 %vm5776_vm3, %v5775_v62 }
 0xfba   :  { %v1476_v39 = vpop.f32.mrf.mxu1 }
 0xfbb   :  { %v1557_v41 = vsel %vm422_vm5, %v1476_v39, -inf }
 0xfbc   :  { %1558 = vmax.xlane.f32.xlu1 %v1557_v41  ;;  %v5334_v43 = vpop.f32.mrf.mxu1 }
 0xfbe   :  { %v1553_v44 = vpop.f32.mrf.mxu1 }
 0xfbf   :  { %v1560_v45 = vsel %vm422_vm5, %v1553_v44, -inf }
 0xfc0   :  { %1561 = vmax.xlane.f32.xlu0 %v1560_v45  ;;  %v5339_v46 = vpop.f32.mrf.mxu1 }
 0xfcd   :  { %1661 = vrot.lane.b32.xlu1 %v6181_v32, %s5778_s27 }
0x1045   :  { %v1559_v24 = vpop.xlane.xlu1 %1558 }
0x1046   :  { %v1563_v52 = vsub.f32 %v1476_v39, %v1559_v24 }
0x1048   :  { %v1565_v53 = vmul.f32 1.442695, %v1563_v52 }
0x1049   :  { %v1562_v25 = vpop.xlane.xlu0 %1561  ;;  %v1662_v61 = vpop.permute.xlu1 %1661 }
0x104a   :  { %5683 = vpow2.f32 %v1565_v53  ;;  %v1564_v55 = vsub.f32 %v1553_v44, %v1562_v25 }
0x104c   :  { %v1567_v57 = vmul.f32 1.442695, %v1564_v55 }
0x104e   :  { %5685 = vpow2.f32 %v1567_v57 }
0x1057   :  { %v5684_v58 = vpop.eup %5683 }
0x1058   :  { %v1569_v59 = vsel %vm422_vm5, %v5684_v58, 0.0 }
0x1059   :  { %1570 = vadd.xlane.f32.xlu0 %v1569_v59 }
0x105b   :  { %v5686_v50 = vpop.eup %5685 }
0x105c   :  { %v1572_v60 = vsel %vm422_vm5, %v5686_v50, 0.0 }
0x105d   :  { %1573 = vadd.xlane.f32.xlu1 %v1572_v60 }
0x106e   :  { %1741 = vrot.lane.b32.xlu1 %v6183_v34, %s5779_s28 }
0x106f   :  { %1585 = vrot.lane.b32.xlu0 %v6183_v34, %s5778_s27 }
0x1072   :  { %1819 = vrot.lane.b32.xlu1 %v6181_v32, %s5779_s28 }
0x1073   :  { %1739 = vrot.lane.b32.xlu0 %v6183_v34, %s5780_s29 }
0x1077   :  { %1817 = vrot.lane.b32.xlu0 %v6181_v32, %s5780_s29 }
0x10e2   :  { %v1571_v0 = vpop.xlane.xlu0 %1570 }
0x10e3   :  { %5687 = vrcp.f32 %v1571_v0 }
0x10e6   :  { %v1574_v40 = vpop.xlane.xlu1 %1573  ;;  %v1586_v1 = vpop.permute.xlu0 %1585 }
0x10e7   :  { %5689 = vrcp.f32 %v1574_v40  ;;  %5341 = vmatpush3.msra.mxu1 %v1586_v1  ;;  %v4827_v1 = vld [vmem:[%s6846_s3 + $0x30] sm:$0xff] }
0x10e8   :  { %5345 = vmatprep.subr.mxu1 %v5775_v62 }
0x10ea   :  { %v1742_v13 = vpop.permute.xlu1 %1741  ;;  %v1740_v14 = vpop.permute.xlu0 %1739 }
0x10ee   :  { %v1820_v15 = vpop.permute.xlu1 %1819  ;;  %v1818_v17 = vpop.permute.xlu0 %1817 }
0x10f0   :  { %v5688_v42 = vpop.eup %5687 }
0x10f1   :  { %v1577_v2 = vmul.f32 %v5688_v42, %v1571_v0 }
0x10f3   :  { %v1579_v5 = vsub.f32 2.0, %v1577_v2  ;;  %v4825_v2 = vld [vmem:[%s6846_s3 + $0x20] sm:$0xff] }
0x10f4   :  { %v5690_v6 = vpop.eup %5689 }
0x10f5   :  { %v1581_v7 = vmul.f32 %v5688_v42, %v1579_v5  ;;  %v1578_v8 = vmul.f32 %v5690_v6, %v1574_v40  ;;  %v4828_v40 = vld [vmem:[%s6846_s3 + $0x38] sm:$0xff]  ;;  %v4826_v42 = vld [vmem:[%s6846_s3 + $0x28] sm:$0xff] }
0x10f7   :  { %v1583_v9 = vmul.f32 %v5684_v58, %v1581_v7  ;;  %v1580_v10 = vsub.f32 2.0, %v1578_v8 }
0x10f9   :  { %v1582_v11 = vmul.f32 %v5690_v6, %v1580_v10  ;;  %5343 = vmatmul.mubr.msk.f32.vlgmr.msra.gmra.mxu1 %vm422_vm5, %v1583_v9 }
0x10fa   :  { %5346 = vmatpush3.msra.mxu1 %v1662_v61  ;;  %5347 = vmatprep.mubr.msk.f32.mxu1 %vm5776_vm3, %v5775_v62 }
0x10fb   :  { %v1584_v12 = vmul.f32 %v5686_v50, %v1582_v11  ;;  %5350 = vmatprep.subr.mxu1 %v5775_v62 }
0x10fd   :  { %5348 = vmatmul.mubr.msk.f32.vlgmr.msra.gmra.mxu1 %vm422_vm5, %v1584_v12 }
0x10fe   :  { %5351 = vmatpush3.xpose.msk.msra.mxu1 %vm270_vm4, %v1742_v13  ;;  %5352 = vmatprep.mubr.msk.f32.mxu1 %vm5776_vm3, %v5775_v62  ;;  %v2178_v13 = vrot.slane %v6169_v16, %v6026_v35 }
0x10ff   :  { %5355 = vmatprep.subr.mxu1 %v5775_v62 }
0x1101   :  { %5353 = vmatmul.mubr.msk.f32.vlgmr.msra.gmra.mxu1 %vm270_vm4, %v1740_v14 }
0x1102   :  { %5356 = vmatpush3.xpose.msk.msra.mxu1 %vm270_vm4, %v1820_v15  ;;  %5357 = vmatprep.mubr.msk.f32.mxu1 %vm5776_vm3, %v5775_v62 }
0x1103   :  { %5365 = vmatprep.subr.mxu1 %v5775_v62 }
0x1105   :  { %5358 = vmatmul.mubr.msk.f32.vlgmr.msra.gmra.mxu1 %vm270_vm4, %v1818_v17 }
0x1106   :  { %5367 = vmatprep.mubr.msk.f32.mxu1 %vm5776_vm3, %v5775_v62 }
0x11b9   :  { %v1657_v18 = vpop.f32.mrf.mxu1 }
0x11ba   :  { %1737 = vst.msk [vmem:[#allocation2] sm:$0xff] %vm270_vm4, %v1657_v18 }
0x11bb   :  { %v5344_v4 = vpop.f32.mrf.mxu1 }
0x11bd   :  { %v1733_v3 = vpop.f32.mrf.mxu1 }
0x11be   :  { %1738 = vst.msk [vmem:[#allocation2 + $0x8] sm:$0xff] %vm270_vm4, %v1733_v3 }
0x11bf   :  { %v5349_v22 = vpop.f32.mrf.mxu1 }
0x11c1   :  { %v1813_v23 = vpop.f32.mrf.mxu1 }
0x11c2   :  { %v1895_v26 = vsel %vm422_vm5, %v1813_v23, -inf }
0x11c3   :  { %1896 = vmax.xlane.f32.xlu1 %v1895_v26  ;;  %v5354_v27 = vpop.f32.mrf.mxu1 }
0x11c5   :  { %v1891_v28 = vpop.f32.mrf.mxu1 }
0x11c6   :  { %v1898_v29 = vsel %vm422_vm5, %v1891_v28, -inf }
0x11c7   :  { %1899 = vmax.xlane.f32.xlu0 %v1898_v29  ;;  %v5359_v30 = vpop.f32.mrf.mxu1 }
0x124c   :  { %v1897_v31 = vpop.xlane.xlu1 %1896 }
0x124d   :  { %v1901_v33 = vsub.f32 %v1813_v23, %v1897_v31 }
0x124f   :  { %v1903_v36 = vmul.f32 1.442695, %v1901_v33 }
0x1250   :  { %v1900_v38 = vpop.xlane.xlu0 %1899 }
0x1251   :  { %5691 = vpow2.f32 %v1903_v36  ;;  %v1902_v39 = vsub.f32 %v1891_v28, %v1900_v38  ;;  %v4834_v38 = vld [vmem:[%s6847_s4 + $0x38] sm:$0xff] }
0x1253   :  { %v1905_v41 = vmul.f32 1.442695, %v1902_v39  ;;  %v4833_v39 = vld [vmem:[%s6847_s4 + $0x30] sm:$0xff] }
0x1255   :  { %5693 = vpow2.f32 %v1905_v41  ;;  %v4832_v41 = vld [vmem:[%s6847_s4 + $0x28] sm:$0xff] }
0x125e   :  { %v5692_v43 = vpop.eup %5691 }
0x125f   :  { %v1907_v44 = vsel %vm422_vm5, %v5692_v43, 0.0 }
0x1260   :  { %1908 = vadd.xlane.f32.xlu0 %v1907_v44  ;;  %v4852_v44 = vld [vmem:[%s6848_s5 + $0xf8] sm:$0xff] }
0x1262   :  { %v5694_v45 = vpop.eup %5693 }
0x1263   :  { %v1910_v46 = vsel %vm422_vm5, %v5694_v45, 0.0 }
0x1264   :  { %1911 = vadd.xlane.f32.xlu1 %v1910_v46  ;;  %v4850_v46 = vld [vmem:[%s6848_s5 + $0xe8] sm:$0xff] }
0x1275   :  { %1999 = vrot.lane.b32.xlu1 %v6181_v32, %s5781_s30 }
0x1276   :  { %1923 = vrot.lane.b32.xlu0 %v6183_v34, %s5781_s30 }
0x12e9   :  { %v1909_v24 = vpop.xlane.xlu0 %1908 }
0x12ea   :  { %5695 = vrcp.f32 %v1909_v24 }
0x12ed   :  { %v1912_v52 = vpop.xlane.xlu1 %1911  ;;  %v1924_v53 = vpop.permute.xlu0 %1923 }
0x12ee   :  { %5697 = vrcp.f32 %v1912_v52  ;;  %5361 = vmatpush3.msra.mxu0 %v1924_v53  ;;  %v4847_v53 = vld [vmem:[%s6848_s5 + $0xd0] sm:$0xff] }
0x12ef   :  { %5392 = vmatprep.subr.mxu0 %v4852_v44 }
0x12f1   :  { %v2000_v25 = vpop.permute.xlu1 %1999 }
0x12f2   :  { %5366 = vmatpush3.msra.mxu1 %v2000_v25  ;;  %v4846_v25 = vld [vmem:[%s6848_s5 + $0xc8] sm:$0xff] }
0x12f3   :  { %5370 = vmatprep.subr.mxu1 %v4828_v40 }
0x12f7   :  { %v5696_v55 = vpop.eup %5695 }
0x12f8   :  { %v1915_v57 = vmul.f32 %v5696_v55, %v1909_v24  ;;  %v4849_v24 = vld [vmem:[%s6848_s5 + $0xe0] sm:$0xff] }
0x12fa   :  { %v1917_v58 = vsub.f32 2.0, %v1915_v57  ;;  %v4844_v57 = vld [vmem:[%s6848_s5 + $0xb8] sm:$0xff] }
0x12fb   :  { %v5698_v59 = vpop.eup %5697 }
0x12fc   :  { %v1919_v50 = vmul.f32 %v5696_v55, %v1917_v58  ;;  %v1916_v60 = vmul.f32 %v5698_v59, %v1912_v52  ;;  %v4848_v52 = vld [vmem:[%s6848_s5 + $0xd8] sm:$0xff]  ;;  %v4845_v55 = vld [vmem:[%s6848_s5 + $0xc0] sm:$0xff]  ;;  %v4843_v58 = vld [vmem:[%s6848_s5 + $0xb0] sm:$0xff] }
0x12fe   :  { %v1921_v61 = vmul.f32 %v5692_v43, %v1919_v50  ;;  %v1918_v0 = vsub.f32 2.0, %v1916_v60  ;;  %v4831_v43 = vld [vmem:[%s6847_s4 + $0x20] sm:$0xff] }
0x12ff   :  { %v4841_v50 = vld [vmem:[%s6848_s5 + $0xa0] sm:$0xff] }
0x1300   :  { %v1920_v32 = vmul.f32 %v5698_v59, %v1918_v0  ;;  %5363 = vmatmul.mubr.msk.f32.vlgmr.msra.gmra.mxu0 %vm422_vm5, %v1921_v61  ;;  %v4842_v59 = vld [vmem:[%s6848_s5 + $0xa8] sm:$0xff] }
0x1301   :  { %5393 = vmatpush3.msra.mxu0 %v4852_v44 }
0x1302   :  { %v1922_v34 = vmul.f32 %v5694_v45, %v1920_v32  ;;  %v4851_v45 = vld [vmem:[%s6848_s5 + $0xf0] sm:$0xff] }
0x1303   :  { %5394 = vmatprep.subr.mxu0 %v4851_v45 }
0x1304   :  { %5368 = vmatmul.mubr.msk.f32.vlgmr.msra.gmra.mxu1 %vm422_vm5, %v1922_v34  ;;  %5395 = vmatpush3.msra.mxu0 %v4851_v45 }
0x1305   :  { %5371 = vmatpush3.msra.mxu1 %v4828_v40  ;;  %5396 = vmatprep.subr.mxu0 %v4850_v46 }
0x1306   :  { %5372 = vmatprep.subr.mxu1 %v4827_v1  ;;  %5397 = vmatpush3.msra.mxu0 %v4850_v46 }
0x1307   :  { %5373 = vmatpush3.msra.mxu1 %v4827_v1  ;;  %5398 = vmatprep.subr.mxu0 %v4849_v24 }
0x1308   :  { %5374 = vmatprep.subr.mxu1 %v4826_v42  ;;  %5399 = vmatpush3.msra.mxu0 %v4849_v24 }
0x1309   :  { %5375 = vmatpush3.msra.mxu1 %v4826_v42  ;;  %5400 = vmatprep.subr.mxu0 %v4848_v52  ;;  %v2210_v42 = vrot.slane %v6169_v16, %v6101_v19 }
0x130a   :  { %5376 = vmatprep.subr.mxu1 %v4825_v2  ;;  %5401 = vmatpush3.msra.mxu0 %v4848_v52 }
0x130b   :  { %5377 = vmatpush3.msra.mxu1 %v4825_v2  ;;  %5402 = vmatprep.subr.mxu0 %v4847_v53 }
0x130c   :  { %5381 = vmatprep.subr.mxu1 %v4834_v38  ;;  %5403 = vmatpush3.msra.mxu0 %v4847_v53  ;;  %v4857_v53 = vld [vmem:[%s6845_s2 + $0x58] sm:$0xff] }
0x130d   :  { %5404 = vmatprep.subr.mxu0 %v4846_v25 }
0x130e   :  { %5405 = vmatpush3.msra.mxu0 %v4846_v25  ;;  %v4856_v25 = vld [vmem:[%s6845_s2 + $0x50] sm:$0xff] }
0x130f   :  { %5406 = vmatprep.subr.mxu0 %v4845_v55 }
0x1310   :  { %5407 = vmatpush3.msra.mxu0 %v4845_v55  ;;  %v4855_v55 = vld [vmem:[%s6845_s2 + $0x48] sm:$0xff] }
0x1311   :  { %5408 = vmatprep.subr.mxu0 %v4844_v57 }
0x1312   :  { %5409 = vmatpush3.msra.mxu0 %v4844_v57  ;;  %v4854_v57 = vld [vmem:[%s6845_s2 + $0x40] sm:$0xff] }
0x1313   :  { %5410 = vmatprep.subr.mxu0 %v4843_v58 }
0x1314   :  { %5411 = vmatpush3.msra.mxu0 %v4843_v58 }
0x1315   :  { %5412 = vmatprep.subr.mxu0 %v4842_v59 }
0x1316   :  { %5413 = vmatpush3.msra.mxu0 %v4842_v59 }
0x1317   :  { %5414 = vmatprep.subr.mxu0 %v4841_v50 }
0x1318   :  { %5415 = vmatpush3.msra.mxu0 %v4841_v50 }
0x13c0   :  { %v1995_v5 = vpop.f32.mrf.mxu0 }
0x13c1   :  { %2077 = vrot.lane.b32.xlu1 %v1995_v5, %s5782_s17 }
0x13c2   :  { %v5364_v6 = vpop.f32.mrf.mxu0 }
0x13c4   :  { %v2071_v7 = vpop.f32.mrf.mxu1 }
0x13c5   :  { %2079 = vrot.lane.b32.xlu0 %v2071_v7, %s5782_s17 }
0x13c6   :  { %v5369_v8 = vpop.f32.mrf.mxu1 }
0x13c7   :  { %v2216_v8 = vrot.slane %v6169_v16, %v6106_v21 }
0x1433   :  { %v2078_v9 = vpop.permute.xlu1 %2077 }
0x1434   :  { %2083 = vst.msk [vmem:[#allocation2] sm:$0xff] %vm949_vm6, %v2078_v9 }
0x1437   :  { %v2080_v10 = vpop.permute.xlu0 %2079 }
0x1438   :  { %2084 = vst.msk [vmem:[#allocation2 + $0x8] sm:$0xff] %vm949_vm6, %v2080_v10 }
0x143b   :  { %v2085_v11 = vld [vmem:[#allocation2] sm:$0xff] }
0x143c   :  { %5378 = vmatprep.mubr.msk.f32.mxu1 %vm138_vm2, %v2085_v11 }
0x143f   :  { %v2086_v12 = vld [vmem:[#allocation2 + $0x8] sm:$0xff] }
0x1440   :  { %5379 = vmatmul.mubr.msk.f32.vlgmr.msra.gmra.mxu1 %vm138_vm2, %v2086_v12  ;;  %v4840_v12 = vld [vmem:[%s6848_s5 + $0x98] sm:$0xff] }
0x1441   :  { %5382 = vmatpush3.msra.mxu1 %v4834_v38  ;;  %5416 = vmatprep.subr.mxu0 %v4840_v12 }
0x1442   :  { %5383 = vmatprep.subr.mxu1 %v4833_v39  ;;  %5417 = vmatpush3.msra.mxu0 %v4840_v12 }
0x1443   :  { %5384 = vmatpush3.msra.mxu1 %v4833_v39 }
0x1444   :  { %5385 = vmatprep.subr.mxu1 %v4832_v41 }
0x1445   :  { %5386 = vmatpush3.msra.mxu1 %v4832_v41 }
0x1446   :  { %5387 = vmatprep.subr.mxu1 %v4831_v43 }
0x1447   :  { %5388 = vmatpush3.msra.mxu1 %v4831_v43 }
0x1448   :  { %5427 = vmatprep.subr.mxu1 %v4857_v53 }
0x1500   :  { %v5380_v14 = vpop.f32.mrf.mxu1 }
0x1501   :  { %v2174_v15 = vadd.f32 %v5380_v14, %v6140_v54  ;;  %v4838_v14 = vld [vmem:[%s6848_s5 + $0x88] sm:$0xff] }
0x1502   :  { %v2164_v17 = vpop.f32.mrf.mxu1 }
0x1503   :  { %v6268_v18 = vadd.f32 %v2178_v13, %v2174_v15  ;;  %v2173_v4 = vadd.f32 %v2164_v17, %v6143_v56  ;;  %v4837_v15 = vld [vmem:[%s6848_s5 + $0x80] sm:$0xff]  ;;  %v2227_v17 = vrot.slane %v6169_v16, %v6128_v37 }
0x1505   :  { %v6271_v3 = vadd.f32 %v2178_v13, %v2173_v4  ;;  %v2184_v22 = vsel %vm138_vm2, %v6268_v18, 0.0  ;;  %v4839_v13 = vld [vmem:[%s6848_s5 + $0x90] sm:$0xff] }
0x1506   :  { %2185 = vadd.xlane.f32.xlu0 %v2184_v22  ;;  %5418 = vmatprep.subr.mxu0 %v4839_v13 }
0x1507   :  { %v2181_v23 = vsel %vm138_vm2, %v6271_v3, 0.0  ;;  %5419 = vmatpush3.msra.mxu0 %v4839_v13 }
0x1508   :  { %2182 = vadd.xlane.f32.xlu1 %v2181_v23  ;;  %5420 = vmatprep.subr.mxu0 %v4838_v14 }
0x1509   :  { %5421 = vmatpush3.msra.mxu0 %v4838_v14 }
0x150a   :  { %5422 = vmatprep.subr.mxu0 %v4837_v15 }
0x150b   :  { %5423 = vmatpush3.msra.mxu0 %v4837_v15 }
0x150c   :  { %5468 = vmatprep.subr.mxu0 %v5775_v62 }
0x158f   :  { %v2186_v26 = vpop.xlane.xlu0 %2185 }
0x1590   :  { %v2188_v27 = vmul.f32 0.03125, %v2186_v26 }
0x1591   :  { %v2183_v28 = vpop.xlane.xlu1 %2182 }
0x1592   :  { %v6278_v54 = vsub.f32 %v6268_v18, %v2188_v27  ;;  %v2187_v29 = vmul.f32 0.03125, %v2183_v28 }
0x1594   :  { %v6281_v30 = vsub.f32 %v6271_v3, %v2187_v29  ;;  %v2192_v56 = vmul.f32 %v6278_v54, %v6278_v54 }
0x1596   :  { %v2196_v31 = vsel %vm138_vm2, %v2192_v56, 0.0  ;;  %v2191_v33 = vmul.f32 %v6281_v30, %v6281_v30 }
0x1597   :  { %2197 = vadd.xlane.f32.xlu1 %v2196_v31 }
0x1598   :  { %v2193_v36 = vsel %vm138_vm2, %v2191_v33, 0.0 }
0x1599   :  { %2194 = vadd.xlane.f32.xlu0 %v2193_v36 }
0x1620   :  { %v2198_v60 = vpop.xlane.xlu1 %2197 }
0x1621   :  { %v2200_v61 = vmul.f32 0.03125, %v2198_v60 }
0x1622   :  { %v2195_v0 = vpop.xlane.xlu0 %2194 }
0x1623   :  { %v2202_v32 = vadd.f32 1e-05, %v2200_v61  ;;  %v2199_v34 = vmul.f32 0.03125, %v2195_v0 }
0x1625   :  { %5699 = vrsqrt.f32 %v2202_v32  ;;  %v2201_v40 = vadd.f32 1e-05, %v2199_v34  ;;  %v6394_v32 = vld [vmem:[%s6850_s7 + $0x10] sm:$0xff] }
0x1627   :  { %5701 = vrsqrt.f32 %v2201_v40  ;;  %v2440_v40 = vrot.slane %v6394_v32, %v5914_v49 }
0x1632   :  { %v5700_v1 = vpop.eup %5699 }
0x1633   :  { %v2206_v2 = vmul.f32 %v5700_v1, %v6278_v54  ;;  %v2331_v54 = vrot.slane %v6169_v16, %v6135_v47 }
0x1634   :  { %v5702_v5 = vpop.eup %5701 }
0x1635   :  { %v2205_v6 = vmul.f32 %v5702_v5, %v6281_v30  ;;  %v2212_v7 = vmul.f32 %v2210_v42, %v2206_v2 }
0x1637   :  { %v2211_v9 = vmul.f32 %v2210_v42, %v2205_v6  ;;  %v2218_v11 = vadd.f32 %v2216_v8, %v2212_v7  ;;  %v2446_v6 = vrot.slane %v6394_v32, %v5922_v51 }
0x1639   :  { %v2217_v10 = vadd.f32 %v2216_v8, %v2211_v9 }
0x163b   :  { %5389 = vmatprep.mubr.msk.f32.mxu1 %vm138_vm2, %v2217_v10  ;;  %v2457_v10 = vrot.slane %v6394_v32, %v5937_v63 }
0x163c   :  { %5390 = vmatmul.mubr.msk.f32.vlgmr.msra.gmra.mxu1 %vm138_vm2, %v2218_v11 }
0x163d   :  { %5428 = vmatpush3.msra.mxu1 %v4857_v53 }
0x163e   :  { %5429 = vmatprep.subr.mxu1 %v4856_v25 }
0x163f   :  { %5430 = vmatpush3.msra.mxu1 %v4856_v25 }
0x1640   :  { %5431 = vmatprep.subr.mxu1 %v4855_v55 }
0x1641   :  { %5432 = vmatpush3.msra.mxu1 %v4855_v55 }
0x1642   :  { %5433 = vmatprep.subr.mxu1 %v4854_v57 }
0x1643   :  { %5434 = vmatpush3.msra.mxu1 %v4854_v57 }
0x1644   :  { %5438 = vmatprep.subr.mxu1 %v5775_v62 }
0x16fc   :  { %v5391_v4 = vpop.f32.mrf.mxu1 }
0x16fd   :  { %v2306_v22 = vadd.f32 %v5391_v4, %v2227_v17 }
0x16fe   :  { %v2300_v23 = vpop.f32.mrf.mxu1 }
0x16ff   :  { %v2301_v26 = vadd.f32 %v2300_v23, %v2227_v17  ;;  %v2310_v28 = vmax.f32 %v2306_v22, 0.0 }
0x1701   :  { %v2309_v27 = vmax.f32 %v2301_v26, 0.0 }
0x1703   :  { %5424 = vmatprep.mubr.f32.mxu0 %v2309_v27 }
0x1704   :  { %5425 = vmatmul.mubr.f32.vlgmr.msra.gmra.mxu0 %v2310_v28 }
0x1705   :  { %5470 = vmatprep.mubr.msk.f32.mxu0 %vm5776_vm3, %v5775_v62 }
0x17c4   :  { %v5426_v29 = vpop.f32.mrf.mxu0 }
0x17c5   :  { %v2404_v30 = vadd.f32 %v5426_v29, %v2331_v54 }
0x17c6   :  { %v2398_v56 = vpop.f32.mrf.mxu0 }
0x17c7   :  { %v6365_v31 = vadd.f32 %v2404_v30, %v6268_v18  ;;  %v2399_v33 = vadd.f32 %v2398_v56, %v2331_v54 }
0x17c9   :  { %v6368_v36 = vadd.f32 %v2399_v33, %v6271_v3  ;;  %v2414_v38 = vsel %vm138_vm2, %v6365_v31, 0.0 }
0x17ca   :  { %2415 = vadd.xlane.f32.xlu1 %v2414_v38 }
0x17cb   :  { %v2411_v39 = vsel %vm138_vm2, %v6368_v36, 0.0 }
0x17cc   :  { %2412 = vadd.xlane.f32.xlu0 %v2411_v39 }
0x1853   :  { %v2416_v41 = vpop.xlane.xlu1 %2415 }
0x1854   :  { %v2418_v16 = vmul.f32 0.03125, %v2416_v41 }
0x1855   :  { %v2413_v43 = vpop.xlane.xlu0 %2412 }
0x1856   :  { %v2420_v44 = vsub.f32 %v6365_v31, %v2418_v16  ;;  %v2417_v45 = vmul.f32 0.03125, %v2413_v43 }
0x1858   :  { %v2419_v18 = vsub.f32 %v6368_v36, %v2417_v45  ;;  %v2422_v46 = vmul.f32 %v2420_v44, %v2420_v44 }
0x185a   :  { %v2426_v3 = vsel %vm138_vm2, %v2422_v46, 0.0  ;;  %v2421_v24 = vmul.f32 %v2419_v18, %v2419_v18 }
0x185b   :  { %2427 = vadd.xlane.f32.xlu1 %v2426_v3 }
0x185c   :  { %v2423_v52 = vsel %vm138_vm2, %v2421_v24, 0.0 }
0x185d   :  { %2424 = vadd.xlane.f32.xlu0 %v2423_v52 }
0x18e4   :  { %v2428_v58 = vpop.xlane.xlu1 %2427 }
0x18e5   :  { %v2430_v59 = vmul.f32 0.03125, %v2428_v58 }
0x18e6   :  { %v2425_v50 = vpop.xlane.xlu0 %2424 }
0x18e7   :  { %v2432_v60 = vadd.f32 1e-05, %v2430_v59  ;;  %v2429_v61 = vmul.f32 0.03125, %v2425_v50 }
0x18e9   :  { %5703 = vrsqrt.f32 %v2432_v60  ;;  %v2431_v0 = vadd.f32 1e-05, %v2429_v61 }
0x18eb   :  { %5705 = vrsqrt.f32 %v2431_v0 }
0x18f6   :  { %v5704_v34 = vpop.eup %5703 }
0x18f7   :  { %v2436_v1 = vmul.f32 %v5704_v34, %v2420_v44 }
0x18f8   :  { %v5706_v42 = vpop.eup %5705 }
0x18f9   :  { %v2435_v2 = vmul.f32 %v5706_v42, %v2419_v18  ;;  %v2442_v5 = vmul.f32 %v2440_v40, %v2436_v1 }
0x18fb   :  { %v2441_v7 = vmul.f32 %v2440_v40, %v2435_v2  ;;  %v2448_v9 = vadd.f32 %v2446_v6, %v2442_v5 }
0x18fd   :  { %v2447_v8 = vadd.f32 %v2446_v6, %v2441_v7 }
0x18ff   :  { %5435 = vmatprep.mubr.msk.f32.mxu1 %vm138_vm2, %v2447_v8 }
0x1900   :  { %5436 = vmatmul.mubr.msk.f32.vlgmr.msra.gmra.mxu1 %vm138_vm2, %v2448_v9 }
0x1901   :  { %5440 = vmatprep.mubr.msk.f32.mxu1 %vm5776_vm3, %v5775_v62 }
0x19c0   :  { %v5437_v11 = vpop.f32.mrf.mxu1 }
0x19c1   :  { %v6406_v12 = vadd.f32 %v5437_v11, %v2457_v10 }
0x19c2   :  { %v2530_v13 = vpop.f32.mrf.mxu1 }
0x19c3   :  { %v6408_v14 = vadd.f32 %v2530_v13, %v2457_v10  ;;  %2617 = vrot.lane.b32.xlu1 %v6406_v12, %s5777_s26 }
0x19c5   :  { %2540 = vrot.lane.b32.xlu0 %v6408_v14, %s5777_s26 }
0x1a35   :  { %v2618_v17 = vpop.permute.xlu1 %2617 }
0x1a37   :  { %v2541_v15 = vpop.permute.xlu0 %2540 }
0x1a38   :  { %5439 = vmatpush3.xpose.msk.msra.mxu1 %vm270_vm4, %v2541_v15 }
0x1a39   :  { %5443 = vmatprep.subr.mxu1 %v5775_v62 }
0x1a3b   :  { %5441 = vmatmul.mubr.msk.f32.vlgmr.msra.gmra.mxu1 %vm270_vm4, %v6408_v14 }
0x1a3c   :  { %5444 = vmatpush3.xpose.msk.msra.mxu1 %vm270_vm4, %v2618_v17  ;;  %5445 = vmatprep.mubr.msk.f32.mxu1 %vm5776_vm3, %v5775_v62 }
0x1a3d   :  { %5448 = vmatprep.subr.mxu1 %v5775_v62 }
0x1a3f   :  { %5446 = vmatmul.mubr.msk.f32.vlgmr.msra.gmra.mxu1 %vm270_vm4, %v6406_v12 }
0x1a40   :  { %5450 = vmatprep.mubr.msk.f32.mxu1 %vm5776_vm3, %v5775_v62 }
0x1afb   :  { %v2612_v4 = vpop.f32.mrf.mxu1 }
0x1afc   :  { %v2693_v22 = vsel %vm422_vm5, %v2612_v4, -inf }
0x1afd   :  { %2694 = vmax.xlane.f32.xlu1 %v2693_v22  ;;  %v5442_v23 = vpop.f32.mrf.mxu1 }
0x1aff   :  { %v2689_v26 = vpop.f32.mrf.mxu1 }
0x1b00   :  { %v2696_v27 = vsel %vm422_vm5, %v2689_v26, -inf }
0x1b01   :  { %2697 = vmax.xlane.f32.xlu0 %v2696_v27  ;;  %v5447_v28 = vpop.f32.mrf.mxu1 }
0x1b0e   :  { %2797 = vrot.lane.b32.xlu1 %v6406_v12, %s5778_s27 }
0x1b86   :  { %v2695_v54 = vpop.xlane.xlu1 %2694 }
0x1b87   :  { %v2699_v29 = vsub.f32 %v2612_v4, %v2695_v54 }
0x1b89   :  { %v2701_v30 = vmul.f32 1.442695, %v2699_v29 }
0x1b8a   :  { %v2698_v56 = vpop.xlane.xlu0 %2697  ;;  %v2798_v44 = vpop.permute.xlu1 %2797 }
0x1b8b   :  { %5707 = vpow2.f32 %v2701_v30  ;;  %v2700_v33 = vsub.f32 %v2689_v26, %v2698_v56 }
0x1b8d   :  { %v2703_v38 = vmul.f32 1.442695, %v2700_v33 }
0x1b8f   :  { %5709 = vpow2.f32 %v2703_v38 }
0x1b98   :  { %v5708_v39 = vpop.eup %5707 }
0x1b99   :  { %v2705_v41 = vsel %vm422_vm5, %v5708_v39, 0.0 }
0x1b9a   :  { %2706 = vadd.xlane.f32.xlu0 %v2705_v41 }
0x1b9c   :  { %v5710_v16 = vpop.eup %5709 }
0x1b9d   :  { %v2708_v43 = vsel %vm422_vm5, %v5710_v16, 0.0 }
0x1b9e   :  { %2709 = vadd.xlane.f32.xlu1 %v2708_v43 }
0x1baf   :  { %2877 = vrot.lane.b32.xlu1 %v6408_v14, %s5779_s28 }
0x1bb0   :  { %2721 = vrot.lane.b32.xlu0 %v6408_v14, %s5778_s27 }
0x1bb3   :  { %2955 = vrot.lane.b32.xlu1 %v6406_v12, %s5779_s28 }
0x1bb4   :  { %2875 = vrot.lane.b32.xlu0 %v6408_v14, %s5780_s29 }
0x1bb8   :  { %2953 = vrot.lane.b32.xlu0 %v6406_v12, %s5780_s29 }
0x1c23   :  { %v2707_v45 = vpop.xlane.xlu0 %2706 }
0x1c24   :  { %5711 = vrcp.f32 %v2707_v45 }
0x1c27   :  { %v2710_v18 = vpop.xlane.xlu1 %2709  ;;  %v2722_v46 = vpop.permute.xlu0 %2721 }
0x1c28   :  { %5713 = vrcp.f32 %v2710_v18  ;;  %5449 = vmatpush3.msra.mxu1 %v2722_v46  ;;  %v4874_v46 = vld [vmem:[%s6846_s3 + $0x50] sm:$0xff] }
0x1c29   :  { %5453 = vmatprep.subr.mxu1 %v5775_v62 }
0x1c2b   :  { %v2878_v60 = vpop.permute.xlu1 %2877  ;;  %v2876_v61 = vpop.permute.xlu0 %2875 }
0x1c2f   :  { %v2956_v0 = vpop.permute.xlu1 %2955  ;;  %v2954_v34 = vpop.permute.xlu0 %2953 }
0x1c31   :  { %v5712_v3 = vpop.eup %5711 }
0x1c32   :  { %v2713_v24 = vmul.f32 %v5712_v3, %v2707_v45 }
0x1c34   :  { %v2715_v52 = vsub.f32 2.0, %v2713_v24  ;;  %v4872_v24 = vld [vmem:[%s6846_s3 + $0x40] sm:$0xff] }
0x1c35   :  { %v5714_v53 = vpop.eup %5713 }
0x1c36   :  { %v2717_v25 = vmul.f32 %v5712_v3, %v2715_v52  ;;  %v2714_v55 = vmul.f32 %v5714_v53, %v2710_v18  ;;  %v4875_v18 = vld [vmem:[%s6846_s3 + $0x58] sm:$0xff]  ;;  %v4873_v3 = vld [vmem:[%s6846_s3 + $0x48] sm:$0xff] }
0x1c38   :  { %v2719_v57 = vmul.f32 %v5708_v39, %v2717_v25  ;;  %v2716_v58 = vsub.f32 2.0, %v2714_v55 }
0x1c3a   :  { %v2718_v59 = vmul.f32 %v5714_v53, %v2716_v58  ;;  %5451 = vmatmul.mubr.msk.f32.vlgmr.msra.gmra.mxu1 %vm422_vm5, %v2719_v57 }
0x1c3b   :  { %5454 = vmatpush3.msra.mxu1 %v2798_v44  ;;  %5455 = vmatprep.mubr.msk.f32.mxu1 %vm5776_vm3, %v5775_v62 }
0x1c3c   :  { %v2720_v50 = vmul.f32 %v5710_v16, %v2718_v59  ;;  %5458 = vmatprep.subr.mxu1 %v5775_v62 }
0x1c3e   :  { %5456 = vmatmul.mubr.msk.f32.vlgmr.msra.gmra.mxu1 %vm422_vm5, %v2720_v50 }
0x1c3f   :  { %5459 = vmatpush3.xpose.msk.msra.mxu1 %vm270_vm4, %v2878_v60  ;;  %5460 = vmatprep.mubr.msk.f32.mxu1 %vm5776_vm3, %v5775_v62  ;;  %v3314_v60 = vrot.slane %v6394_v32, %v6026_v35 }
0x1c40   :  { %5463 = vmatprep.subr.mxu1 %v5775_v62 }
0x1c42   :  { %5461 = vmatmul.mubr.msk.f32.vlgmr.msra.gmra.mxu1 %vm270_vm4, %v2876_v61 }
0x1c43   :  { %5464 = vmatpush3.xpose.msk.msra.mxu1 %vm270_vm4, %v2956_v0  ;;  %5465 = vmatprep.mubr.msk.f32.mxu1 %vm5776_vm3, %v5775_v62 }
0x1c44   :  { %5473 = vmatprep.subr.mxu1 %v5775_v62 }
0x1c46   :  { %5466 = vmatmul.mubr.msk.f32.vlgmr.msra.gmra.mxu1 %vm270_vm4, %v2954_v34 }
0x1c47   :  { %5475 = vmatprep.mubr.msk.f32.mxu1 %vm5776_vm3, %v5775_v62 }
0x1cfa   :  { %v2793_v40 = vpop.f32.mrf.mxu1 }
0x1cfb   :  { %2873 = vst.msk [vmem:[#allocation2] sm:$0xff] %vm270_vm4, %v2793_v40 }
0x1cfc   :  { %v5452_v1 = vpop.f32.mrf.mxu1 }
0x1cfe   :  { %v2869_v42 = vpop.f32.mrf.mxu1 }
0x1cff   :  { %2874 = vst.msk [vmem:[#allocation2 + $0x8] sm:$0xff] %vm270_vm4, %v2869_v42 }
0x1d00   :  { %v5457_v2 = vpop.f32.mrf.mxu1 }
0x1d02   :  { %v2949_v5 = vpop.f32.mrf.mxu1 }
0x1d03   :  { %v3031_v6 = vsel %vm422_vm5, %v2949_v5, -inf }
0x1d04   :  { %3032 = vmax.xlane.f32.xlu1 %v3031_v6  ;;  %v5462_v7 = vpop.f32.mrf.mxu1 }
0x1d06   :  { %v3027_v8 = vpop.f32.mrf.mxu1 }
0x1d07   :  { %v3034_v9 = vsel %vm422_vm5, %v3027_v8, -inf }
0x1d08   :  { %3035 = vmax.xlane.f32.xlu0 %v3034_v9  ;;  %v5467_v10 = vpop.f32.mrf.mxu1 }
0x1d8d   :  { %v3033_v11 = vpop.xlane.xlu1 %3032 }
0x1d8e   :  { %v3037_v13 = vsub.f32 %v2949_v5, %v3033_v11 }
0x1d90   :  { %v3039_v15 = vmul.f32 1.442695, %v3037_v13 }
0x1d91   :  { %v3036_v17 = vpop.xlane.xlu0 %3035 }
0x1d92   :  { %5715 = vpow2.f32 %v3039_v15  ;;  %v3038_v4 = vsub.f32 %v3027_v8, %v3036_v17  ;;  %v4881_v17 = vld [vmem:[%s6847_s4 + $0x58] sm:$0xff] }
0x1d94   :  { %v3041_v22 = vmul.f32 1.442695, %v3038_v4  ;;  %v4880_v4 = vld [vmem:[%s6847_s4 + $0x50] sm:$0xff] }
0x1d96   :  { %5717 = vpow2.f32 %v3041_v22  ;;  %v4879_v22 = vld [vmem:[%s6847_s4 + $0x48] sm:$0xff] }
0x1d9f   :  { %v5716_v23 = vpop.eup %5715 }
0x1da0   :  { %v3043_v26 = vsel %vm422_vm5, %v5716_v23, 0.0 }
0x1da1   :  { %3044 = vadd.xlane.f32.xlu0 %v3043_v26  ;;  %v4899_v26 = vld [vmem:[%s6848_s5 + $0x178] sm:$0xff] }
0x1da3   :  { %v5718_v27 = vpop.eup %5717 }
0x1da4   :  { %v3046_v28 = vsel %vm422_vm5, %v5718_v27, 0.0 }
0x1da5   :  { %3047 = vadd.xlane.f32.xlu1 %v3046_v28  ;;  %v4897_v28 = vld [vmem:[%s6848_s5 + $0x168] sm:$0xff] }
0x1db6   :  { %3135 = vrot.lane.b32.xlu1 %v6406_v12, %s5781_s30 }
0x1db7   :  { %3059 = vrot.lane.b32.xlu0 %v6408_v14, %s5781_s30 }
0x1e2a   :  { %v3045_v54 = vpop.xlane.xlu0 %3044 }
0x1e2b   :  { %5719 = vrcp.f32 %v3045_v54 }
0x1e2e   :  { %v3048_v29 = vpop.xlane.xlu1 %3047  ;;  %v3060_v30 = vpop.permute.xlu0 %3059 }
0x1e2f   :  { %5721 = vrcp.f32 %v3048_v29  ;;  %5469 = vmatpush3.msra.mxu0 %v3060_v30  ;;  %v4894_v30 = vld [vmem:[%s6848_s5 + $0x150] sm:$0xff] }
0x1e30   :  { %5478 = vmatprep.subr.mxu0 %v4875_v18 }
0x1e32   :  { %v3136_v56 = vpop.permute.xlu1 %3135 }
0x1e33   :  { %5474 = vmatpush3.msra.mxu1 %v3136_v56  ;;  %v4893_v56 = vld [vmem:[%s6848_s5 + $0x148] sm:$0xff] }
0x1e34   :  { %5489 = vmatprep.subr.mxu1 %v4881_v17 }
0x1e38   :  { %v5720_v33 = vpop.eup %5719 }
0x1e39   :  { %v3051_v38 = vmul.f32 %v5720_v33, %v3045_v54  ;;  %v4896_v54 = vld [vmem:[%s6848_s5 + $0x160] sm:$0xff] }
0x1e3b   :  { %v3053_v39 = vsub.f32 2.0, %v3051_v38  ;;  %v4891_v38 = vld [vmem:[%s6848_s5 + $0x138] sm:$0xff] }
0x1e3c   :  { %v5722_v41 = vpop.eup %5721 }
0x1e3d   :  { %v3055_v16 = vmul.f32 %v5720_v33, %v3053_v39  ;;  %v3052_v43 = vmul.f32 %v5722_v41, %v3048_v29  ;;  %v4895_v29 = vld [vmem:[%s6848_s5 + $0x158] sm:$0xff]  ;;  %v4892_v33 = vld [vmem:[%s6848_s5 + $0x140] sm:$0xff]  ;;  %v4890_v39 = vld [vmem:[%s6848_s5 + $0x130] sm:$0xff] }
0x1e3f   :  { %v3057_v44 = vmul.f32 %v5716_v23, %v3055_v16  ;;  %v3054_v45 = vsub.f32 2.0, %v3052_v43  ;;  %v4878_v23 = vld [vmem:[%s6847_s4 + $0x40] sm:$0xff] }
0x1e40   :  { %v4888_v16 = vld [vmem:[%s6848_s5 + $0x120] sm:$0xff] }
0x1e41   :  { %v3056_v12 = vmul.f32 %v5722_v41, %v3054_v45  ;;  %5471 = vmatmul.mubr.msk.f32.vlgmr.msra.gmra.mxu0 %vm422_vm5, %v3057_v44  ;;  %v4889_v41 = vld [vmem:[%s6848_s5 + $0x128] sm:$0xff] }
0x1e42   :  { %5479 = vmatpush3.msra.mxu0 %v4875_v18 }
0x1e43   :  { %v3058_v14 = vmul.f32 %v5718_v27, %v3056_v12  ;;  %5480 = vmatprep.subr.mxu0 %v4874_v46  ;;  %v4898_v27 = vld [vmem:[%s6848_s5 + $0x170] sm:$0xff] }
0x1e44   :  { %5481 = vmatpush3.msra.mxu0 %v4874_v46 }
0x1e45   :  { %5476 = vmatmul.mubr.msk.f32.vlgmr.msra.gmra.mxu1 %vm422_vm5, %v3058_v14  ;;  %5482 = vmatprep.subr.mxu0 %v4873_v3 }
0x1e46   :  { %5483 = vmatpush3.msra.mxu0 %v4873_v3  ;;  %5490 = vmatpush3.msra.mxu1 %v4881_v17  ;;  %v3346_v3 = vrot.slane %v6394_v32, %v6101_v19 }
0x1e47   :  { %5484 = vmatprep.subr.mxu0 %v4872_v24  ;;  %5491 = vmatprep.subr.mxu1 %v4880_v4 }
0x1e48   :  { %5485 = vmatpush3.msra.mxu0 %v4872_v24  ;;  %5492 = vmatpush3.msra.mxu1 %v4880_v4 }
0x1e49   :  { %5493 = vmatprep.subr.mxu1 %v4879_v22  ;;  %5500 = vmatprep.subr.mxu0 %v4899_v26 }
0x1e4a   :  { %5494 = vmatpush3.msra.mxu1 %v4879_v22 }
0x1e4b   :  { %5495 = vmatprep.subr.mxu1 %v4878_v23 }
0x1e4c   :  { %5496 = vmatpush3.msra.mxu1 %v4878_v23 }
0x1f01   :  { %v3131_v52 = vpop.f32.mrf.mxu0 }
0x1f02   :  { %3213 = vrot.lane.b32.xlu1 %v3131_v52, %s5782_s17 }
0x1f03   :  { %v5472_v53 = vpop.f32.mrf.mxu0 }
0x1f05   :  { %v3207_v25 = vpop.f32.mrf.mxu1 }
0x1f06   :  { %3215 = vrot.lane.b32.xlu0 %v3207_v25, %s5782_s17 }
0x1f07   :  { %v5477_v55 = vpop.f32.mrf.mxu1 }
0x1f08   :  { %v3352_v55 = vrot.slane %v6394_v32, %v6106_v21 }
0x1f74   :  { %v3214_v57 = vpop.permute.xlu1 %3213 }
0x1f75   :  { %3219 = vst.msk [vmem:[#allocation2] sm:$0xff] %vm949_vm6, %v3214_v57 }
0x1f78   :  { %v3216_v58 = vpop.permute.xlu0 %3215 }
0x1f79   :  { %3220 = vst.msk [vmem:[#allocation2 + $0x8] sm:$0xff] %vm949_vm6, %v3216_v58 }
0x1f7c   :  { %v3221_v59 = vld [vmem:[#allocation2] sm:$0xff] }
0x1f7d   :  { %5486 = vmatprep.mubr.msk.f32.mxu0 %vm138_vm2, %v3221_v59 }
0x1f80   :  { %v3222_v50 = vld [vmem:[#allocation2 + $0x8] sm:$0xff] }
0x1f81   :  { %5487 = vmatmul.mubr.msk.f32.vlgmr.msra.gmra.mxu0 %vm138_vm2, %v3222_v50  ;;  %v4887_v50 = vld [vmem:[%s6848_s5 + $0x118] sm:$0xff] }
0x1f82   :  { %5501 = vmatpush3.msra.mxu0 %v4899_v26 }
0x1f83   :  { %5502 = vmatprep.subr.mxu0 %v4898_v27 }
0x1f84   :  { %5503 = vmatpush3.msra.mxu0 %v4898_v27 }
0x1f85   :  { %5504 = vmatprep.subr.mxu0 %v4897_v28 }
0x1f86   :  { %5505 = vmatpush3.msra.mxu0 %v4897_v28 }
0x1f87   :  { %5506 = vmatprep.subr.mxu0 %v4896_v54 }
0x1f88   :  { %5507 = vmatpush3.msra.mxu0 %v4896_v54 }
0x1f89   :  { %5508 = vmatprep.subr.mxu0 %v4895_v29 }
0x1f8a   :  { %5509 = vmatpush3.msra.mxu0 %v4895_v29 }
0x1f8b   :  { %5510 = vmatprep.subr.mxu0 %v4894_v30 }
0x1f8c   :  { %5511 = vmatpush3.msra.mxu0 %v4894_v30  ;;  %v4904_v30 = vld [vmem:[%s6845_s2 + $0x78] sm:$0xff] }
0x1f8d   :  { %5512 = vmatprep.subr.mxu0 %v4893_v56  ;;  %5535 = vmatprep.subr.mxu1 %v4904_v30 }
0x1f8e   :  { %5513 = vmatpush3.msra.mxu0 %v4893_v56  ;;  %v4903_v56 = vld [vmem:[%s6845_s2 + $0x70] sm:$0xff] }
0x1f8f   :  { %5514 = vmatprep.subr.mxu0 %v4892_v33 }
0x1f90   :  { %5515 = vmatpush3.msra.mxu0 %v4892_v33  ;;  %v4902_v33 = vld [vmem:[%s6845_s2 + $0x68] sm:$0xff] }
0x1f91   :  { %5516 = vmatprep.subr.mxu0 %v4891_v38 }
0x1f92   :  { %5517 = vmatpush3.msra.mxu0 %v4891_v38  ;;  %v4901_v38 = vld [vmem:[%s6845_s2 + $0x60] sm:$0xff]  ;;  %s5783_s2 = smov [#allocation3]  }
0x1f93   :  { %5518 = vmatprep.subr.mxu0 %v4890_v39 }
0x1f94   :  { %5519 = vmatpush3.msra.mxu0 %v4890_v39 }
0x1f95   :  { %5520 = vmatprep.subr.mxu0 %v4889_v41 }
0x1f96   :  { %5521 = vmatpush3.msra.mxu0 %v4889_v41 }
0x1f97   :  { %5522 = vmatprep.subr.mxu0 %v4888_v16 }
0x1f98   :  { %5523 = vmatpush3.msra.mxu0 %v4888_v16 }
0x1f99   :  { %5524 = vmatprep.subr.mxu0 %v4887_v50 }
0x1f9a   :  { %5525 = vmatpush3.msra.mxu0 %v4887_v50 }
0x2041   :  { %v5488_v61 = vpop.f32.mrf.mxu0 }
0x2042   :  { %v3310_v0 = vadd.f32 %v5488_v61, %v6365_v31  ;;  %v4885_v61 = vld [vmem:[%s6848_s5 + $0x108] sm:$0xff] }
0x2043   :  { %v3300_v34 = vpop.f32.mrf.mxu0 }
0x2044   :  { %v6493_v40 = vadd.f32 %v3314_v60, %v3310_v0  ;;  %v3309_v1 = vadd.f32 %v3300_v34, %v6368_v36  ;;  %v4884_v0 = vld [vmem:[%s6848_s5 + $0x100] sm:$0xff]  ;;  %v3363_v34 = vrot.slane %v6394_v32, %v6128_v37 }
0x2046   :  { %v6496_v42 = vadd.f32 %v3314_v60, %v3309_v1  ;;  %v3320_v2 = vsel %vm138_vm2, %v6493_v40, 0.0  ;;  %v4886_v60 = vld [vmem:[%s6848_s5 + $0x110] sm:$0xff] }
0x2047   :  { %3321 = vadd.xlane.f32.xlu0 %v3320_v2  ;;  %5526 = vmatprep.subr.mxu0 %v4886_v60 }
0x2048   :  { %v3317_v5 = vsel %vm138_vm2, %v6496_v42, 0.0  ;;  %5527 = vmatpush3.msra.mxu0 %v4886_v60 }
0x2049   :  { %3318 = vadd.xlane.f32.xlu1 %v3317_v5  ;;  %5528 = vmatprep.subr.mxu0 %v4885_v61 }
0x204a   :  { %5529 = vmatpush3.msra.mxu0 %v4885_v61 }
0x204b   :  { %5530 = vmatprep.subr.mxu0 %v4884_v0 }
0x204c   :  { %5531 = vmatpush3.msra.mxu0 %v4884_v0 }
0x204d   :  { %5576 = vmatprep.subr.mxu0 %v5775_v62 }
0x20d0   :  { %v3322_v6 = vpop.xlane.xlu0 %3321 }
0x20d1   :  { %v3324_v7 = vmul.f32 0.03125, %v3322_v6 }
0x20d2   :  { %v3319_v8 = vpop.xlane.xlu1 %3318 }
0x20d3   :  { %v6503_v31 = vsub.f32 %v6493_v40, %v3324_v7  ;;  %v3323_v9 = vmul.f32 0.03125, %v3319_v8 }
0x20d5   :  { %v6506_v10 = vsub.f32 %v6496_v42, %v3323_v9  ;;  %v3328_v36 = vmul.f32 %v6503_v31, %v6503_v31 }
0x20d7   :  { %v3332_v11 = vsel %vm138_vm2, %v3328_v36, 0.0  ;;  %v3327_v13 = vmul.f32 %v6506_v10, %v6506_v10 }
0x20d8   :  { %3333 = vadd.xlane.f32.xlu1 %v3332_v11 }
0x20d9   :  { %v3329_v15 = vsel %vm138_vm2, %v3327_v13, 0.0 }
0x20da   :  { %3330 = vadd.xlane.f32.xlu0 %v3329_v15 }
0x2161   :  { %v3334_v43 = vpop.xlane.xlu1 %3333 }
0x2162   :  { %v3336_v44 = vmul.f32 0.03125, %v3334_v43 }
0x2163   :  { %v3331_v45 = vpop.xlane.xlu0 %3330 }
0x2164   :  { %v3338_v12 = vadd.f32 1e-05, %v3336_v44  ;;  %v3335_v14 = vmul.f32 0.03125, %v3331_v45 }
0x2166   :  { %5723 = vrsqrt.f32 %v3338_v12  ;;  %v3337_v18 = vadd.f32 1e-05, %v3335_v14  ;;  %v6619_v12 = vld [vmem:[%s6850_s7 + $0x18] sm:$0xff] }
0x2168   :  { %5725 = vrsqrt.f32 %v3337_v18  ;;  %v3576_v18 = vrot.slane %v6619_v12, %v5914_v49 }
0x2173   :  { %v5724_v46 = vpop.eup %5723 }
0x2174   :  { %v3342_v24 = vmul.f32 %v5724_v46, %v6503_v31  ;;  %v3467_v31 = vrot.slane %v6394_v32, %v6135_v47 }
0x2175   :  { %v5726_v52 = vpop.eup %5725 }
0x2176   :  { %v3341_v53 = vmul.f32 %v5726_v52, %v6506_v10  ;;  %v3348_v25 = vmul.f32 %v3346_v3, %v3342_v24 }
0x2178   :  { %v3347_v57 = vmul.f32 %v3346_v3, %v3341_v53  ;;  %v3354_v59 = vadd.f32 %v3352_v55, %v3348_v25  ;;  %v3582_v53 = vrot.slane %v6619_v12, %v5922_v51 }
0x217a   :  { %v3353_v58 = vadd.f32 %v3352_v55, %v3347_v57 }
0x217c   :  { %5497 = vmatprep.mubr.msk.f32.mxu1 %vm138_vm2, %v3353_v58  ;;  %v3593_v58 = vrot.slane %v6619_v12, %v5937_v63 }
0x217d   :  { %5498 = vmatmul.mubr.msk.f32.vlgmr.msra.gmra.mxu1 %vm138_vm2, %v3354_v59 }
0x217e   :  { %5536 = vmatpush3.msra.mxu1 %v4904_v30 }
0x217f   :  { %5537 = vmatprep.subr.mxu1 %v4903_v56 }
0x2180   :  { %5538 = vmatpush3.msra.mxu1 %v4903_v56 }
0x2181   :  { %5539 = vmatprep.subr.mxu1 %v4902_v33 }
0x2182   :  { %5540 = vmatpush3.msra.mxu1 %v4902_v33 }
0x2183   :  { %5541 = vmatprep.subr.mxu1 %v4901_v38 }
0x2184   :  { %5542 = vmatpush3.msra.mxu1 %v4901_v38 }
0x2185   :  { %5546 = vmatprep.subr.mxu1 %v5775_v62 }
0x223d   :  { %v5499_v1 = vpop.f32.mrf.mxu1 }
0x223e   :  { %v3442_v2 = vadd.f32 %v5499_v1, %v3363_v34 }
0x223f   :  { %v3436_v5 = vpop.f32.mrf.mxu1 }
0x2240   :  { %v3437_v6 = vadd.f32 %v3436_v5, %v3363_v34  ;;  %v3446_v8 = vmax.f32 %v3442_v2, 0.0 }
0x2242   :  { %v3445_v7 = vmax.f32 %v3437_v6, 0.0 }
0x2244   :  { %5532 = vmatprep.mubr.f32.mxu0 %v3445_v7 }
0x2245   :  { %5533 = vmatmul.mubr.f32.vlgmr.msra.gmra.mxu0 %v3446_v8 }
0x2246   :  { %5578 = vmatprep.mubr.msk.f32.mxu0 %vm5776_vm3, %v5775_v62 }
0x2305   :  { %v5534_v9 = vpop.f32.mrf.mxu0 }
0x2306   :  { %v3540_v10 = vadd.f32 %v5534_v9, %v3467_v31 }
0x2307   :  { %v3534_v36 = vpop.f32.mrf.mxu0 }
0x2308   :  { %v6590_v11 = vadd.f32 %v3540_v10, %v6493_v40  ;;  %v3535_v13 = vadd.f32 %v3534_v36, %v3467_v31 }
0x230a   :  { %v6593_v15 = vadd.f32 %v3535_v13, %v6496_v42  ;;  %v3550_v17 = vsel %vm138_vm2, %v6590_v11, 0.0 }
0x230b   :  { %3551 = vadd.xlane.f32.xlu1 %v3550_v17 }
0x230c   :  { %v3547_v4 = vsel %vm138_vm2, %v6593_v15, 0.0 }
0x230d   :  { %3548 = vadd.xlane.f32.xlu0 %v3547_v4 }
0x2394   :  { %v3552_v22 = vpop.xlane.xlu1 %3551 }
0x2395   :  { %v3554_v32 = vmul.f32 0.03125, %v3552_v22 }
0x2396   :  { %v3549_v23 = vpop.xlane.xlu0 %3548 }
0x2397   :  { %v3556_v26 = vsub.f32 %v6590_v11, %v3554_v32  ;;  %v3553_v27 = vmul.f32 0.03125, %v3549_v23 }
0x2399   :  { %v3555_v40 = vsub.f32 %v6593_v15, %v3553_v27  ;;  %v3558_v28 = vmul.f32 %v3556_v26, %v3556_v26 }
0x239b   :  { %v3562_v42 = vsel %vm138_vm2, %v3558_v28, 0.0  ;;  %v3557_v54 = vmul.f32 %v3555_v40, %v3555_v40 }
0x239c   :  { %3563 = vadd.xlane.f32.xlu1 %v3562_v42 }
0x239d   :  { %v3559_v29 = vsel %vm138_vm2, %v3557_v54, 0.0 }
0x239e   :  { %3560 = vadd.xlane.f32.xlu0 %v3559_v29 }
0x2425   :  { %v3564_v39 = vpop.xlane.xlu1 %3563 }
0x2426   :  { %v3566_v41 = vmul.f32 0.03125, %v3564_v39 }
0x2427   :  { %v3561_v16 = vpop.xlane.xlu0 %3560 }
0x2428   :  { %v3568_v43 = vadd.f32 1e-05, %v3566_v41  ;;  %v3565_v44 = vmul.f32 0.03125, %v3561_v16 }
0x242a   :  { %5727 = vrsqrt.f32 %v3568_v43  ;;  %v3567_v45 = vadd.f32 1e-05, %v3565_v44 }
0x242c   :  { %5729 = vrsqrt.f32 %v3567_v45 }
0x2437   :  { %v5728_v14 = vpop.eup %5727 }
0x2438   :  { %v3572_v46 = vmul.f32 %v5728_v14, %v3556_v26 }
0x2439   :  { %v5730_v3 = vpop.eup %5729 }
0x243a   :  { %v3571_v24 = vmul.f32 %v5730_v3, %v3555_v40  ;;  %v3578_v52 = vmul.f32 %v3576_v18, %v3572_v46 }
0x243c   :  { %v3577_v25 = vmul.f32 %v3576_v18, %v3571_v24  ;;  %v3584_v57 = vadd.f32 %v3582_v53, %v3578_v52 }
0x243e   :  { %v3583_v55 = vadd.f32 %v3582_v53, %v3577_v25 }
0x2440   :  { %5543 = vmatprep.mubr.msk.f32.mxu1 %vm138_vm2, %v3583_v55 }
0x2441   :  { %5544 = vmatmul.mubr.msk.f32.vlgmr.msra.gmra.mxu1 %vm138_vm2, %v3584_v57 }
0x2442   :  { %5548 = vmatprep.mubr.msk.f32.mxu1 %vm5776_vm3, %v5775_v62 }
0x2501   :  { %v5545_v59 = vpop.f32.mrf.mxu1 }
0x2502   :  { %v6631_v50 = vadd.f32 %v5545_v59, %v3593_v58 }
0x2503   :  { %v3666_v60 = vpop.f32.mrf.mxu1 }
0x2504   :  { %v6633_v61 = vadd.f32 %v3666_v60, %v3593_v58  ;;  %3753 = vrot.lane.b32.xlu1 %v6631_v50, %s5777_s26 }
0x2506   :  { %3676 = vrot.lane.b32.xlu0 %v6633_v61, %s5777_s26  ;;  %s4776_s26 = sshll.u32 %s5783_s2, 4  ;;  %s4777_s26 = int_to_ptr.vmem [resolvable:$true] %s4776_s26 }
0x2507   :  { %p5756_p1 = scmp.lt.s32.totalorder %s4777_s26, %s4777_s26 }
0x2576   :  { %v3754_v0 = vpop.permute.xlu1 %3753 }
0x2578   :  { %v3677_v51 = vpop.permute.xlu0 %3676 }
0x2579   :  { %5547 = vmatpush3.xpose.msk.msra.mxu1 %vm270_vm4, %v3677_v51 }
0x257a   :  { %5551 = vmatprep.subr.mxu1 %v5775_v62 }
0x257c   :  { %5549 = vmatmul.mubr.msk.f32.vlgmr.msra.gmra.mxu1 %vm270_vm4, %v6633_v61 }
0x257d   :  { %5552 = vmatpush3.xpose.msk.msra.mxu1 %vm270_vm4, %v3754_v0  ;;  %5553 = vmatprep.mubr.msk.f32.mxu1 %vm5776_vm3, %v5775_v62 }
0x257e   :  { %5556 = vmatprep.subr.mxu1 %v5775_v62 }
0x2580   :  { %5554 = vmatmul.mubr.msk.f32.vlgmr.msra.gmra.mxu1 %vm270_vm4, %v6631_v50 }
0x2581   :  { %5558 = vmatprep.mubr.msk.f32.mxu1 %vm5776_vm3, %v5775_v62 }
0x263c   :  { %v3748_v63 = vpop.f32.mrf.mxu1 }
0x263d   :  { %v3829_v34 = vsel %vm422_vm5, %v3748_v63, -inf }
0x263e   :  { %3830 = vmax.xlane.f32.xlu1 %v3829_v34  ;;  %v5550_v1 = vpop.f32.mrf.mxu1 }
0x2640   :  { %v3825_v2 = vpop.f32.mrf.mxu1 }
0x2641   :  { %v3832_v5 = vsel %vm422_vm5, %v3825_v2, -inf }
0x2642   :  { %3833 = vmax.xlane.f32.xlu0 %v3832_v5  ;;  %v5555_v6 = vpop.f32.mrf.mxu1 }
0x264f   :  { %3933 = vrot.lane.b32.xlu1 %v6631_v50, %s5778_s27 }
0x26c7   :  { %v3831_v7 = vpop.xlane.xlu1 %3830 }
0x26c8   :  { %v3835_v8 = vsub.f32 %v3748_v63, %v3831_v7 }
0x26ca   :  { %v3837_v31 = vmul.f32 1.442695, %v3835_v8 }
0x26cb   :  { %v3834_v9 = vpop.xlane.xlu0 %3833  ;;  %v3934_v32 = vpop.permute.xlu1 %3933 }
0x26cc   :  { %5731 = vpow2.f32 %v3837_v31  ;;  %v3836_v10 = vsub.f32 %v3825_v2, %v3834_v9 }
0x26ce   :  { %v3839_v36 = vmul.f32 1.442695, %v3836_v10 }
0x26d0   :  { %5733 = vpow2.f32 %v3839_v36 }
0x26d9   :  { %v5732_v13 = vpop.eup %5731 }
0x26da   :  { %v3841_v17 = vsel %vm422_vm5, %v5732_v13, 0.0 }
0x26db   :  { %3842 = vadd.xlane.f32.xlu0 %v3841_v17 }
0x26dd   :  { %v5734_v4 = vpop.eup %5733 }
0x26de   :  { %v3844_v22 = vsel %vm422_vm5, %v5734_v4, 0.0 }
0x26df   :  { %3845 = vadd.xlane.f32.xlu1 %v3844_v22  ;;  %v4922_v22 = vld [vmem:[%s6846_s3 + $0x78] sm:$0xff] }
0x26f0   :  { %4013 = vrot.lane.b32.xlu1 %v6633_v61, %s5779_s28 }
0x26f1   :  { %3857 = vrot.lane.b32.xlu0 %v6633_v61, %s5778_s27  ;;  %s5751_s27 = scalar_lea.vmem %s4777_s26, 32 }
0x26f2   :  { %p5752_p0 = scmp.ne.s32.totalorder %s4777_s26, %s5751_s27  ;;  %p5757_p2 = scmp.lt.s32.totalorder %s5751_s27, %s5751_s27 }
0x26f4   :  { %4091 = vrot.lane.b32.xlu1 %v6631_v50, %s5779_s28  ;;  %p5758_p3 = por %p5757_p2, %p5756_p1 }
0x26f5   :  { %4011 = vrot.lane.b32.xlu0 %v6633_v61, %s5780_s29 }
0x26f6   :  { %p5759_p4 = pnand %p5758_p3, %p5752_p0 }
0x26f9   :  { %4089 = vrot.lane.b32.xlu0 %v6631_v50, %s5780_s29 }
0x2764   :  { %v3843_v23 = vpop.xlane.xlu0 %3842 }
0x2765   :  { %5735 = vrcp.f32 %v3843_v23 }
0x2768   :  { %v3846_v26 = vpop.xlane.xlu1 %3845  ;;  %v3858_v27 = vpop.permute.xlu0 %3857 }
0x2769   :  { %5737 = vrcp.f32 %v3846_v26  ;;  %5557 = vmatpush3.msra.mxu1 %v3858_v27 }
0x276a   :  { %5561 = vmatprep.subr.mxu1 %v5775_v62 }
0x276c   :  { %v4014_v41 = vpop.permute.xlu1 %4013  ;;  %v4012_v16 = vpop.permute.xlu0 %4011 }
0x2770   :  { %v4092_v43 = vpop.permute.xlu1 %4091  ;;  %v4090_v44 = vpop.permute.xlu0 %4089 }
0x2772   :  { %v5736_v40 = vpop.eup %5735 }
0x2773   :  { %v3849_v28 = vmul.f32 %v5736_v40, %v3843_v23  ;;  %v4920_v23 = vld [vmem:[%s6846_s3 + $0x68] sm:$0xff] }
0x2775   :  { %v3851_v42 = vsub.f32 2.0, %v3849_v28 }
0x2776   :  { %v5738_v54 = vpop.eup %5737 }
0x2777   :  { %v3853_v29 = vmul.f32 %v5736_v40, %v3851_v42  ;;  %v3850_v30 = vmul.f32 %v5738_v54, %v3846_v26  ;;  %v4919_v26 = vld [vmem:[%s6846_s3 + $0x60] sm:$0xff] }
0x2779   :  { %v3855_v56 = vmul.f32 %v5732_v13, %v3853_v29  ;;  %v3852_v33 = vsub.f32 2.0, %v3850_v30 }
0x277b   :  { %v3854_v38 = vmul.f32 %v5738_v54, %v3852_v33  ;;  %5559 = vmatmul.mubr.msk.f32.vlgmr.msra.gmra.mxu1 %vm422_vm5, %v3855_v56  ;;  %v4450_v33 = vrot.slane %v6619_v12, %v6026_v35 }
0x277c   :  { %5562 = vmatpush3.msra.mxu1 %v3934_v32  ;;  %5563 = vmatprep.mubr.msk.f32.mxu1 %vm5776_vm3, %v5775_v62  ;;  %v4921_v32 = vld [vmem:[%s6846_s3 + $0x70] sm:$0xff] }
0x277d   :  { %v3856_v39 = vmul.f32 %v5734_v4, %v3854_v38  ;;  %5566 = vmatprep.subr.mxu1 %v5775_v62 }
0x277f   :  { %5564 = vmatmul.mubr.msk.f32.vlgmr.msra.gmra.mxu1 %vm422_vm5, %v3856_v39 }
0x2780   :  { %5567 = vmatpush3.xpose.msk.msra.mxu1 %vm270_vm4, %v4014_v41  ;;  %5568 = vmatprep.mubr.msk.f32.mxu1 %vm5776_vm3, %v5775_v62 }
0x2781   :  { %5571 = vmatprep.subr.mxu1 %v5775_v62 }
0x2783   :  { %5569 = vmatmul.mubr.msk.f32.vlgmr.msra.gmra.mxu1 %vm270_vm4, %v4012_v16 }
0x2784   :  { %5572 = vmatpush3.xpose.msk.msra.mxu1 %vm270_vm4, %v4092_v43  ;;  %5573 = vmatprep.mubr.msk.f32.mxu1 %vm5776_vm3, %v5775_v62 }
0x2785   :  { %5581 = vmatprep.subr.mxu1 %v5775_v62 }
0x2787   :  { %5574 = vmatmul.mubr.msk.f32.vlgmr.msra.gmra.mxu1 %vm270_vm4, %v4090_v44 }
0x2788   :  { %5583 = vmatprep.mubr.msk.f32.mxu1 %vm5776_vm3, %v5775_v62 }
0x283b   :  { %v3929_v45 = vpop.f32.mrf.mxu1 }
0x283c   :  { %4009 = vst.msk [vmem:[#allocation2] sm:$0xff] %vm270_vm4, %v3929_v45 }
0x283d   :  { %v5560_v14 = vpop.f32.mrf.mxu1 }
0x283f   :  { %v4005_v18 = vpop.f32.mrf.mxu1 }
0x2840   :  { %4010 = vst.msk [vmem:[#allocation2 + $0x8] sm:$0xff] %vm270_vm4, %v4005_v18 }
0x2841   :  { %v5565_v46 = vpop.f32.mrf.mxu1 }
0x2843   :  { %v4085_v3 = vpop.f32.mrf.mxu1 }
0x2844   :  { %v4167_v24 = vsel %vm422_vm5, %v4085_v3, -inf }
0x2845   :  { %4168 = vmax.xlane.f32.xlu1 %v4167_v24  ;;  %v5570_v52 = vpop.f32.mrf.mxu1 }
0x2847   :  { %v4163_v53 = vpop.f32.mrf.mxu1 }
0x2848   :  { %v4170_v25 = vsel %vm422_vm5, %v4163_v53, -inf }
0x2849   :  { %4171 = vmax.xlane.f32.xlu0 %v4170_v25  ;;  %v5575_v55 = vpop.f32.mrf.mxu1 }
0x284a   :  { %v4928_v55 = vld [vmem:[%s6847_s4 + $0x78] sm:$0xff] }
0x28ce   :  { %v4169_v57 = vpop.xlane.xlu1 %4168 }
0x28cf   :  { %v4173_v62 = vsub.f32 %v4085_v3, %v4169_v57  ;;  %v4927_v57 = vld [vmem:[%s6847_s4 + $0x70] sm:$0xff] }
0x28d1   :  { %v4175_v58 = vmul.f32 1.442695, %v4173_v62  ;;  %v4926_v62 = vld [vmem:[%s6847_s4 + $0x68] sm:$0xff] }
0x28d2   :  { %v4172_v59 = vpop.xlane.xlu0 %4171 }
0x28d3   :  { %5739 = vpow2.f32 %v4175_v58  ;;  %v4174_v60 = vsub.f32 %v4163_v53, %v4172_v59  ;;  %v4925_v58 = vld [vmem:[%s6847_s4 + $0x60] sm:$0xff]  ;;  %v4946_v59 = vld [vmem:[%s6848_s5 + $0x1f8] sm:$0xff] }
0x28d5   :  { %v4177_v51 = vmul.f32 1.442695, %v4174_v60  ;;  %v4945_v60 = vld [vmem:[%s6848_s5 + $0x1f0] sm:$0xff] }
0x28d7   :  { %5741 = vpow2.f32 %v4177_v51  ;;  %v4944_v51 = vld [vmem:[%s6848_s5 + $0x1e8] sm:$0xff] }
0x28e0   :  { %v5740_v0 = vpop.eup %5739 }
0x28e1   :  { %v4179_v63 = vsel %vm422_vm5, %v5740_v0, 0.0 }
0x28e2   :  { %4180 = vadd.xlane.f32.xlu0 %v4179_v63  ;;  %v4942_v63 = vld [vmem:[%s6848_s5 + $0x1d8] sm:$0xff] }
0x28e4   :  { %v5742_v34 = vpop.eup %5741 }
0x28e5   :  { %v4182_v1 = vsel %vm422_vm5, %v5742_v34, 0.0 }
0x28e6   :  { %4183 = vadd.xlane.f32.xlu1 %v4182_v1  ;;  %v4940_v1 = vld [vmem:[%s6848_s5 + $0x1c8] sm:$0xff] }
0x28f7   :  { %4271 = vrot.lane.b32.xlu1 %v6631_v50, %s5781_s30 }
0x28f8   :  { %4195 = vrot.lane.b32.xlu0 %v6633_v61, %s5781_s30 }
0x296b   :  { %v4181_v2 = vpop.xlane.xlu0 %4180 }
0x296c   :  { %5743 = vrcp.f32 %v4181_v2 }
0x296f   :  { %v4184_v5 = vpop.xlane.xlu1 %4183  ;;  %v4196_v6 = vpop.permute.xlu0 %4195 }
0x2970   :  { %5745 = vrcp.f32 %v4184_v5  ;;  %5577 = vmatpush3.msra.mxu0 %v4196_v6  ;;  %v4937_v6 = vld [vmem:[%s6848_s5 + $0x1b0] sm:$0xff] }
0x2971   :  { %5586 = vmatprep.subr.mxu0 %v4922_v22 }
0x2973   :  { %v4272_v7 = vpop.permute.xlu1 %4271 }
0x2974   :  { %5582 = vmatpush3.msra.mxu1 %v4272_v7  ;;  %v4936_v7 = vld [vmem:[%s6848_s5 + $0x1a8] sm:$0xff] }
0x2975   :  { %5597 = vmatprep.subr.mxu1 %v4928_v55 }
0x2979   :  { %v5744_v8 = vpop.eup %5743 }
0x297a   :  { %v4187_v31 = vmul.f32 %v5744_v8, %v4181_v2  ;;  %v4939_v2 = vld [vmem:[%s6848_s5 + $0x1c0] sm:$0xff] }
0x297c   :  { %v4189_v9 = vsub.f32 2.0, %v4187_v31 }
0x297d   :  { %v5746_v10 = vpop.eup %5745 }
0x297e   :  { %v4191_v36 = vmul.f32 %v5744_v8, %v4189_v9  ;;  %v4188_v13 = vmul.f32 %v5746_v10, %v4184_v5  ;;  %v4938_v5 = vld [vmem:[%s6848_s5 + $0x1b8] sm:$0xff]  ;;  %v4935_v8 = vld [vmem:[%s6848_s5 + $0x1a0] sm:$0xff] }
0x2980   :  { %v4193_v17 = vmul.f32 %v5740_v0, %v4191_v36  ;;  %v4190_v4 = vsub.f32 2.0, %v4188_v13  ;;  %v4943_v0 = vld [vmem:[%s6848_s5 + $0x1e0] sm:$0xff] }
0x2982   :  { %v4192_v50 = vmul.f32 %v5746_v10, %v4190_v4  ;;  %5579 = vmatmul.mubr.msk.f32.vlgmr.msra.gmra.mxu0 %vm422_vm5, %v4193_v17 }
0x2983   :  { %5587 = vmatpush3.msra.mxu0 %v4922_v22 }
0x2984   :  { %v4194_v61 = vmul.f32 %v5742_v34, %v4192_v50  ;;  %5588 = vmatprep.subr.mxu0 %v4921_v32  ;;  %v4941_v34 = vld [vmem:[%s6848_s5 + $0x1d0] sm:$0xff]  ;;  %v4482_v50 = vrot.slane %v6619_v12, %v6101_v19  ;;  %v4934_v19 = vld [vmem:[%s6848_s5 + $0x198] sm:$0xff] }
0x2985   :  { %5589 = vmatpush3.msra.mxu0 %v4921_v32 }
0x2986   :  { %5584 = vmatmul.mubr.msk.f32.vlgmr.msra.gmra.mxu1 %vm422_vm5, %v4194_v61  ;;  %5590 = vmatprep.subr.mxu0 %v4920_v23 }
0x2987   :  { %5591 = vmatpush3.msra.mxu0 %v4920_v23  ;;  %5598 = vmatpush3.msra.mxu1 %v4928_v55 }
0x2988   :  { %5592 = vmatprep.subr.mxu0 %v4919_v26  ;;  %5599 = vmatprep.subr.mxu1 %v4927_v57 }
0x2989   :  { %5593 = vmatpush3.msra.mxu0 %v4919_v26  ;;  %5600 = vmatpush3.msra.mxu1 %v4927_v57  ;;  %v4488_v26 = vrot.slane %v6619_v12, %v6106_v21  ;;  %v4932_v21 = vld [vmem:[%s6848_s5 + $0x188] sm:$0xff] }
0x298a   :  { %5601 = vmatprep.subr.mxu1 %v4926_v62  ;;  %5608 = vmatprep.subr.mxu0 %v4946_v59 }
0x298b   :  { %5602 = vmatpush3.msra.mxu1 %v4926_v62 }
0x298c   :  { %5603 = vmatprep.subr.mxu1 %v4925_v58 }
0x298d   :  { %5604 = vmatpush3.msra.mxu1 %v4925_v58 }
0x2a42   :  { %v4267_v27 = vpop.f32.mrf.mxu0 }
0x2a43   :  { %4349 = vrot.lane.b32.xlu1 %v4267_v27, %s5782_s17 }
0x2a44   :  { %v5580_v40 = vpop.f32.mrf.mxu0 }
0x2a46   :  { %v4343_v28 = vpop.f32.mrf.mxu1 }
0x2a47   :  { %4351 = vrot.lane.b32.xlu0 %v4343_v28, %s5782_s17 }
0x2a48   :  { %v5585_v42 = vpop.f32.mrf.mxu1 }
0x2a49   :  { %v4933_v42 = vld [vmem:[%s6848_s5 + $0x190] sm:$0xff] }
0x2ab5   :  { %v4350_v54 = vpop.permute.xlu1 %4349 }
0x2ab6   :  { %4355 = vst.msk [vmem:[#allocation2] sm:$0xff] %vm949_vm6, %v4350_v54  ;;  %v4931_v54 = vld [vmem:[%s6848_s5 + $0x180] sm:$0xff] }
0x2ab9   :  { %v4352_v29 = vpop.permute.xlu0 %4351 }
0x2aba   :  { %4356 = vst.msk [vmem:[#allocation2 + $0x8] sm:$0xff] %vm949_vm6, %v4352_v29  ;;  %v4499_v29 = vrot.slane %v6619_v12, %v6128_v37 }
0x2abd   :  { %v4357_v30 = vld [vmem:[#allocation2] sm:$0xff] }
0x2abe   :  { %5594 = vmatprep.mubr.msk.f32.mxu0 %vm138_vm2, %v4357_v30 }
0x2ac1   :  { %v4358_v56 = vld [vmem:[#allocation2 + $0x8] sm:$0xff] }
0x2ac2   :  { %5595 = vmatmul.mubr.msk.f32.vlgmr.msra.gmra.mxu0 %vm138_vm2, %v4358_v56 }
0x2ac3   :  { %5609 = vmatpush3.msra.mxu0 %v4946_v59  ;;  %v4694_v59 = vsub.s32 %v5883_v20, %v5911_v48 }
0x2ac4   :  { %5610 = vmatprep.subr.mxu0 %v4945_v60 }
0x2ac5   :  { %5611 = vmatpush3.msra.mxu0 %v4945_v60 }
0x2ac6   :  { %5612 = vmatprep.subr.mxu0 %v4944_v51 }
0x2ac7   :  { %5613 = vmatpush3.msra.mxu0 %v4944_v51 }
0x2ac8   :  { %5614 = vmatprep.subr.mxu0 %v4943_v0 }
0x2ac9   :  { %5615 = vmatpush3.msra.mxu0 %v4943_v0 }
0x2aca   :  { %5616 = vmatprep.subr.mxu0 %v4942_v63 }
0x2acb   :  { %5617 = vmatpush3.msra.mxu0 %v4942_v63 }
0x2acc   :  { %5618 = vmatprep.subr.mxu0 %v4941_v34 }
0x2acd   :  { %5619 = vmatpush3.msra.mxu0 %v4941_v34 }
0x2ace   :  { %5620 = vmatprep.subr.mxu0 %v4940_v1 }
0x2acf   :  { %5621 = vmatpush3.msra.mxu0 %v4940_v1 }
0x2ad0   :  { %5622 = vmatprep.subr.mxu0 %v4939_v2 }
0x2ad1   :  { %5623 = vmatpush3.msra.mxu0 %v4939_v2 }
0x2ad2   :  { %5624 = vmatprep.subr.mxu0 %v4938_v5 }
0x2ad3   :  { %5625 = vmatpush3.msra.mxu0 %v4938_v5 }
0x2ad4   :  { %5626 = vmatprep.subr.mxu0 %v4937_v6 }
0x2ad5   :  { %5627 = vmatpush3.msra.mxu0 %v4937_v6 }
0x2ad6   :  { %5628 = vmatprep.subr.mxu0 %v4936_v7 }
0x2ad7   :  { %5629 = vmatpush3.msra.mxu0 %v4936_v7 }
0x2ad8   :  { %5630 = vmatprep.subr.mxu0 %v4935_v8 }
0x2ad9   :  { %5631 = vmatpush3.msra.mxu0 %v4935_v8 }
0x2ada   :  { %5632 = vmatprep.subr.mxu0 %v4934_v19 }
0x2adb   :  { %5633 = vmatpush3.msra.mxu0 %v4934_v19 }
0x2adc   :  { %5634 = vmatprep.subr.mxu0 %v4933_v42 }
0x2add   :  { %5635 = vmatpush3.msra.mxu0 %v4933_v42 }
0x2ade   :  { %5636 = vmatprep.subr.mxu0 %v4932_v21 }
0x2adf   :  { %5637 = vmatpush3.msra.mxu0 %v4932_v21 }
0x2ae0   :  { %5638 = vmatprep.subr.mxu0 %v4931_v54 }
0x2ae1   :  { %5639 = vmatpush3.msra.mxu0 %v4931_v54 }
0x2b82   :  { %v5596_v38 = vpop.f32.mrf.mxu0 }
0x2b83   :  { %v4446_v39 = vadd.f32 %v5596_v38, %v6590_v11 }
0x2b84   :  { %v4436_v41 = vpop.f32.mrf.mxu0 }
0x2b85   :  { %v6718_v16 = vadd.f32 %v4450_v33, %v4446_v39  ;;  %v4445_v43 = vadd.f32 %v4436_v41, %v6593_v15 }
0x2b87   :  { %v6721_v44 = vadd.f32 %v4450_v33, %v4445_v43  ;;  %v4456_v45 = vsel %vm138_vm2, %v6718_v16, 0.0  ;;  %v4603_v43 = vrot.slane %v6619_v12, %v6135_v47 }
0x2b88   :  { %4457 = vadd.xlane.f32.xlu0 %v4456_v45 }
0x2b89   :  { %v4453_v14 = vsel %vm138_vm2, %v6721_v44, 0.0 }
0x2b8a   :  { %4454 = vadd.xlane.f32.xlu1 %v4453_v14 }
0x2c11   :  { %v4458_v18 = vpop.xlane.xlu0 %4457 }
0x2c12   :  { %v4460_v35 = vmul.f32 0.03125, %v4458_v18 }
0x2c13   :  { %v4455_v46 = vpop.xlane.xlu1 %4454 }
0x2c14   :  { %v6728_v11 = vsub.f32 %v6718_v16, %v4460_v35  ;;  %v4459_v3 = vmul.f32 0.03125, %v4455_v46  ;;  %v4681_v35 = vld [vmem:[%s6849_s6] sm:$0xff] }
0x2c16   :  { %v6731_v24 = vsub.f32 %v6721_v44, %v4459_v3  ;;  %v4464_v15 = vmul.f32 %v6728_v11, %v6728_v11 }
0x2c18   :  { %v4468_v52 = vsel %vm138_vm2, %v4464_v15, 0.0  ;;  %v4463_v53 = vmul.f32 %v6731_v24, %v6731_v24 }
0x2c19   :  { %4469 = vadd.xlane.f32.xlu1 %v4468_v52  ;;  %v4948_v52 = vld [vmem:[%s6849_s6 + $0x10] sm:$0xff] }
0x2c1a   :  { %v4465_v25 = vsel %vm138_vm2, %v4463_v53, 0.0 }
0x2c1b   :  { %4466 = vadd.xlane.f32.xlu0 %v4465_v25 }
0x2ca2   :  { %v4470_v31 = vpop.xlane.xlu1 %4469 }
0x2ca3   :  { %v4472_v9 = vmul.f32 0.03125, %v4470_v31 }
0x2ca4   :  { %v4467_v10 = vpop.xlane.xlu0 %4466 }
0x2ca5   :  { %v4474_v36 = vadd.f32 1e-05, %v4472_v9  ;;  %v4471_v13 = vmul.f32 0.03125, %v4467_v10 }
0x2ca7   :  { %5747 = vrsqrt.f32 %v4474_v36  ;;  %v4473_v17 = vadd.f32 1e-05, %v4471_v13 }
0x2ca9   :  { %5749 = vrsqrt.f32 %v4473_v17  ;;  %v4949_v17 = vld [vmem:[%s6850_s7 + $0x20] sm:$0xff] }
0x2cb4   :  { %v5748_v4 = vpop.eup %5747 }
0x2cb5   :  { %v4478_v61 = vmul.f32 %v5748_v4, %v6728_v11  ;;  %v4947_v11 = vld [vmem:[%s6849_s6 + $0x8] sm:$0xff] }
0x2cb6   :  { %v5750_v22 = vpop.eup %5749 }
0x2cb7   :  { %v4477_v32 = vmul.f32 %v5750_v22, %v6731_v24  ;;  %v4484_v23 = vmul.f32 %v4482_v50, %v4478_v61  ;;  %v4766_v61 = vrot.slane %v4949_v17, %v5914_v49 }
0x2cb9   :  { %v4483_v27 = vmul.f32 %v4482_v50, %v4477_v32  ;;  %v4490_v28 = vadd.f32 %v4488_v26, %v4484_v23 }
0x2cbb   :  { %v4489_v40 = vadd.f32 %v4488_v26, %v4483_v27 }
0x2cbd   :  { %5605 = vmatprep.mubr.msk.f32.mxu1 %vm138_vm2, %v4489_v40 }
0x2cbe   :  { %5606 = vmatmul.mubr.msk.f32.vlgmr.msra.gmra.mxu1 %vm138_vm2, %v4490_v28 }
0x2d7e   :  { %v5607_v30 = vpop.f32.mrf.mxu1 }
0x2d7f   :  { %v4578_v56 = vadd.f32 %v5607_v30, %v4499_v29 }
0x2d80   :  { %v4572_v33 = vpop.f32.mrf.mxu1 }
0x2d81   :  { %v4573_v38 = vadd.f32 %v4572_v33, %v4499_v29  ;;  %v4582_v41 = vmax.f32 %v4578_v56, 0.0 }
0x2d83   :  { %v4581_v39 = vmax.f32 %v4573_v38, 0.0 }
0x2d85   :  { %5640 = vmatprep.mubr.f32.mxu0 %v4581_v39 }
0x2d86   :  { %5641 = vmatmul.mubr.f32.vlgmr.msra.gmra.mxu0 %v4582_v41 }
0x2e46   :  { %v5642_v45 = vpop.f32.mrf.mxu0 }
0x2e47   :  { %v4676_v14 = vadd.f32 %v5642_v45, %v4603_v43 }
0x2e48   :  { %v4670_v18 = vpop.f32.mrf.mxu0 }
0x2e49   :  { %v4680_v37 = vadd.f32 %v4676_v14, %v6718_v16  ;;  %v4671_v46 = vadd.f32 %v4670_v18, %v4603_v43 }
0x2e4b   :  { %v4679_v3 = vadd.f32 %v4671_v46, %v6721_v44  ;;  %v4683_v24 = vmul.f32 %v4681_v35, %v4680_v37  ;;  %v4710_v12 = vmul.f32 %v4947_v11, %v4680_v37  ;;  %v4735_v55 = vmul.f32 %v4948_v52, %v4680_v37 }
0x2e4d   :  { %v4687_v15 = vsel %vm138_vm2, %v4683_v24, 0.0  ;;  %v4682_v47 = vmul.f32 %v4681_v35, %v4679_v3  ;;  %v4709_v16 = vmul.f32 %v4947_v11, %v4679_v3  ;;  %v4714_v25 = vsel %vm138_vm2, %v4710_v12, 0.0 }
0x2e4e   :  { %4688 = vadd.xlane.f32.xlu1 %v4687_v15  ;;  %v4734_v57 = vmul.f32 %v4948_v52, %v4679_v3  ;;  %v4739_v62 = vsel %vm138_vm2, %v4735_v55, 0.0 }
0x2e4f   :  { %v4684_v53 = vsel %vm138_vm2, %v4682_v47, 0.0  ;;  %v4711_v44 = vsel %vm138_vm2, %v4709_v16, 0.0 }
0x2e50   :  { %4685 = vadd.xlane.f32.xlu0 %v4684_v53  ;;  %v4736_v58 = vsel %vm138_vm2, %v4734_v57, 0.0 }
0x2e52   :  { %4715 = vadd.xlane.f32.xlu1 %v4714_v25 }
0x2e54   :  { %4712 = vadd.xlane.f32.xlu0 %v4711_v44 }
0x2e56   :  { %4740 = vadd.xlane.f32.xlu1 %v4739_v62 }
0x2e58   :  { %4737 = vadd.xlane.f32.xlu0 %v4736_v58 }
0x2ed7   :  { %v4689_v60 = vpop.xlane.xlu1 %4688 }
0x2ed8   :  { %v4699_v0 = vrot.slane %v4689_v60, %v4694_v59 }
0x2ed9   :  { %v4686_v51 = vpop.xlane.xlu0 %4685 }
0x2eda   :  { %v4695_v63 = vrot.slane %v4686_v51, %v4694_v59 }
0x2edb   :  { %v4716_v34 = vpop.xlane.xlu1 %4715 }
0x2edc   :  { %v4701_v1 = vsel %vm4700_vm7, %v4699_v0, %v4695_v63  ;;  %v4726_v6 = vrot.slane %v4716_v34, %v4694_v59 }
0x2edd   :  { %v4713_v2 = vpop.xlane.xlu0 %4712  ;;  %v4704_v5 = vsel %vm4703_vm8, %v4701_v1, 0.0 }
0x2ede   :  { %v4722_v7 = vrot.slane %v4713_v2, %v4694_v59  ;;  %4705 = vadd.xlane.f32.xlu0 %v4704_v5 }
0x2edf   :  { %v4741_v8 = vpop.xlane.xlu1 %4740 }
0x2ee0   :  { %v4727_v31 = vsel %vm4700_vm7, %v4726_v6, %v4722_v7  ;;  %v4751_v48 = vrot.slane %v4741_v8, %v4694_v59 }
0x2ee1   :  { %v4738_v9 = vpop.xlane.xlu0 %4737  ;;  %v4729_v20 = vsel %vm4703_vm8, %v4727_v31, 0.0 }
0x2ee2   :  { %v4747_v10 = vrot.slane %v4738_v9, %v4694_v59  ;;  %4730 = vadd.xlane.f32.xlu1 %v4729_v20 }
0x2ee4   :  { %v4752_v36 = vsel %vm4700_vm7, %v4751_v48, %v4747_v10 }
0x2ee5   :  { %v4754_v13 = vsel %vm4703_vm8, %v4752_v36, 0.0 }
0x2ee6   :  { %4755 = vadd.xlane.f32.xlu0 %v4754_v13 }
0x2f67   :  { %v4706_v4 = vpop.xlane.xlu0 %4705 }
0x2f6b   :  { %v4731_v50 = vpop.xlane.xlu1 %4730 }
0x2f6c   :  { %v4760_v22 = vsel %vm4759_vm9, %v4706_v4, %v4731_v50 }
0x2f6f   :  { %v4756_v32 = vpop.xlane.xlu0 %4755 }
0x2f70   :  { %v4762_v23 = vsel %vm4761_vm10, %v4760_v22, %v4756_v32 }
0x2f71   :  { %v4767_v26 = vadd.f32 %v4766_v61, %v4762_v23 }
0x2f73   :  { %4769 = vst.msk [vmem:[#allocation3] sm:$0x3] %vm4768_vm11, %v4767_v26 }
0x2f74   :  { %5762 = shalt.err (!%p5759_p4)
}
0x2f75   :  { %4779 = dma.vmem_to_hbm [thread:$0]  %s4777_s26, 32, %s6851_s8, [#allocation4]  }
0x2f76   :  { %5771 = dma.done.wait [#allocation4], 32  }
0x2f77   :  { %5772 = vsyncadd [#allocation4], 4294967264 }
0x2f78   :  { %4783 = vsyncpa [#allocation4], 1 }

</bundles_post_ra>
